<compile_context>
chip_gen: v5e
topology: v5e:2x2
jax: 0.10.0
libtpu: 0.0.40
codegen_flags: <defaults>
</compile_context>

<pallas_src>
import functools

import jax
import jax.numpy as jnp
from jax.experimental import pallas as pl
from jax.experimental.pallas import tpu as pltpu

H = 16            # spatial height
W = 16            # spatial width
COUT = 256        # convnet feature width (feeds fc_in: Linear(256, 256))
FC_HID = 256
FC_OUT = 199
FC_OUT_PAD = 256  # lane-dense padded fc_out width (sliced back to 199 outside)
TB = 8            # batch tile per grid step


# ---------------------------------------------------------------------------
# Fused per-batch-tile kernel: conv(im2col matmul) + bias + ReLU + GAP(matmul)
# + fc_in (+ fc_out).  Everything runs on the MXU with light VPU epilogues.
# ---------------------------------------------------------------------------
def _fused_kernel(train, patches_ref, pool_ref, cw_ref, cb_ref,
                  wi_ref, bi_ref, *rest):
    if train:
        wo_ref, bo_ref, o_ref = rest
    else:
        (o_ref,) = rest

    # 3x3 'same' conv (C_in=1 -> COUT) as one im2col matmul, f32 accumulation.
    conv = jnp.dot(patches_ref[...], cw_ref[...],
                   preferred_element_type=jnp.float32)           # (TB*H*W, COUT)
    conv = jnp.maximum(conv + cb_ref[...], 0.0)                  # bias + ReLU

    # Global average pooling as a block-diagonal averaging matmul (MXU).
    feats = jnp.dot(pool_ref[...], conv,
                    preferred_element_type=jnp.float32)          # (TB, COUT)

    hidden = jnp.dot(feats, wi_ref[...],
                     preferred_element_type=jnp.float32) + bi_ref[...]
    if train:
        o_ref[...] = jnp.dot(hidden, wo_ref[...],
                             preferred_element_type=jnp.float32) + bo_ref[...]
    else:
        o_ref[...] = hidden


# ---------------------------------------------------------------------------
# Host-side layout plumbing (no compute hoisted out of the kernel).
# ---------------------------------------------------------------------------
def _im2col(x):
    """x: (B, H, W) -> 'same'-padded 3x3 patches (B*H*W, 9); tap k = 3*dh+dw."""
    xp = jnp.pad(x, ((0, 0), (1, 1), (1, 1)))
    taps = [xp[:, dh:dh + H, dw:dw + W] for dh in range(3) for dw in range(3)]
    return jnp.stack(taps, axis=-1).reshape(-1, 9)


def _pool_matrix(tb):
    """(tb, tb*H*W) block-diagonal global-average-pool matrix."""
    eye = jnp.eye(tb, dtype=jnp.float32)
    return jnp.repeat(eye, H * W, axis=1) * (1.0 / (H * W))


@functools.partial(jax.jit, static_argnames=("train",))
def model_forward(x, params, train=True):
    B = x.shape[0]
    tb = TB
    if B < tb:
        tb = B                                   # single block covers tiny batches
    elif B % tb != 0:
        pad = (-B) % tb
        x = jnp.concatenate([x, jnp.zeros((pad, H, W), x.dtype)], axis=0)
    b_pad = x.shape[0]

    patches = _im2col(x)                         # (b_pad*H*W, 9)
    pool = _pool_matrix(tb)                      # (tb, tb*H*W)

    inputs = [patches, pool, params["conv_w9"], params["conv_b"],
              params["fc_in_w_t"], params["fc_in_b"]]
    in_specs = [
        pl.BlockSpec((tb * H * W, 9), lambda b: (b, 0)),
        pl.BlockSpec((tb, tb * H * W), lambda b: (0, 0)),
        pl.BlockSpec((9, COUT), lambda b: (0, 0)),
        pl.BlockSpec((1, COUT), lambda b: (0, 0)),
        pl.BlockSpec((FC_HID, FC_HID), lambda b: (0, 0)),
        pl.BlockSpec((1, FC_HID), lambda b: (0, 0)),
    ]
    if train:
        inputs += [params["fc_out_w_t_pad"], params["fc_out_b_pad"]]
        in_specs += [
            pl.BlockSpec((FC_HID, FC_OUT_PAD), lambda b: (0, 0)),
            pl.BlockSpec((1, FC_OUT_PAD), lambda b: (0, 0)),
        ]
        n_out = FC_OUT_PAD
    else:
        n_out = FC_HID

    out = pl.pallas_call(
        functools.partial(_fused_kernel, train),
        out_shape=jax.ShapeDtypeStruct((b_pad, n_out), jnp.float32),
        grid=(b_pad // tb,),
        in_specs=in_specs,
        out_specs=pl.BlockSpec((tb, n_out), lambda b: (b, 0)),
        compiler_params=pltpu.CompilerParams(
            dimension_semantics=("parallel",)),
    )(*inputs)

    out = out[:B]
    if train:
        out = out[:, :FC_OUT]                    # undo lane padding outside
    return out


# ---------------------------------------------------------------------------
# Pure-JAX reference (same math) for correctness checking.
# ---------------------------------------------------------------------------
def model_forward_ref(x, params, train=True):
    B = x.shape[0]
    xp = jnp.pad(x, ((0, 0), (1, 1), (1, 1)))
    wk = params["conv_w9"].reshape(3, 3, COUT)
    acc = jnp.zeros((B, H, W, COUT), jnp.float32)
    for dh in range(3):
        for dw in range(3):
            acc = acc + (xp[:, dh:dh + H, dw:dw + W, None]
                         * wk[dh, dw][None, None, None, :])
    acc = jax.nn.relu(acc + params["conv_b"][0])
    feats = jnp.mean(acc, axis=(1, 2))
    out = feats @ params["fc_in_w_t"] + params["fc_in_b"][0]
    if train:
        out = (out @ params["fc_out_w_t_pad"][:, :FC_OUT]
               + params["fc_out_b_pad"][0, :FC_OUT])
    return out


def init_params(key):
    k1, k2, k3, k4, k5, k6 = jax.random.split(key, 6)
    conv_w = jax.random.normal(k1, (3, 3, COUT), jnp.float32) * 0.1
    conv_b = jax.random.normal(k2, (1, COUT), jnp.float32) * 0.01
    # PyTorch Linear stores W as [out, in]; transpose to [in, out] for x @ W.
    fc_in_w = jax.random.normal(k3, (FC_HID, FC_HID), jnp.float32) / jnp.sqrt(FC_HID)
    fc_in_b = jax.random.normal(k4, (1, FC_HID), jnp.float32) * 0.01
    fc_out_w = jax.random.normal(k5, (FC_OUT, FC_HID), jnp.float32) / jnp.sqrt(FC_HID)
    fc_out_b = jax.random.normal(k6, (1, FC_OUT), jnp.float32) * 0.01
    # Pad fc_out to a lane-dense 256-wide kernel path.
    fc_out_w_t_pad = jnp.zeros((FC_HID, FC_OUT_PAD), jnp.float32)
    fc_out_w_t_pad = fc_out_w_t_pad.at[:, :FC_OUT].set(fc_out_w.T)
    fc_out_b_pad = jnp.zeros((1, FC_OUT_PAD), jnp.float32)
    fc_out_b_pad = fc_out_b_pad.at[:, :FC_OUT].set(fc_out_b)
    return {
        "conv_w9": conv_w.reshape(9, COUT),
        "conv_b": conv_b,
        "fc_in_w_t": fc_in_w.T,
        "fc_in_b": fc_in_b,
        "fc_out_w_t_pad": fc_out_w_t_pad,
        "fc_out_b_pad": fc_out_b_pad,
    }


if __name__ == "__main__":
    B = 16                                        # grid = (2,): even, both v7x TCs busy
    x = jax.random.normal(jax.random.PRNGKey(0), (B, H, W), jnp.float32)  # X: [B, H, W]
    params = init_params(jax.random.PRNGKey(42))

    # train=True path: conv stack -> fc_in -> fc_out, [B, 199]
    out = jax.block_until_ready(model_forward(x, params, train=True))
    assert out.shape == (B, FC_OUT), out.shape
    assert bool(jnp.all(jnp.isfinite(out)))
    ref = model_forward_ref(x, params, train=True)
    assert bool(jnp.allclose(out, ref, rtol=1e-4, atol=1e-4)), \
        float(jnp.max(jnp.abs(out - ref)))

    # train=False path: returns fc_in output, [B, 256]
    out_eval = jax.block_until_ready(model_forward(x, params, train=False))
    assert out_eval.shape == (B, FC_HID), out_eval.shape
    ref_eval = model_forward_ref(x, params, train=False)
    assert bool(jnp.allclose(out_eval, ref_eval, rtol=1e-4, atol=1e-4))

    print("KERNEL_OK")
</pallas_src>

<mosaic_0001>
module attributes {stable_mosaic.version = 11 : i64} {
  func.func @_fused_kernel(%arg0: i32, %arg1: memref<2048x9xf32, #tpu.memory_space<vmem>>, %arg2: memref<8x2048xf32, #tpu.memory_space<vmem>>, %arg3: memref<9x256xf32, #tpu.memory_space<vmem>>, %arg4: memref<1x256xf32, #tpu.memory_space<vmem>>, %arg5: memref<256x256xf32, #tpu.memory_space<vmem>>, %arg6: memref<1x256xf32, #tpu.memory_space<vmem>>, %arg7: memref<256x256xf32, #tpu.memory_space<vmem>>, %arg8: memref<1x256xf32, #tpu.memory_space<vmem>>, %arg9: memref<8x256xf32, #tpu.memory_space<vmem>>) attributes {dimension_semantics = [#tpu.dimension_semantics<parallel>], iteration_bounds = array<i64: 2>, scalar_prefetch = 0 : i64, scratch_operands = 0 : i64, tpu.core_type = #tpu.core_type<tc>, window_params = [{transform_indices = @transform_0, window_bounds = array<i64: 2048, 9>}, {pipeline_mode = #tpu.pipeline_mode<synchronous>, transform_indices = @transform_1, window_bounds = array<i64: 8, 2048>}, {pipeline_mode = #tpu.pipeline_mode<synchronous>, transform_indices = @transform_2, window_bounds = array<i64: 9, 256>}, {pipeline_mode = #tpu.pipeline_mode<synchronous>, transform_indices = @transform_3, window_bounds = array<i64: 1, 256>}, {pipeline_mode = #tpu.pipeline_mode<synchronous>, transform_indices = @transform_4, window_bounds = array<i64: 256, 256>}, {pipeline_mode = #tpu.pipeline_mode<synchronous>, transform_indices = @transform_5, window_bounds = array<i64: 1, 256>}, {pipeline_mode = #tpu.pipeline_mode<synchronous>, transform_indices = @transform_6, window_bounds = array<i64: 256, 256>}, {pipeline_mode = #tpu.pipeline_mode<synchronous>, transform_indices = @transform_7, window_bounds = array<i64: 1, 256>}, {transform_indices = @transform_8, window_bounds = array<i64: 8, 256>}]} {
    %c0 = arith.constant 0 : index
    %c0_0 = arith.constant 0 : index
    %0 = vector.load %arg1[%c0, %c0_0] : memref<2048x9xf32, #tpu.memory_space<vmem>>, vector<2048x9xf32>
    %c0_1 = arith.constant 0 : index
    %c0_2 = arith.constant 0 : index
    %1 = vector.load %arg3[%c0_1, %c0_2] : memref<9x256xf32, #tpu.memory_space<vmem>>, vector<9x256xf32>
    %cst = arith.constant dense<0.000000e+00> : vector<2048x256xf32>
    %2 = tpu.matmul %0, %1, %cst {dimension_numbers = #tpu.dot_dimension_numbers<[1], [0], [0], [1], [0, 0, 1, 1], [], []>} : vector<2048x9xf32>, vector<9x256xf32>, vector<2048x256xf32> -> vector<2048x256xf32>
    %c0_3 = arith.constant 0 : index
    %c0_4 = arith.constant 0 : index
    %3 = vector.load %arg4[%c0_3, %c0_4] : memref<1x256xf32, #tpu.memory_space<vmem>>, vector<1x256xf32>
    %4 = vector.broadcast %3 : vector<1x256xf32> to vector<2048x256xf32>
    %5 = arith.addf %2, %4 : vector<2048x256xf32>
    %cst_5 = arith.constant 0.000000e+00 : f32
    %6 = vector.broadcast %cst_5 : f32 to vector<2048x256xf32>
    %7 = arith.maximumf %5, %6 : vector<2048x256xf32>
    %c0_6 = arith.constant 0 : index
    %c0_7 = arith.constant 0 : index
    %8 = vector.load %arg2[%c0_6, %c0_7] : memref<8x2048xf32, #tpu.memory_space<vmem>>, vector<8x2048xf32>
    %cst_8 = arith.constant dense<0.000000e+00> : vector<8x256xf32>
    %9 = tpu.matmul %8, %7, %cst_8 {dimension_numbers = #tpu.dot_dimension_numbers<[1], [0], [0], [1], [0, 0, 1, 1], [], []>} : vector<8x2048xf32>, vector<2048x256xf32>, vector<8x256xf32> -> vector<8x256xf32>
    %c0_9 = arith.constant 0 : index
    %c0_10 = arith.constant 0 : index
    %10 = vector.load %arg5[%c0_9, %c0_10] : memref<256x256xf32, #tpu.memory_space<vmem>>, vector<256x256xf32>
    %cst_11 = arith.constant dense<0.000000e+00> : vector<8x256xf32>
    %11 = tpu.matmul %9, %10, %cst_11 {dimension_numbers = #tpu.dot_dimension_numbers<[1], [0], [0], [1], [0, 0, 1, 1], [], []>} : vector<8x256xf32>, vector<256x256xf32>, vector<8x256xf32> -> vector<8x256xf32>
    %c0_12 = arith.constant 0 : index
    %c0_13 = arith.constant 0 : index
    %12 = vector.load %arg6[%c0_12, %c0_13] : memref<1x256xf32, #tpu.memory_space<vmem>>, vector<1x256xf32>
    %13 = vector.broadcast %12 : vector<1x256xf32> to vector<8x256xf32>
    %14 = arith.addf %11, %13 : vector<8x256xf32>
    %c0_14 = arith.constant 0 : index
    %c0_15 = arith.constant 0 : index
    %15 = vector.load %arg7[%c0_14, %c0_15] : memref<256x256xf32, #tpu.memory_space<vmem>>, vector<256x256xf32>
    %cst_16 = arith.constant dense<0.000000e+00> : vector<8x256xf32>
    %16 = tpu.matmul %14, %15, %cst_16 {dimension_numbers = #tpu.dot_dimension_numbers<[1], [0], [0], [1], [0, 0, 1, 1], [], []>} : vector<8x256xf32>, vector<256x256xf32>, vector<8x256xf32> -> vector<8x256xf32>
    %c0_17 = arith.constant 0 : index
    %c0_18 = arith.constant 0 : index
    %17 = vector.load %arg8[%c0_17, %c0_18] : memref<1x256xf32, #tpu.memory_space<vmem>>, vector<1x256xf32>
    %18 = vector.broadcast %17 : vector<1x256xf32> to vector<8x256xf32>
    %19 = arith.addf %16, %18 : vector<8x256xf32>
    %c0_19 = arith.constant 0 : index
    %c0_20 = arith.constant 0 : index
    %20 = vector.load %arg9[%c0_19, %c0_20] : memref<8x256xf32, #tpu.memory_space<vmem>>, vector<8x256xf32>
    tpu.vector_store %arg9[%c0_19, %c0_20], %19 {strides = array<i32>} : memref<8x256xf32, #tpu.memory_space<vmem>>, vector<8x256xf32>,
    return
  }
  func.func @transform_0(%arg0: i32) -> (i32, i32) {
    %c0_i32 = arith.constant 0 : i32
    %c0_i32_0 = arith.constant 0 : i32
    return %arg0, %c0_i32 : i32, i32
  }
  func.func @transform_1(%arg0: i32) -> (i32, i32) {
    %c0_i32 = arith.constant 0 : i32
    %c0_i32_0 = arith.constant 0 : i32
    %c0_i32_1 = arith.constant 0 : i32
    return %c0_i32, %c0_i32_0 : i32, i32
  }
  func.func @transform_2(%arg0: i32) -> (i32, i32) {
    %c0_i32 = arith.constant 0 : i32
    %c0_i32_0 = arith.constant 0 : i32
    %c0_i32_1 = arith.constant 0 : i32
    return %c0_i32, %c0_i32_0 : i32, i32
  }
  func.func @transform_3(%arg0: i32) -> (i32, i32) {
    %c0_i32 = arith.constant 0 : i32
    %c0_i32_0 = arith.constant 0 : i32
    %c0_i32_1 = arith.constant 0 : i32
    return %c0_i32, %c0_i32_0 : i32, i32
  }
  func.func @transform_4(%arg0: i32) -> (i32, i32) {
    %c0_i32 = arith.constant 0 : i32
    %c0_i32_0 = arith.constant 0 : i32
    %c0_i32_1 = arith.constant 0 : i32
    return %c0_i32, %c0_i32_0 : i32, i32
  }
  func.func @transform_5(%arg0: i32) -> (i32, i32) {
    %c0_i32 = arith.constant 0 : i32
    %c0_i32_0 = arith.constant 0 : i32
    %c0_i32_1 = arith.constant 0 : i32
    return %c0_i32, %c0_i32_0 : i32, i32
  }
  func.func @transform_6(%arg0: i32) -> (i32, i32) {
    %c0_i32 = arith.constant 0 : i32
    %c0_i32_0 = arith.constant 0 : i32
    %c0_i32_1 = arith.constant 0 : i32
    return %c0_i32, %c0_i32_0 : i32, i32
  }
  func.func @transform_7(%arg0: i32) -> (i32, i32) {
    %c0_i32 = arith.constant 0 : i32
    %c0_i32_0 = arith.constant 0 : i32
    %c0_i32_1 = arith.constant 0 : i32
    return %c0_i32, %c0_i32_0 : i32, i32
  }
  func.func @transform_8(%arg0: i32) -> (i32, i32) {
    %c0_i32 = arith.constant 0 : i32
    %c0_i32_0 = arith.constant 0 : i32
    return %arg0, %c0_i32 : i32, i32
  }
}

</mosaic_0001>

<bundles_post_ra>
// kernel: model_forward.1
= control target key start
LH: loop header
LB: loop body
LE: loop exit
PB: predicated region body
PF: predicated region fallthrough
CT: control target
= control target key end

     0   :  { %13 = vsyncpa [#allocation3], 0  ;;  %s9377_s0 = inlined_call_operand.vmem [shape: f32[4096,9], index: 0, kind: input, shape index: {}]   ;;  %s9378_s1 = inlined_call_operand.vmem [shape: f32[8,2048], index: 1, kind: input, shape index: {}]   ;;  %s9379_s2 = inlined_call_operand.vmem [shape: f32[9,256], index: 2, kind: input, shape index: {}]   ;;  %s9380_s3 = inlined_call_operand.vmem [shape: f32[1,256], index: 3, kind: input, shape index: {}]   ;;  %s9381_s4 = inlined_call_operand.vmem [shape: f32[256,256], index: 4, kind: input, shape index: {}]   ;;  %s9382_s5 = inlined_call_operand.vmem [shape: f32[1,256], index: 5, kind: input, shape index: {}]   ;;  %s9383_s6 = inlined_call_operand.vmem [shape: f32[256,256], index: 6, kind: input, shape index: {}]   ;;  %s9384_s7 = inlined_call_operand.vmem [shape: f32[1,256], index: 7, kind: input, shape index: {}]   ;;  %s9385_s8 = inlined_call_operand.hbm [shape: f32[16,256], index: 8, kind: output, shape index: {}]  }
   0x1   :  { %15 = vsyncpa [#allocation3 + $0x1], 0  ;;  %s5161_s27 = smov 0   ;;  %s5163_s28 = smov 0  }
   0x2   :  { %s5165_s29 = smov 0   ;;  %s5167_s30 = smov 0  }
   0x3 LB: > { %s5182_s9 = sadd.s32 4294967295, %s5114_s30   ;;  %s4464_s10 = sadd.s32 4294967294, %s5114_s30   ;;  %s5114_s30 = sphi %s5167_s30, %s9897_s30   ;;  %s5110_s29 = sphi %s5165_s29, %s9896_s29   ;;  %s5106_s28 = sphi %s5163_s28, %s9895_s28   ;;  %s5102_s27 = sphi %s5161_s27, %s9894_s27  }
   0x4   : > { %s5186_s11 = sadd.s32 1, %s5114_s30   ;;  %s201_s12 = sadd.s32 1, %s5110_s29 }
   0x5   : > { %s198_s13 = ssub.s32 %s5114_s30, %s5186_s11  ;;  %p211_p0 = scmp.ne.s32.totalorder %s5110_s29, %s5106_s28 }
   0x6   : > { %p199_p1 = scmp.eq.s32.totalorder %s198_s13, 0  ;;  %p212_p2 = scmp.eq.s32.totalorder %s5182_s9, 1 }
   0x7   : > { %p217_p3 = scmp.ne.s32.totalorder %s5106_s28, %s5102_s27  ;;  %p218_p4 = scmp.eq.s32.totalorder %s4464_s10, 1 }
   0x8   : > { %s5197_s14 = scalar_select %p199_p1, %s5110_s29, %s201_s12  }
   0x9   : > { %p5199_p5 = por %p212_p2, %p211_p0  ;;  %p5203_p6 = por %p218_p4, %p217_p3 }
   0xa   : > { %p4467_p7 = scmp.ge.s32.totalorder %s5114_s30, 1  ;;  %p266_p8 = scmp.lt.s32.totalorder %s5114_s30, 3 }
   0xc   : > { %p267_p9 = pnand %p4467_p7, %p266_p8 }
   0xe   : > { %270 = sbr.rel (%p267_p9) target bundleno = 2250 (0x8ca), region = 52 }
  0x13   : > { %v564_v0 = vld [vmem:[%s9379_s2 + $0x10] sm:$0x1]  ;;  %vm1341_vm0 = vcmask 1040384   ;;  %v562_v1 = vld [vmem:[%s9379_s2] sm:$0xff]  ;;  %s4469_s21 = sshll.u32 %s5182_s9, 8  ;;  %vm572_vm1 = vcmask 72704  }
  0x14   : > { %4471 = vmatpush.msk.msra.mxu0 %vm1341_vm0, %v564_v0  ;;  %p301_p10 = scmp.lt.s32.totalorder %s4469_s21, 511  ;;  %4991 = vmatpush.msk.msra.mxu2 %vm1341_vm0, %v564_v0  ;;  %v565_v39 = vld [vmem:[%s9379_s2 + $0x18] sm:$0x1]  ;;  %v563_v40 = vld [vmem:[%s9379_s2 + $0x8] sm:$0xff]  ;;  %s4990_s23 = sshll.u32 %s5182_s9, 4 }
  0x15   : > { %4993 = vmatpush.msk.msra.mxu3 %vm1341_vm0, %v565_v39  ;;  %4728 = vmatpush.msk.msra.mxu1 %vm1341_vm0, %v565_v39  ;;  %s4400_s10 = scalar_lea.hbm %s9385_s8, %s4990_s23 }
  0x16   : > { %1363 = vmatpush.msra.mxu0 %v562_v1  ;;  %s9899_s21 = smov (!%p301_p10, %s4469_s21), 511  ;;  %4992 = vmatpush.msra.mxu2 %v562_v1  ;;  %s4404_s13 = sshll.u32 %s4400_s10, 4  ;;  %s4405_s13 = int_to_ptr.hbm [resolvable:$true] %s4404_s13 }
  0x17   : > { %s4470_s22 = sshll.u32 %s9899_s21, 3  ;;  %4994 = vmatpush.msra.mxu3 %v563_v40  ;;  %2148 = vmatpush.msra.mxu1 %v563_v40  ;;  %s297_s21 = sand.u32 1, %s5106_s28  }
  0x18   : > { %s5221_s25 = scalar_lea.vmem %s9377_s0, %s4470_s22  ;;  %s4468_s22 = sshll.u32 %s297_s21, 4 }
  0x19   : > { %v5224_v2 = vld [vmem:[%s5221_s25] sm:$0xff]  ;;  %v5229_v3 = vld [vmem:[%s5221_s25 + $0x8] sm:$0xff]  ;;  %v5234_v4 = vld [vmem:[%s5221_s25 + $0x10] sm:$0xff]  ;;  %s299_s24 = scalar_lea.vmem [#allocation2], %s4468_s22  ;;  %s4389_s17 = scalar_lea.sflag [#allocation3], %s297_s21 }
  0x1a   : > { %4472 = vmatmul.msk.f32.vlgmr.msra.gmra.mxu0 %vm572_vm1, %v5224_v2  ;;  %v5239_v5 = vld [vmem:[%s5221_s25 + $0x18] sm:$0xff]  ;;  %v5244_v6 = vld [vmem:[%s5221_s25 + $0x540] sm:$0xff]  ;;  %v5254_v8 = vld [vmem:[%s5221_s25 + $0x548] sm:$0xff]  ;;  %4729 = vmatmul.msk.f32.vlgmr.msra.gmra.mxu1 %vm572_vm1, %v5224_v2  ;;  %s4402_s12 = sshll.u32 %s299_s24, 4  ;;  %s5066_s9 = sshra.s32 %s4405_s13, 4  ;;  %s4403_s12 = int_to_ptr.vmem [resolvable:$true] %s4402_s12  ;;  %s5067_s9 = int_to_ptr.hbm [resolvable:$true] %s5066_s9 }
  0x1b   : > { %4640 = vmatmul.msk.f32.vlgmr.msra.gmra.mxu2 %vm572_vm1, %v5244_v6  ;;  %v5249_v7 = vld [vmem:[%s5221_s25 + $0x20] sm:$0xff]  ;;  %v5259_v9 = vld [vmem:[%s5221_s25 + $0x28] sm:$0xff]  ;;  %v5264_v10 = vld [vmem:[%s5221_s25 + $0x550] sm:$0xff]  ;;  %s5068_s18 = scalar_lea.hbm %s5067_s9, 16  ;;  %s5072_s22 = scalar_lea.hbm %s9385_s8, 32 }
  0x1c   : > { %v5269_v11 = vld [vmem:[%s5221_s25 + $0x30] sm:$0xff]  ;;  %v5274_v12 = vld [vmem:[%s5221_s25 + $0x558] sm:$0xff]  ;;  %v5284_v14 = vld [vmem:[%s5221_s25 + $0x560] sm:$0xff]  ;;  %p5069_p11 = scmp.ne.s32.totalorder %s5067_s9, %s5068_s18  ;;  %p5073_p0 = scmp.lt.s32.totalorder %s5067_s9, %s9385_s8 }
  0x1d   : > { %v5279_v13 = vld [vmem:[%s5221_s25 + $0x38] sm:$0xff]  ;;  %v5289_v15 = vld [vmem:[%s5221_s25 + $0x40] sm:$0xff]  ;;  %v5294_v16 = vld [vmem:[%s5221_s25 + $0x568] sm:$0xff]  ;;  %p5074_p1 = scmp.lt.s32.totalorder %s5072_s22, %s5068_s18 }
  0x1e   : > { %v5299_v17 = vld [vmem:[%s5221_s25 + $0x48] sm:$0xff]  ;;  %v5304_v18 = vld [vmem:[%s5221_s25 + $0x570] sm:$0xff]  ;;  %v5314_v20 = vld [vmem:[%s5221_s25 + $0x578] sm:$0xff]  ;;  %p5070_p12 = pnand %p5069_p11, %p5199_p5 }
  0x1f   : > { %v5309_v19 = vld [vmem:[%s5221_s25 + $0x50] sm:$0xff]  ;;  %v5319_v21 = vld [vmem:[%s5221_s25 + $0x58] sm:$0xff]  ;;  %v5324_v22 = vld [vmem:[%s5221_s25 + $0x580] sm:$0xff]  ;;  %p5075_p2 = por %p5074_p1, %p5073_p0 }
  0x20   : > { %v5329_v23 = vld [vmem:[%s5221_s25 + $0x60] sm:$0xff]  ;;  %v5334_v24 = vld [vmem:[%s5221_s25 + $0x588] sm:$0xff]  ;;  %v5344_v26 = vld [vmem:[%s5221_s25 + $0x590] sm:$0xff]  ;;  %p5071_p13 = pneg %p5070_p12 }
  0x21   : > { %v5339_v25 = vld [vmem:[%s5221_s25 + $0x68] sm:$0xff]  ;;  %v5349_v27 = vld [vmem:[%s5221_s25 + $0x70] sm:$0xff]  ;;  %v5354_v28 = vld [vmem:[%s5221_s25 + $0x598] sm:$0xff] }
  0x22   : > { %4473 = vmatmul.msk.f32.gmra.mxu0 %vm572_vm1, %v5229_v3  ;;  %v5359_v29 = vld [vmem:[%s5221_s25 + $0x78] sm:$0xff]  ;;  %v5364_v30 = vld [vmem:[%s5221_s25 + $0x5a0] sm:$0xff]  ;;  %v5376_v33 = vld [vmem:[%s5221_s25 + $0x5a8] sm:$0xff]  ;;  %4730 = vmatmul.msk.f32.gmra.mxu1 %vm572_vm1, %v5229_v3  ;;  %p5076_p3 = pnand %p5075_p2, %p5071_p13 }
  0x23   : > { %4641 = vmatmul.msk.f32.gmra.mxu2 %vm572_vm1, %v5254_v8  ;;  %v5371_v32 = vld [vmem:[%s5221_s25 + $0x80] sm:$0xff]  ;;  %v5383_v35 = vld [vmem:[%s5221_s25 + $0x88] sm:$0xff]  ;;  %v5388_v36 = vld [vmem:[%s5221_s25 + $0x5b0] sm:$0xff] }
  0x24   : > { %v5395_v38 = vld [vmem:[%s5221_s25 + $0x90] sm:$0xff]  ;;  %v5408_v41 = vld [vmem:[%s5221_s25 + $0x5b8] sm:$0xff]  ;;  %v5424_v45 = vld [vmem:[%s5221_s25 + $0x5c0] sm:$0xff] }
  0x25   : > { %v473_v42 = vld [vmem:[%s5221_s25 + $0x538] sm:$0xff]  ;;  %v5435_v47 = vld [vmem:[%s5221_s25 + $0xa0] sm:$0xff]  ;;  %v5440_v48 = vld [vmem:[%s5221_s25 + $0x5c8] sm:$0xff] }
  0x26   : > { %4896 = vmatmul.msk.f32.vlgmr.msra.gmra.mxu3 %vm572_vm1, %v473_v42  ;;  %v5419_v44 = vld [vmem:[%s5221_s25 + $0x98] sm:$0xff]  ;;  %v5451_v50 = vld [vmem:[%s5221_s25 + $0xa8] sm:$0xff]  ;;  %v5456_v51 = vld [vmem:[%s5221_s25 + $0x5d0] sm:$0xff] }
  0x27   : > { %v5467_v53 = vld [vmem:[%s5221_s25 + $0xb0] sm:$0xff]  ;;  %v5472_v54 = vld [vmem:[%s5221_s25 + $0x5d8] sm:$0xff]  ;;  %v5488_v57 = vld [vmem:[%s5221_s25 + $0x5e0] sm:$0xff] }
  0x28   : > { %v5483_v56 = vld [vmem:[%s5221_s25 + $0xb8] sm:$0xff]  ;;  %v5499_v59 = vld [vmem:[%s5221_s25 + $0xc0] sm:$0xff]  ;;  %v5504_v60 = vld [vmem:[%s5221_s25 + $0x5e8] sm:$0xff] }
  0x29   : > { %v5515_v62 = vld [vmem:[%s5221_s25 + $0xc8] sm:$0xff]  ;;  %v5520_v63 = vld [vmem:[%s5221_s25 + $0x5f0] sm:$0xff]  ;;  %v5534_v2 = vld [vmem:[%s5221_s25 + $0x5f8] sm:$0xff] }
  0x2a   : > { %4474 = vmatmul.msk.f32.gmra.mxu0 %vm572_vm1, %v5234_v4  ;;  %4731 = vmatmul.msk.f32.gmra.mxu1 %vm572_vm1, %v5234_v4  ;;  %v5529_v1 = vld [vmem:[%s5221_s25 + $0xd0] sm:$0xff]  ;;  %v5543_v4 = vld [vmem:[%s5221_s25 + $0xd8] sm:$0xff]  ;;  %v5622_v42 = vld [vmem:[%s5221_s25 + $0x620] sm:$0xff] }
  0x2b   : > { %4642 = vmatmul.msk.f32.gmra.mxu2 %vm572_vm1, %v5264_v10 }
  0x2e   : > { %4897 = vmatmul.msk.f32.gmra.mxu3 %vm572_vm1, %v5244_v6  ;;  %v5550_v6 = vld [vmem:[%s5221_s25 + $0x600] sm:$0xff] }
  0x32   : > { %4475 = vmatmul.msk.f32.gmra.mxu0 %vm572_vm1, %v5239_v5  ;;  %4732 = vmatmul.msk.f32.gmra.mxu1 %vm572_vm1, %v5239_v5 }
  0x33   : > { %4643 = vmatmul.msk.f32.gmra.mxu2 %vm572_vm1, %v5274_v12 }
  0x36   : > { %4898 = vmatmul.msk.f32.gmra.mxu3 %vm572_vm1, %v5254_v8  ;;  %v5559_v8 = vld [vmem:[%s5221_s25 + $0xe0] sm:$0xff] }
  0x3a   : > { %4476 = vmatmul.msk.f32.gmra.mxu0 %vm572_vm1, %v5249_v7  ;;  %4733 = vmatmul.msk.f32.gmra.mxu1 %vm572_vm1, %v5249_v7 }
  0x3b   : > { %4644 = vmatmul.msk.f32.gmra.mxu2 %vm572_vm1, %v5284_v14 }
  0x3e   : > { %4899 = vmatmul.msk.f32.gmra.mxu3 %vm572_vm1, %v5264_v10  ;;  %v5566_v10 = vld [vmem:[%s5221_s25 + $0x608] sm:$0xff] }
  0x42   : > { %4477 = vmatmul.msk.f32.gmra.mxu0 %vm572_vm1, %v5259_v9  ;;  %4734 = vmatmul.msk.f32.gmra.mxu1 %vm572_vm1, %v5259_v9 }
  0x43   : > { %4645 = vmatmul.msk.f32.gmra.mxu2 %vm572_vm1, %v5294_v16 }
  0x46   : > { %4900 = vmatmul.msk.f32.gmra.mxu3 %vm572_vm1, %v5274_v12  ;;  %v5575_v12 = vld [vmem:[%s5221_s25 + $0xe8] sm:$0xff] }
  0x4a   : > { %4478 = vmatmul.msk.f32.gmra.mxu0 %vm572_vm1, %v5269_v11  ;;  %4735 = vmatmul.msk.f32.gmra.mxu1 %vm572_vm1, %v5269_v11 }
  0x4b   : > { %4646 = vmatmul.msk.f32.gmra.mxu2 %vm572_vm1, %v5304_v18 }
  0x4e   : > { %4901 = vmatmul.msk.f32.gmra.mxu3 %vm572_vm1, %v5284_v14  ;;  %v5582_v14 = vld [vmem:[%s5221_s25 + $0x610] sm:$0xff] }
  0x52   : > { %4479 = vmatmul.msk.f32.gmra.mxu0 %vm572_vm1, %v5279_v13  ;;  %4736 = vmatmul.msk.f32.gmra.mxu1 %vm572_vm1, %v5279_v13 }
  0x53   : > { %4647 = vmatmul.msk.f32.gmra.mxu2 %vm572_vm1, %v5314_v20 }
  0x56   : > { %4902 = vmatmul.msk.f32.gmra.mxu3 %vm572_vm1, %v5294_v16  ;;  %v5591_v16 = vld [vmem:[%s5221_s25 + $0xf0] sm:$0xff] }
  0x5a   : > { %4480 = vmatmul.msk.f32.gmra.mxu0 %vm572_vm1, %v5289_v15  ;;  %4737 = vmatmul.msk.f32.gmra.mxu1 %vm572_vm1, %v5289_v15 }
  0x5b   : > { %4648 = vmatmul.msk.f32.gmra.mxu2 %vm572_vm1, %v5324_v22 }
  0x5e   : > { %4903 = vmatmul.msk.f32.gmra.mxu3 %vm572_vm1, %v5304_v18  ;;  %v5598_v18 = vld [vmem:[%s5221_s25 + $0x618] sm:$0xff] }
  0x62   : > { %4481 = vmatmul.msk.f32.gmra.mxu0 %vm572_vm1, %v5299_v17  ;;  %4738 = vmatmul.msk.f32.gmra.mxu1 %vm572_vm1, %v5299_v17 }
  0x63   : > { %4649 = vmatmul.msk.f32.gmra.mxu2 %vm572_vm1, %v5334_v24 }
  0x66   : > { %4904 = vmatmul.msk.f32.gmra.mxu3 %vm572_vm1, %v5314_v20 }
  0x6a   : > { %4482 = vmatmul.msk.f32.gmra.mxu0 %vm572_vm1, %v5309_v19  ;;  %4739 = vmatmul.msk.f32.gmra.mxu1 %vm572_vm1, %v5309_v19  ;;  %v566_v19 = vld [vmem:[%s9380_s3] sm:$0x3] }
  0x6b   : > { %4650 = vmatmul.msk.f32.gmra.mxu2 %vm572_vm1, %v5344_v26  ;;  %v5609_v20 = vperm.slane %v566_v19, 0 }
  0x6e   : > { %4905 = vmatmul.msk.f32.gmra.mxu3 %vm572_vm1, %v5324_v22  ;;  %v5612_v22 = vld [vmem:[%s5221_s25 + $0xf8] sm:$0xff] }
  0x72   : > { %4483 = vmatmul.msk.f32.gmra.mxu0 %vm572_vm1, %v5319_v21  ;;  %4740 = vmatmul.msk.f32.gmra.mxu1 %vm572_vm1, %v5319_v21 }
  0x73   : > { %4651 = vmatmul.msk.f32.gmra.mxu2 %vm572_vm1, %v5354_v28 }
  0x76   : > { %4906 = vmatmul.msk.f32.gmra.mxu3 %vm572_vm1, %v5334_v24 }
  0x7a   : > { %4484 = vmatmul.msk.f32.gmra.mxu0 %vm572_vm1, %v5329_v23  ;;  %4741 = vmatmul.msk.f32.gmra.mxu1 %vm572_vm1, %v5329_v23 }
  0x7b   : > { %4652 = vmatmul.msk.f32.gmra.mxu2 %vm572_vm1, %v5364_v30 }
  0x7e   : > { %4907 = vmatmul.msk.f32.gmra.mxu3 %vm572_vm1, %v5344_v26 }
  0x82   : > { %4485 = vmatmul.msk.f32.gmra.mxu0 %vm572_vm1, %v5339_v25  ;;  %4742 = vmatmul.msk.f32.gmra.mxu1 %vm572_vm1, %v5339_v25 }
  0x83   : > { %4653 = vmatmul.msk.f32.gmra.mxu2 %vm572_vm1, %v5376_v33 }
  0x86   : > { %4908 = vmatmul.msk.f32.gmra.mxu3 %vm572_vm1, %v5354_v28 }
  0x8a   : > { %4486 = vmatmul.msk.f32.gmra.mxu0 %vm572_vm1, %v5349_v27  ;;  %4743 = vmatmul.msk.f32.gmra.mxu1 %vm572_vm1, %v5349_v27 }
  0x8b   : > { %4654 = vmatmul.msk.f32.gmra.mxu2 %vm572_vm1, %v5388_v36 }
  0x8e   : > { %4909 = vmatmul.msk.f32.gmra.mxu3 %vm572_vm1, %v5364_v30 }
  0x92   : > { %4487 = vmatmul.msk.f32.gmra.mxu0 %vm572_vm1, %v5359_v29  ;;  %4744 = vmatmul.msk.f32.gmra.mxu1 %vm572_vm1, %v5359_v29 }
  0x93   : > { %4655 = vmatmul.msk.f32.gmra.mxu2 %vm572_vm1, %v5408_v41 }
  0x96   : > { %4910 = vmatmul.msk.f32.gmra.mxu3 %vm572_vm1, %v5376_v33 }
  0x97   : > { %v5368_v31 = vpop.f32.mrf.mxu0 }
  0x9a   : > { %4488 = vmatmul.msk.f32.gmra.mxu0 %vm572_vm1, %v5371_v32  ;;  %4745 = vmatmul.msk.f32.gmra.mxu1 %vm572_vm1, %v5371_v32 }
  0x9b   : > { %4656 = vmatmul.msk.f32.gmra.mxu2 %vm572_vm1, %v5424_v45 }
  0x9e   : > { %v5547_v5 = vpop.f32.mrf.mxu2  ;;  %4911 = vmatmul.msk.f32.gmra.mxu3 %vm572_vm1, %v5388_v36 }
  0x9f   : > { %v5380_v34 = vpop.f32.mrf.mxu0  ;;  %9388 = vst [vmem:[#allocation5_spill] sm:$0xff] %v5547_v5 }
  0xa0   : > { %v1369_v36 = vadd.f32 %v5380_v34, %v5609_v20 }
  0xa2   : > { %4489 = vmatmul.msk.f32.gmra.mxu0 %vm572_vm1, %v5383_v35  ;;  %v2920_v34 = vmax.f32 %v1369_v36, 0.0  ;;  %4746 = vmatmul.msk.f32.gmra.mxu1 %vm572_vm1, %v5383_v35  ;;  %v5789_v36 = vld [vmem:[%s5221_s25 + $0x660] sm:$0xff] }
  0xa3   : > { %4657 = vmatmul.msk.f32.gmra.mxu2 %vm572_vm1, %v5440_v48 }
  0xa6   : > { %v5563_v9 = vpop.f32.mrf.mxu2  ;;  %4912 = vmatmul.msk.f32.gmra.mxu3 %vm572_vm1, %v5408_v41  ;;  %v5717_v41 = vld [vmem:[%s5221_s25 + $0x640] sm:$0xff] }
  0xa7   : > { %v5392_v37 = vpop.f32.mrf.mxu0  ;;  %9389 = vst [vmem:[#allocation6_spill] sm:$0xff] %v5563_v9 }
  0xaa   : > { %4490 = vmatmul.msk.f32.gmra.mxu0 %vm572_vm1, %v5395_v38  ;;  %4747 = vmatmul.msk.f32.gmra.mxu1 %vm572_vm1, %v5395_v38 }
  0xab   : > { %4658 = vmatmul.msk.f32.gmra.mxu2 %vm572_vm1, %v5456_v51 }
  0xae   : > { %v5579_v13 = vpop.f32.mrf.mxu2  ;;  %4913 = vmatmul.msk.f32.gmra.mxu3 %vm572_vm1, %v5424_v45  ;;  %v5746_v45 = vld [vmem:[%s5221_s25 + $0x128] sm:$0xff] }
  0xaf   : > { %v5416_v43 = vpop.f32.mrf.mxu0  ;;  %9390 = vst [vmem:[#allocation7_spill] sm:$0xff] %v5579_v13 }
  0xb2   : > { %4491 = vmatmul.msk.f32.gmra.mxu0 %vm572_vm1, %v5419_v44  ;;  %4748 = vmatmul.msk.f32.gmra.mxu1 %vm572_vm1, %v5419_v44 }
  0xb3   : > { %4659 = vmatmul.msk.f32.gmra.mxu2 %vm572_vm1, %v5472_v54 }
  0xb6   : > { %v5595_v17 = vpop.f32.mrf.mxu2  ;;  %4914 = vmatmul.msk.f32.gmra.mxu3 %vm572_vm1, %v5440_v48  ;;  %v5764_v48 = vld [vmem:[%s5221_s25 + $0x130] sm:$0xff] }
  0xb7   : > { %v5432_v46 = vpop.f32.mrf.mxu0  ;;  %9391 = vst [vmem:[#allocation8_spill] sm:$0xff] %v5595_v17  ;;  %v5946_v17 = vld [vmem:[%s5221_s25 + $0x6a0] sm:$0xff] }
  0xba   : > { %4492 = vmatmul.msk.f32.gmra.mxu0 %vm572_vm1, %v5435_v47  ;;  %4749 = vmatmul.msk.f32.gmra.mxu1 %vm572_vm1, %v5435_v47 }
  0xbb   : > { %4660 = vmatmul.msk.f32.gmra.mxu2 %vm572_vm1, %v5488_v57 }
  0xbe   : > { %v5619_v28 = vpop.f32.mrf.mxu2  ;;  %4915 = vmatmul.msk.f32.gmra.mxu3 %vm572_vm1, %v5456_v51  ;;  %v5782_v51 = vld [vmem:[%s5221_s25 + $0x138] sm:$0xff] }
  0xbf   : > { %v5448_v49 = vpop.f32.mrf.mxu0  ;;  %9392 = vst [vmem:[#allocation9_spill] sm:$0xff] %v5619_v28 }
  0xc0   : > { %v1381_v33 = vadd.f32 %v5448_v49, %v5609_v20  ;;  %v1375_v49 = vadd.f32 %v5416_v43, %v5609_v20 }
  0xc2   : > { %4493 = vmatmul.msk.f32.gmra.mxu0 %vm572_vm1, %v5451_v50  ;;  %v2924_v29 = vmax.f32 %v1375_v49, 0.0  ;;  %v5753_v49 = vld [vmem:[%s5221_s25 + $0x650] sm:$0xff]  ;;  %4750 = vmatmul.msk.f32.gmra.mxu1 %vm572_vm1, %v5451_v50 }
  0xc3   : > { %4661 = vmatmul.msk.f32.gmra.mxu2 %vm572_vm1, %v5504_v60 }
  0xc6   : > { %v5642_v30 = vpop.f32.mrf.mxu2  ;;  %4916 = vmatmul.msk.f32.gmra.mxu3 %vm572_vm1, %v5472_v54  ;;  %v5800_v54 = vld [vmem:[%s5221_s25 + $0x140] sm:$0xff] }
  0xc7   : > { %v5464_v52 = vpop.f32.mrf.mxu0 }
  0xca   : > { %4494 = vmatmul.msk.f32.gmra.mxu0 %vm572_vm1, %v5467_v53  ;;  %4751 = vmatmul.msk.f32.gmra.mxu1 %vm572_vm1, %v5467_v53 }
  0xcb   : > { %4662 = vmatmul.msk.f32.gmra.mxu2 %vm572_vm1, %v5520_v63 }
  0xce   : > { %4917 = vmatmul.msk.f32.gmra.mxu3 %vm572_vm1, %v5488_v57  ;;  %v5818_v57 = vld [vmem:[%s5221_s25 + $0x148] sm:$0xff] }
  0xcf   : > { %v5480_v55 = vpop.f32.mrf.mxu0 }
  0xd2   : > { %4495 = vmatmul.msk.f32.gmra.mxu0 %vm572_vm1, %v5483_v56  ;;  %4752 = vmatmul.msk.f32.gmra.mxu1 %vm572_vm1, %v5483_v56 }
  0xd3   : > { %4663 = vmatmul.msk.f32.gmra.mxu2 %vm572_vm1, %v5534_v2 }
  0xd6   : > { %4918 = vmatmul.msk.f32.gmra.mxu3 %vm572_vm1, %v5504_v60  ;;  %v5836_v60 = vld [vmem:[%s5221_s25 + $0x150] sm:$0xff] }
  0xd7   : > { %v5496_v58 = vpop.f32.mrf.mxu0 }
  0xda   : > { %4496 = vmatmul.msk.f32.gmra.mxu0 %vm572_vm1, %v5499_v59 }
  0xdb   : > { %4664 = vmatmul.msk.f32.gmra.mxu2 %vm572_vm1, %v5550_v6 }
  0xde   : > { %4919 = vmatmul.msk.f32.gmra.mxu3 %vm572_vm1, %v5520_v63  ;;  %v5852_v63 = vld [vmem:[%s5221_s25 + $0x158] sm:$0xff] }
  0xdf   : > { %v5512_v61 = vpop.f32.mrf.mxu0 }
  0xe2   : > { %4497 = vmatmul.msk.f32.gmra.mxu0 %vm572_vm1, %v5515_v62 }
  0xe3   : > { %4665 = vmatmul.msk.f32.gmra.mxu2 %vm572_vm1, %v5566_v10 }
  0xe7   : > { %v1395_v0 = vpop.f32.mrf.mxu0 }
  0xe8   : > { %v1396_v5 = vadd.f32 %v1395_v0, %v5609_v20  ;;  %v1390_v0 = vadd.f32 %v5496_v58, %v5609_v20  ;;  %v1384_v58 = vadd.f32 %v5464_v52, %v5609_v20  ;;  %v1378_v52 = vadd.f32 %v5432_v46, %v5609_v20 }
  0xe9   : > { %v1372_v46 = vadd.f32 %v5392_v37, %v5609_v20  ;;  %v1366_v37 = vadd.f32 %v5368_v31, %v5609_v20 }
  0xea   : > { %4498 = vmatmul.msk.f32.gmra.mxu0 %vm572_vm1, %v5529_v1 }
  0xeb   : > { %4666 = vmatmul.msk.f32.gmra.mxu2 %vm572_vm1, %v5582_v14 }
  0xef   : > { %v1398_v3 = vpop.f32.mrf.mxu0 }
  0xf2   : > { %4499 = vmatmul.msk.f32.gmra.mxu0 %vm572_vm1, %v5543_v4 }
  0xf3   : > { %4667 = vmatmul.msk.f32.gmra.mxu2 %vm572_vm1, %v5598_v18 }
  0xf7   : > { %v1401_v7 = vpop.f32.mrf.mxu0 }
  0xf8   : > { %v1402_v23 = vadd.f32 %v1401_v7, %v5609_v20 }
  0xfa   : > { %4500 = vmatmul.msk.f32.gmra.mxu0 %vm572_vm1, %v5559_v8  ;;  %v2942_v7 = vmax.f32 %v1402_v23, 0.0 }
  0xfb   : > { %4668 = vmatmul.msk.f32.gmra.mxu2 %vm572_vm1, %v5622_v42 }
  0xff   : > { %v1404_v11 = vpop.f32.mrf.mxu0 }
 0x100   : > { %v1405_v39 = vadd.f32 %v1404_v11, %v5609_v20  ;;  %v1399_v11 = vadd.f32 %v1398_v3, %v5609_v20  ;;  %v5645_v3 = vld [vmem:[%s5221_s25 + $0x628] sm:$0xff] }
 0x102   : > { %4501 = vmatmul.msk.f32.gmra.mxu0 %vm572_vm1, %v5575_v12  ;;  %v2944_v19 = vmax.f32 %v1405_v39, 0.0  ;;  %v2940_v25 = vmax.f32 %v1399_v11, 0.0  ;;  %v2938_v39 = vmax.f32 %v1396_v5, 0.0  ;;  %v2934_v5 = vmax.f32 %v1390_v0, 0.0  ;;  %v5671_v11 = vld [vmem:[%s5221_s25 + $0x630] sm:$0xff] }
 0x103   : > { %4669 = vmatmul.msk.f32.gmra.mxu2 %vm572_vm1, %v5645_v3  ;;  %v2926_v0 = vmax.f32 %v1378_v52, 0.0  ;;  %v5735_v52 = vld [vmem:[%s5221_s25 + $0x648] sm:$0xff] }
 0x107   : > { %v1407_v15 = vpop.f32.mrf.mxu0 }
 0x108   : > { %v1408_v24 = vadd.f32 %v1407_v15, %v5609_v20 }
 0x10a   : > { %4502 = vmatmul.msk.f32.gmra.mxu0 %vm572_vm1, %v5591_v16  ;;  %v2946_v15 = vmax.f32 %v1408_v24, 0.0  ;;  %v1393_v24 = vadd.f32 %v5512_v61, %v5609_v20  ;;  %v1387_v61 = vadd.f32 %v5480_v55, %v5609_v20  ;;  %v5668_v55 = vpop.f32.mrf.mxu2 }
 0x10b   : > { %4670 = vmatmul.msk.f32.gmra.mxu2 %vm572_vm1, %v5671_v11 }
 0x10c   : > { %v2932_v27 = vmax.f32 %v1387_v61, 0.0  ;;  %v2922_v61 = vmax.f32 %v1372_v46, 0.0  ;;  %v5771_v46 = vld [vmem:[%s5221_s25 + $0x658] sm:$0xff] }
 0x10f   : > { %v1410_v21 = vpop.f32.mrf.mxu0 }
 0x110   : > { %v1411_v26 = vadd.f32 %v1410_v21, %v5609_v20 }
 0x112   : > { %4503 = vmatmul.msk.f32.gmra.mxu0 %vm572_vm1, %v5612_v22  ;;  %v2948_v40 = vmax.f32 %v1411_v26, 0.0  ;;  %v5635_v26 = vld [vmem:[%s5221_s25 + $0x100] sm:$0xff]  ;;  %v5694_v43 = vpop.f32.mrf.mxu2 }
 0x114   : > { %3446 = vmatpush.msrb.mxu2 %v2948_v40  ;;  %v2936_v40 = vmax.f32 %v1393_v24, 0.0 }
 0x116   : > { %3447 = vmatpush.msrb.mxu2 %v2946_v15  ;;  %v5660_v15 = vld [vmem:[%s5221_s25 + $0x108] sm:$0xff] }
 0x117   : > { %v5632_v21 = vpop.f32.mrf.mxu0 }
 0x118   : > { %3448 = vmatpush.msrb.mxu2 %v2944_v19  ;;  %v2930_v19 = vmax.f32 %v1384_v58, 0.0  ;;  %v5710_v58 = vld [vmem:[%s5221_s25 + $0x118] sm:$0xff] }
 0x11a   : > { %4504 = vmatmul.msk.f32.gmra.mxu0 %vm572_vm1, %v5635_v26  ;;  %3449 = vmatpush.msrb.mxu2 %v2942_v7  ;;  %v2928_v7 = vmax.f32 %v1381_v33, 0.0  ;;  %v5714_v31 = vpop.f32.mrf.mxu2  ;;  %v5728_v33 = vld [vmem:[%s5221_s25 + $0x120] sm:$0xff] }
 0x11b   : > { %9393 = vst [vmem:[#allocation10_spill] sm:$0xff] %v5714_v31  ;;  %v5843_v31 = vld [vmem:[%s5221_s25 + $0x678] sm:$0xff] }
 0x11c   : > { %3450 = vmatpush.msrb.mxu2 %v2940_v25  ;;  %v5686_v25 = vld [vmem:[%s5221_s25 + $0x110] sm:$0xff] }
 0x11e   : > { %3451 = vmatpush.msrb.mxu2 %v2938_v39  ;;  %v5697_v39 = vld [vmem:[%s5221_s25 + $0x638] sm:$0xff] }
 0x11f   : > { %v5657_v23 = vpop.f32.mrf.mxu0  ;;  %4671 = vmatmul.msk.f32.gmra.mxu2 %vm572_vm1, %v5697_v39 }
 0x120   : > { %3452 = vmatpush.msrb.mxu2 %v2936_v40 }
 0x122   : > { %4505 = vmatmul.msk.f32.gmra.mxu0 %vm572_vm1, %v5660_v15  ;;  %3453 = vmatpush.msrb.mxu2 %v2934_v5  ;;  %v2918_v5 = vmax.f32 %v1366_v37, 0.0  ;;  %v5807_v37 = vld [vmem:[%s5221_s25 + $0x668] sm:$0xff] }
 0x124   : > { %3454 = vmatpush.msrb.mxu2 %v2932_v27  ;;  %v5732_v27 = vpop.f32.mrf.mxu2 }
 0x125   : > { %9394 = vst [vmem:[#allocation11_spill] sm:$0xff] %v5732_v27  ;;  %v5845_v27 = vpop.f32.mrf.mxu3  ;;  %4920 = vmatmul.msk.f32.gmra.mxu3 %vm572_vm1, %v5534_v2 }
 0x126   : > { %3455 = vmatpush.msrb.mxu2 %v2930_v19  ;;  %9401 = vst [vmem:[#allocation18_spill] sm:$0xff] %v5845_v27  ;;  %v5863_v27 = vld [vmem:[%s5221_s25 + $0x680] sm:$0xff] }
 0x127   : > { %v5683_v24 = vpop.f32.mrf.mxu0  ;;  %4672 = vmatmul.msk.f32.gmra.mxu2 %vm572_vm1, %v5717_v41 }
 0x128   : > { %3456 = vmatpush.msrb.mxu2 %v2928_v7 }
 0x12a   : > { %4506 = vmatmul.msk.f32.gmra.mxu0 %vm572_vm1, %v5686_v25  ;;  %3457 = vmatpush.msrb.mxu2 %v2926_v0 }
 0x12c   : > { %3458 = vmatpush.msrb.mxu2 %v2924_v29  ;;  %v5750_v19 = vpop.f32.mrf.mxu2 }
 0x12d   : > { %9395 = vst [vmem:[#allocation12_spill] sm:$0xff] %v5750_v19  ;;  %v5854_v19 = vpop.f32.mrf.mxu1  ;;  %4753 = vmatmul.msk.f32.gmra.mxu1 %vm572_vm1, %v5499_v59 }
 0x12e   : > { %3459 = vmatpush.msrb.mxu2 %v2922_v61  ;;  %9402 = vst [vmem:[#allocation19_spill] sm:$0xff] %v5854_v19  ;;  %v5872_v19 = vld [vmem:[%s5221_s25 + $0x160] sm:$0xff] }
 0x12f   : > { %v5707_v40 = vpop.f32.mrf.mxu0  ;;  %4673 = vmatmul.msk.f32.gmra.mxu2 %vm572_vm1, %v5735_v52 }
 0x130   : > { %3460 = vmatpush.msrb.mxu2 %v2920_v34  ;;  %v5825_v34 = vld [vmem:[%s5221_s25 + $0x670] sm:$0xff] }
 0x132   : > { %4507 = vmatmul.msk.f32.gmra.mxu0 %vm572_vm1, %v5710_v58  ;;  %3461 = vmatpush.msrb.mxu2 %v2918_v5 }
 0x134   : > { %v5768_v7 = vpop.f32.mrf.mxu2 }
 0x135   : > { %9396 = vst [vmem:[#allocation13_spill] sm:$0xff] %v5768_v7  ;;  %v5874_v59 = vpop.f32.mrf.mxu1  ;;  %4754 = vmatmul.msk.f32.gmra.mxu1 %vm572_vm1, %v5515_v62 }
 0x136   : > { %9405 = vst [vmem:[#allocation22_spill] sm:$0xff] %v5874_v59  ;;  %v5892_v59 = vld [vmem:[%s5221_s25 + $0x168] sm:$0xff] }
 0x137   : > { %v5725_v32 = vpop.f32.mrf.mxu0  ;;  %4674 = vmatmul.msk.f32.gmra.mxu2 %vm572_vm1, %v5753_v49 }
 0x13a   : > { %4508 = vmatmul.msk.f32.gmra.mxu0 %vm572_vm1, %v5728_v33 }
 0x13c   : > { %v5786_v0 = vpop.f32.mrf.mxu2 }
 0x13d   : > { %9397 = vst [vmem:[#allocation14_spill] sm:$0xff] %v5786_v0  ;;  %v5865_v0 = vpop.f32.mrf.mxu3  ;;  %4921 = vmatmul.msk.f32.gmra.mxu3 %vm572_vm1, %v5550_v6  ;;  %v5894_v62 = vpop.f32.mrf.mxu1  ;;  %4755 = vmatmul.msk.f32.gmra.mxu1 %vm572_vm1, %v5529_v1 }
 0x13e   : > { %9404 = vst [vmem:[#allocation21_spill] sm:$0xff] %v5865_v0  ;;  %v5883_v0 = vld [vmem:[%s5221_s25 + $0x688] sm:$0xff] }
 0x13f   : > { %v5743_v35 = vpop.f32.mrf.mxu0  ;;  %4675 = vmatmul.msk.f32.gmra.mxu2 %vm572_vm1, %v5771_v46  ;;  %9408 = vst [vmem:[#allocation25_spill] sm:$0xff] %v5894_v62  ;;  %v5912_v62 = vld [vmem:[%s5221_s25 + $0x170] sm:$0xff] }
 0x142   : > { %4509 = vmatmul.msk.f32.gmra.mxu0 %vm572_vm1, %v5746_v45 }
 0x144   : > { %v5804_v29 = vpop.f32.mrf.mxu2 }
 0x145   : > { %9398 = vst [vmem:[#allocation15_spill] sm:$0xff] %v5804_v29  ;;  %v5914_v1 = vpop.f32.mrf.mxu1  ;;  %4756 = vmatmul.msk.f32.gmra.mxu1 %vm572_vm1, %v5543_v4 }
 0x146   : > { %9411 = vst [vmem:[#allocation28_spill] sm:$0xff] %v5914_v1  ;;  %v5932_v1 = vld [vmem:[%s5221_s25 + $0x178] sm:$0xff] }
 0x147   : > { %v5761_v38 = vpop.f32.mrf.mxu0  ;;  %4676 = vmatmul.msk.f32.gmra.mxu2 %vm572_vm1, %v5789_v36 }
 0x14a   : > { %4510 = vmatmul.msk.f32.gmra.mxu0 %vm572_vm1, %v5764_v48 }
 0x14c   : > { %v5822_v61 = vpop.f32.mrf.mxu2 }
 0x14d   : > { %9399 = vst [vmem:[#allocation16_spill] sm:$0xff] %v5822_v61  ;;  %v5885_v61 = vpop.f32.mrf.mxu3  ;;  %4922 = vmatmul.msk.f32.gmra.mxu3 %vm572_vm1, %v5566_v10  ;;  %v5934_v4 = vpop.f32.mrf.mxu1  ;;  %4757 = vmatmul.msk.f32.gmra.mxu1 %vm572_vm1, %v5559_v8 }
 0x14e   : > { %9407 = vst [vmem:[#allocation24_spill] sm:$0xff] %v5885_v61  ;;  %v5903_v61 = vld [vmem:[%s5221_s25 + $0x690] sm:$0xff] }
 0x14f   : > { %v5779_v44 = vpop.f32.mrf.mxu0  ;;  %4677 = vmatmul.msk.f32.gmra.mxu2 %vm572_vm1, %v5807_v37  ;;  %9414 = vst [vmem:[#allocation31_spill] sm:$0xff] %v5934_v4  ;;  %v5959_v4 = vld [vmem:[%s5221_s25 + $0x180] sm:$0xff] }
 0x152   : > { %4511 = vmatmul.msk.f32.gmra.mxu0 %vm572_vm1, %v5782_v51 }
 0x154   : > { %v5840_v5 = vpop.f32.mrf.mxu2 }
 0x155   : > { %9400 = vst [vmem:[#allocation17_spill] sm:$0xff] %v5840_v5 }
 0x157   : > { %v5797_v47 = vpop.f32.mrf.mxu0  ;;  %4678 = vmatmul.msk.f32.gmra.mxu2 %vm572_vm1, %v5825_v34 }
 0x15a   : > { %4512 = vmatmul.msk.f32.gmra.mxu0 %vm572_vm1, %v5800_v54 }
 0x15c   : > { %v5860_v7 = vpop.f32.mrf.mxu2 }
 0x15d   : > { %9403 = vst [vmem:[#allocation20_spill] sm:$0xff] %v5860_v7  ;;  %v5905_v7 = vpop.f32.mrf.mxu3  ;;  %4923 = vmatmul.msk.f32.gmra.mxu3 %vm572_vm1, %v5582_v14 }
 0x15e   : > { %9410 = vst [vmem:[#allocation27_spill] sm:$0xff] %v5905_v7  ;;  %v5923_v7 = vld [vmem:[%s5221_s25 + $0x698] sm:$0xff] }
 0x15f   : > { %v5815_v50 = vpop.f32.mrf.mxu0  ;;  %4679 = vmatmul.msk.f32.gmra.mxu2 %vm572_vm1, %v5843_v31 }
 0x162   : > { %4513 = vmatmul.msk.f32.gmra.mxu0 %vm572_vm1, %v5818_v57 }
 0x164   : > { %v5880_v29 = vpop.f32.mrf.mxu2 }
 0x165   : > { %9406 = vst [vmem:[#allocation23_spill] sm:$0xff] %v5880_v29 }
 0x167   : > { %v5833_v53 = vpop.f32.mrf.mxu0  ;;  %4680 = vmatmul.msk.f32.gmra.mxu2 %vm572_vm1, %v5863_v27 }
 0x16a   : > { %4514 = vmatmul.msk.f32.gmra.mxu0 %vm572_vm1, %v5836_v60 }
 0x16c   : > { %v5900_v5 = vpop.f32.mrf.mxu2 }
 0x16d   : > { %9409 = vst [vmem:[#allocation26_spill] sm:$0xff] %v5900_v5  ;;  %v5925_v5 = vpop.f32.mrf.mxu3  ;;  %4924 = vmatmul.msk.f32.gmra.mxu3 %vm572_vm1, %v5598_v18 }
 0x16e   : > { %9413 = vst [vmem:[#allocation30_spill] sm:$0xff] %v5925_v5 }
 0x16f   : > { %v1446_v56 = vpop.f32.mrf.mxu0  ;;  %4681 = vmatmul.msk.f32.gmra.mxu2 %vm572_vm1, %v5883_v0 }
 0x172   : > { %4515 = vmatmul.msk.f32.gmra.mxu0 %vm572_vm1, %v5852_v63 }
 0x174   : > { %v5920_v29 = vpop.f32.mrf.mxu2 }
 0x175   : > { %9412 = vst [vmem:[#allocation29_spill] sm:$0xff] %v5920_v29  ;;  %v5948_v28 = vpop.f32.mrf.mxu3  ;;  %4925 = vmatmul.msk.f32.gmra.mxu3 %vm572_vm1, %v5622_v42  ;;  %v1441_v42 = vadd.f32 %v5815_v50, %v5609_v20 }
 0x176   : > { %9416 = vst [vmem:[#allocation33_spill] sm:$0xff] %v5948_v28  ;;  %v5961_v28 = vpop.f32.mrf.mxu1  ;;  %4758 = vmatmul.msk.f32.gmra.mxu1 %vm572_vm1, %v5575_v12  ;;  %v1438_v12 = vadd.f32 %v5797_v47, %v5609_v20  ;;  %v1432_v47 = vadd.f32 %v5761_v38, %v5609_v20  ;;  %v1423_v38 = vadd.f32 %v5707_v40, %v5609_v20 }
 0x177   : > { %v1449_v2 = vpop.f32.mrf.mxu0  ;;  %4682 = vmatmul.msk.f32.gmra.mxu2 %vm572_vm1, %v5903_v61  ;;  %9417 = vst [vmem:[#allocation34_spill] sm:$0xff] %v5961_v28  ;;  %v1417_v40 = vadd.f32 %v5657_v23, %v5609_v20 }
 0x178   : > { %v1450_v8 = vadd.f32 %v1449_v2, %v5609_v20  ;;  %v5974_v2 = vld [vmem:[%s5221_s25 + $0x6a8] sm:$0xff] }
 0x17a   : > { %4516 = vmatmul.msk.f32.gmra.mxu0 %vm572_vm1, %v5872_v19 }
 0x17c   : > { %v5943_v18 = vpop.f32.mrf.mxu2 }
 0x17d   : > { %9415 = vst [vmem:[#allocation32_spill] sm:$0xff] %v5943_v18 }
 0x17f   : > { %v1452_v6 = vpop.f32.mrf.mxu0  ;;  %4683 = vmatmul.msk.f32.gmra.mxu2 %vm572_vm1, %v5923_v7 }
 0x180   : > { %v1453_v5 = vadd.f32 %v1452_v6, %v5609_v20  ;;  %v1447_v6 = vadd.f32 %v1446_v56, %v5609_v20 }
 0x182   : > { %4517 = vmatmul.msk.f32.gmra.mxu0 %vm572_vm1, %v5892_v59 }
 0x184   : > { %v5971_v56 = vpop.f32.mrf.mxu2 }
 0x185   : > { %9418 = vst [vmem:[#allocation35_spill] sm:$0xff] %v5971_v56 }
 0x187   : > { %v1455_v10 = vpop.f32.mrf.mxu0  ;;  %4684 = vmatmul.msk.f32.gmra.mxu2 %vm572_vm1, %v5946_v17 }
 0x188   : > { %v1456_v29 = vadd.f32 %v1455_v10, %v5609_v20 }
 0x18a   : > { %4518 = vmatmul.msk.f32.gmra.mxu0 %vm572_vm1, %v5912_v62  ;;  %v2978_v10 = vmax.f32 %v1456_v29, 0.0  ;;  %v2974_v29 = vmax.f32 %v1450_v8, 0.0  ;;  %v2968_v8 = vmax.f32 %v1441_v42, 0.0 }
 0x18c   : > { %v6001_v42 = vpop.f32.mrf.mxu2 }
 0x18d   : > { %9421 = vst [vmem:[#allocation38_spill] sm:$0xff] %v6001_v42  ;;  %v6315_v42 = vld [vmem:[%s5221_s25 + $0x720] sm:$0xff] }
 0x18f   : > { %v1458_v14 = vpop.f32.mrf.mxu0  ;;  %4685 = vmatmul.msk.f32.gmra.mxu2 %vm572_vm1, %v5974_v2 }
 0x190   : > { %v1459_v9 = vadd.f32 %v1458_v14, %v5609_v20 }
 0x192   : > { %4519 = vmatmul.msk.f32.gmra.mxu0 %vm572_vm1, %v5932_v1  ;;  %v2980_v13 = vmax.f32 %v1459_v9, 0.0  ;;  %v2976_v9 = vmax.f32 %v1453_v5, 0.0  ;;  %v2972_v5 = vmax.f32 %v1447_v6, 0.0 }
 0x194   : > { %3466 = vmatpush.msrb.mxu3 %v2980_v13  ;;  %v1444_v13 = vadd.f32 %v5833_v53, %v5609_v20  ;;  %v1435_v53 = vadd.f32 %v5779_v44, %v5609_v20 }
 0x196   : > { %3467 = vmatpush.msrb.mxu3 %v2978_v10  ;;  %v5976_v10 = vpop.f32.mrf.mxu3  ;;  %v2970_v50 = vmax.f32 %v1444_v13, 0.0  ;;  %v1429_v13 = vadd.f32 %v5743_v35, %v5609_v20  ;;  %v2964_v44 = vmax.f32 %v1435_v53, 0.0  ;;  %v2962_v35 = vmax.f32 %v1432_v47, 0.0 }
 0x197   : > { %v5956_v14 = vpop.f32.mrf.mxu0  ;;  %9419 = vst [vmem:[#allocation36_spill] sm:$0xff] %v5976_v10  ;;  %4926 = vmatmul.msk.f32.gmra.mxu3 %vm572_vm1, %v5645_v3  ;;  %v2966_v3 = vmax.f32 %v1438_v12, 0.0  ;;  %v2956_v47 = vmax.f32 %v1423_v38, 0.0  ;;  %v6047_v38 = vld [vmem:[%s5221_s25 + $0x198] sm:$0xff] }
 0x198   : > { %3468 = vmatpush.msrb.mxu3 %v2976_v9  ;;  %v5989_v9 = vld [vmem:[%s5221_s25 + $0x188] sm:$0xff]  ;;  %v2960_v12 = vmax.f32 %v1429_v13, 0.0  ;;  %v6031_v13 = vpop.f32.mrf.mxu2 }
 0x199   : > { %9424 = vst [vmem:[#allocation41_spill] sm:$0xff] %v6031_v13 }
 0x19a   : > { %4520 = vmatmul.msk.f32.gmra.mxu0 %vm572_vm1, %v5959_v4  ;;  %3469 = vmatpush.msrb.mxu3 %v2974_v29  ;;  %v5991_v29 = vpop.f32.mrf.mxu1 }
 0x19b   : > { %9420 = vst [vmem:[#allocation37_spill] sm:$0xff] %v5991_v29  ;;  %4759 = vmatmul.msk.f32.gmra.mxu1 %vm572_vm1, %v5591_v16  ;;  %v1426_v16 = vadd.f32 %v5725_v32, %v5609_v20  ;;  %v1420_v32 = vadd.f32 %v5683_v24, %v5609_v20  ;;  %v2952_v24 = vmax.f32 %v1417_v40, 0.0  ;;  %v6069_v40 = vld [vmem:[%s5221_s25 + $0x1a0] sm:$0xff] }
 0x19c   : > { %3470 = vmatpush.msrb.mxu3 %v2972_v5  ;;  %v6004_v5 = vld [vmem:[%s5221_s25 + $0x6b0] sm:$0xff] }
 0x19d   : > { %4686 = vmatmul.msk.f32.gmra.mxu2 %vm572_vm1, %v6004_v5  ;;  %v2954_v23 = vmax.f32 %v1420_v32, 0.0  ;;  %v6058_v32 = vld [vmem:[%s5221_s25 + $0x6c0] sm:$0xff] }
 0x19e   : > { %3471 = vmatpush.msrb.mxu3 %v2970_v50  ;;  %v6006_v50 = vpop.f32.mrf.mxu3 }
 0x19f   : > { %v5986_v6 = vpop.f32.mrf.mxu0  ;;  %9422 = vst [vmem:[#allocation39_spill] sm:$0xff] %v6006_v50  ;;  %4927 = vmatmul.msk.f32.gmra.mxu3 %vm572_vm1, %v5671_v11  ;;  %v2958_v11 = vmax.f32 %v1426_v16, 0.0 }
 0x1a0   : > { %3472 = vmatpush.msrb.mxu3 %v2968_v8  ;;  %v6019_v8 = vld [vmem:[%s5221_s25 + $0x190] sm:$0xff] }
 0x1a2   : > { %4521 = vmatmul.msk.f32.gmra.mxu0 %vm572_vm1, %v5989_v9  ;;  %3473 = vmatpush.msrb.mxu3 %v2966_v3  ;;  %v6021_v3 = vpop.f32.mrf.mxu1 }
 0x1a3   : > { %9423 = vst [vmem:[#allocation40_spill] sm:$0xff] %v6021_v3  ;;  %4760 = vmatmul.msk.f32.gmra.mxu1 %vm572_vm1, %v5612_v22  ;;  %v1414_v22 = vadd.f32 %v5632_v21, %v5609_v20  ;;  %v6146_v3 = vld [vmem:[%s5221_s25 + $0x6e0] sm:$0xff] }
 0x1a4   : > { %3474 = vmatpush.msrb.mxu3 %v2964_v44  ;;  %v6034_v44 = vld [vmem:[%s5221_s25 + $0x6b8] sm:$0xff] }
 0x1a5   : > { %4687 = vmatmul.msk.f32.gmra.mxu2 %vm572_vm1, %v6034_v44  ;;  %v2950_v21 = vmax.f32 %v1414_v22, 0.0 }
 0x1a6   : > { %3475 = vmatpush.msrb.mxu3 %v2962_v35  ;;  %v6036_v35 = vpop.f32.mrf.mxu3 }
 0x1a7   : > { %v6016_v53 = vpop.f32.mrf.mxu0  ;;  %9425 = vst [vmem:[#allocation42_spill] sm:$0xff] %v6036_v35  ;;  %4928 = vmatmul.msk.f32.gmra.mxu3 %vm572_vm1, %v5697_v39  ;;  %v6055_v39 = vpop.f32.mrf.mxu2  ;;  %v6124_v35 = vld [vmem:[%s5221_s25 + $0x6d8] sm:$0xff] }
 0x1a8   : > { %3476 = vmatpush.msrb.mxu3 %v2960_v12  ;;  %9427 = vst [vmem:[#allocation44_spill] sm:$0xff] %v6055_v39 }
 0x1aa   : > { %4522 = vmatmul.msk.f32.gmra.mxu0 %vm572_vm1, %v6019_v8  ;;  %3477 = vmatpush.msrb.mxu3 %v2958_v11  ;;  %v6049_v12 = vpop.f32.mrf.mxu1 }
 0x1ab   : > { %9426 = vst [vmem:[#allocation43_spill] sm:$0xff] %v6049_v12  ;;  %4761 = vmatmul.msk.f32.gmra.mxu1 %vm572_vm1, %v5635_v26 }
 0x1ac   : > { %3478 = vmatpush.msrb.mxu3 %v2956_v47 }
 0x1ad   : > { %4688 = vmatmul.msk.f32.gmra.mxu2 %vm572_vm1, %v6058_v32 }
 0x1ae   : > { %3479 = vmatpush.msrb.mxu3 %v2954_v23  ;;  %v6060_v11 = vpop.f32.mrf.mxu3  ;;  %v6080_v23 = vld [vmem:[%s5221_s25 + $0x6c8] sm:$0xff] }
 0x1af   : > { %v6044_v16 = vpop.f32.mrf.mxu0  ;;  %9428 = vst [vmem:[#allocation45_spill] sm:$0xff] %v6060_v11  ;;  %4929 = vmatmul.msk.f32.gmra.mxu3 %vm572_vm1, %v5717_v41  ;;  %v6077_v22 = vpop.f32.mrf.mxu2 }
 0x1b0   : > { %3480 = vmatpush.msrb.mxu3 %v2952_v24  ;;  %9430 = vst [vmem:[#allocation47_spill] sm:$0xff] %v6077_v22  ;;  %v6212_v22 = vld [vmem:[%s5221_s25 + $0x6f8] sm:$0xff] }
 0x1b2   : > { %4523 = vmatmul.msk.f32.gmra.mxu0 %vm572_vm1, %v6047_v38  ;;  %3481 = vmatpush.msrb.mxu3 %v2950_v21  ;;  %v6071_v47 = vpop.f32.mrf.mxu1 }
 0x1b3   : > { %9429 = vst [vmem:[#allocation46_spill] sm:$0xff] %v6071_v47  ;;  %4762 = vmatmul.msk.f32.gmra.mxu1 %vm572_vm1, %v5660_v15  ;;  %v6091_v15 = vld [vmem:[%s5221_s25 + $0x1a8] sm:$0xff] }
 0x1b5   : > { %4689 = vmatmul.msk.f32.gmra.mxu2 %vm572_vm1, %v6080_v23 }
 0x1b6   : > { %v6082_v24 = vpop.f32.mrf.mxu3 }
 0x1b7   : > { %v6066_v26 = vpop.f32.mrf.mxu0  ;;  %9431 = vst [vmem:[#allocation48_spill] sm:$0xff] %v6082_v24  ;;  %4930 = vmatmul.msk.f32.gmra.mxu3 %vm572_vm1, %v5735_v52  ;;  %v6099_v11 = vpop.f32.mrf.mxu2  ;;  %v6102_v24 = vld [vmem:[%s5221_s25 + $0x6d0] sm:$0xff] }
 0x1b8   : > { %9433 = vst [vmem:[#allocation50_spill] sm:$0xff] %v6099_v11 }
 0x1ba   : > { %4524 = vmatmul.msk.f32.gmra.mxu0 %vm572_vm1, %v6069_v40  ;;  %v6093_v21 = vpop.f32.mrf.mxu1 }
 0x1bb   : > { %9432 = vst [vmem:[#allocation49_spill] sm:$0xff] %v6093_v21  ;;  %4763 = vmatmul.msk.f32.gmra.mxu1 %vm572_vm1, %v5686_v25  ;;  %v6113_v25 = vld [vmem:[%s5221_s25 + $0x1b0] sm:$0xff]  ;;  %v6168_v21 = vld [vmem:[%s5221_s25 + $0x6e8] sm:$0xff] }
 0x1bd   : > { %4690 = vmatmul.msk.f32.gmra.mxu2 %vm572_vm1, %v6102_v24 }
 0x1be   : > { %v6104_v10 = vpop.f32.mrf.mxu3 }
 0x1bf   : > { %v6088_v41 = vpop.f32.mrf.mxu0  ;;  %9434 = vst [vmem:[#allocation51_spill] sm:$0xff] %v6104_v10  ;;  %4931 = vmatmul.msk.f32.gmra.mxu3 %vm572_vm1, %v5753_v49  ;;  %v6121_v10 = vpop.f32.mrf.mxu2 }
 0x1c0   : > { %9436 = vst [vmem:[#allocation53_spill] sm:$0xff] %v6121_v10 }
 0x1c2   : > { %4525 = vmatmul.msk.f32.gmra.mxu0 %vm572_vm1, %v6091_v15  ;;  %v6115_v50 = vpop.f32.mrf.mxu1 }
 0x1c3   : > { %9435 = vst [vmem:[#allocation52_spill] sm:$0xff] %v6115_v50  ;;  %4764 = vmatmul.msk.f32.gmra.mxu1 %vm572_vm1, %v5710_v58  ;;  %v6135_v58 = vld [vmem:[%s5221_s25 + $0x1b8] sm:$0xff] }
 0x1c5   : > { %4691 = vmatmul.msk.f32.gmra.mxu2 %vm572_vm1, %v6124_v35 }
 0x1c6   : > { %v6126_v28 = vpop.f32.mrf.mxu3 }
 0x1c7   : > { %v6110_v52 = vpop.f32.mrf.mxu0  ;;  %9437 = vst [vmem:[#allocation54_spill] sm:$0xff] %v6126_v28  ;;  %4932 = vmatmul.msk.f32.gmra.mxu3 %vm572_vm1, %v5771_v46  ;;  %v6143_v28 = vpop.f32.mrf.mxu2 }
 0x1c8   : > { %9439 = vst [vmem:[#allocation56_spill] sm:$0xff] %v6143_v28 }
 0x1ca   : > { %4526 = vmatmul.msk.f32.gmra.mxu0 %vm572_vm1, %v6113_v25  ;;  %v6137_v29 = vpop.f32.mrf.mxu1 }
 0x1cb   : > { %9438 = vst [vmem:[#allocation55_spill] sm:$0xff] %v6137_v29  ;;  %4765 = vmatmul.msk.f32.gmra.mxu1 %vm572_vm1, %v5728_v33  ;;  %v6157_v33 = vld [vmem:[%s5221_s25 + $0x1c0] sm:$0xff] }
 0x1cd   : > { %4692 = vmatmul.msk.f32.gmra.mxu2 %vm572_vm1, %v6146_v3 }
 0x1ce   : > { %v6148_v12 = vpop.f32.mrf.mxu3 }
 0x1cf   : > { %v6132_v49 = vpop.f32.mrf.mxu0  ;;  %9440 = vst [vmem:[#allocation57_spill] sm:$0xff] %v6148_v12  ;;  %4933 = vmatmul.msk.f32.gmra.mxu3 %vm572_vm1, %v5789_v36  ;;  %v6165_v12 = vpop.f32.mrf.mxu2 }
 0x1d0   : > { %9442 = vst [vmem:[#allocation59_spill] sm:$0xff] %v6165_v12 }
 0x1d2   : > { %4527 = vmatmul.msk.f32.gmra.mxu0 %vm572_vm1, %v6135_v58  ;;  %v6159_v47 = vpop.f32.mrf.mxu1 }
 0x1d3   : > { %9441 = vst [vmem:[#allocation58_spill] sm:$0xff] %v6159_v47  ;;  %4766 = vmatmul.msk.f32.gmra.mxu1 %vm572_vm1, %v5746_v45  ;;  %v6179_v45 = vld [vmem:[%s5221_s25 + $0x1c8] sm:$0xff]  ;;  %v6190_v47 = vld [vmem:[%s5221_s25 + $0x6f0] sm:$0xff] }
 0x1d5   : > { %4693 = vmatmul.msk.f32.gmra.mxu2 %vm572_vm1, %v6168_v21 }
 0x1d6   : > { %v6170_v50 = vpop.f32.mrf.mxu3 }
 0x1d7   : > { %v6154_v46 = vpop.f32.mrf.mxu0  ;;  %9443 = vst [vmem:[#allocation60_spill] sm:$0xff] %v6170_v50  ;;  %4934 = vmatmul.msk.f32.gmra.mxu3 %vm572_vm1, %v5807_v37  ;;  %v6187_v50 = vpop.f32.mrf.mxu2 }
 0x1d8   : > { %9445 = vst [vmem:[#allocation62_spill] sm:$0xff] %v6187_v50 }
 0x1da   : > { %4528 = vmatmul.msk.f32.gmra.mxu0 %vm572_vm1, %v6157_v33  ;;  %v6181_v29 = vpop.f32.mrf.mxu1 }
 0x1db   : > { %9444 = vst [vmem:[#allocation61_spill] sm:$0xff] %v6181_v29  ;;  %4767 = vmatmul.msk.f32.gmra.mxu1 %vm572_vm1, %v5764_v48  ;;  %v6201_v48 = vld [vmem:[%s5221_s25 + $0x1d0] sm:$0xff] }
 0x1dd   : > { %4694 = vmatmul.msk.f32.gmra.mxu2 %vm572_vm1, %v6190_v47 }
 0x1de   : > { %v6192_v39 = vpop.f32.mrf.mxu3 }
 0x1df   : > { %v6176_v36 = vpop.f32.mrf.mxu0  ;;  %9446 = vst [vmem:[#allocation63_spill] sm:$0xff] %v6192_v39  ;;  %4935 = vmatmul.msk.f32.gmra.mxu3 %vm572_vm1, %v5825_v34  ;;  %v6209_v39 = vpop.f32.mrf.mxu2 }
 0x1e0   : > { %9448 = vst [vmem:[#allocation65_spill] sm:$0xff] %v6209_v39 }
 0x1e2   : > { %4529 = vmatmul.msk.f32.gmra.mxu0 %vm572_vm1, %v6179_v45  ;;  %v6203_v29 = vpop.f32.mrf.mxu1 }
 0x1e3   : > { %9447 = vst [vmem:[#allocation64_spill] sm:$0xff] %v6203_v29  ;;  %4768 = vmatmul.msk.f32.gmra.mxu1 %vm572_vm1, %v5782_v51  ;;  %v6221_v29 = vld [vmem:[%s5221_s25 + $0x1d8] sm:$0xff] }
 0x1e5   : > { %4695 = vmatmul.msk.f32.gmra.mxu2 %vm572_vm1, %v6212_v22 }
 0x1e6   : > { %v6214_v11 = vpop.f32.mrf.mxu3 }
 0x1e7   : > { %v6198_v37 = vpop.f32.mrf.mxu0  ;;  %9449 = vst [vmem:[#allocation66_spill] sm:$0xff] %v6214_v11  ;;  %4936 = vmatmul.msk.f32.gmra.mxu3 %vm572_vm1, %v5843_v31  ;;  %v6229_v10 = vpop.f32.mrf.mxu2  ;;  %v6232_v11 = vld [vmem:[%s5221_s25 + $0x700] sm:$0xff] }
 0x1e8   : > { %9451 = vst [vmem:[#allocation68_spill] sm:$0xff] %v6229_v10 }
 0x1ea   : > { %4530 = vmatmul.msk.f32.gmra.mxu0 %vm572_vm1, %v6201_v48  ;;  %v6223_v51 = vpop.f32.mrf.mxu1 }
 0x1eb   : > { %9450 = vst [vmem:[#allocation67_spill] sm:$0xff] %v6223_v51  ;;  %4769 = vmatmul.msk.f32.gmra.mxu1 %vm572_vm1, %v5800_v54  ;;  %v6241_v51 = vld [vmem:[%s5221_s25 + $0x1e0] sm:$0xff] }
 0x1ed   : > { %4696 = vmatmul.msk.f32.gmra.mxu2 %vm572_vm1, %v6232_v11 }
 0x1ee   : > { %v6234_v28 = vpop.f32.mrf.mxu3 }
 0x1ef   : > { %v1494_v34 = vpop.f32.mrf.mxu0  ;;  %9452 = vst [vmem:[#allocation69_spill] sm:$0xff] %v6234_v28  ;;  %4937 = vmatmul.msk.f32.gmra.mxu3 %vm572_vm1, %v5863_v27  ;;  %v6249_v12 = vpop.f32.mrf.mxu2  ;;  %v6252_v28 = vld [vmem:[%s5221_s25 + $0x708] sm:$0xff] }
 0x1f0   : > { %9454 = vst [vmem:[#allocation71_spill] sm:$0xff] %v6249_v12 }
 0x1f2   : > { %4531 = vmatmul.msk.f32.gmra.mxu0 %vm572_vm1, %v6221_v29  ;;  %v6243_v54 = vpop.f32.mrf.mxu1 }
 0x1f3   : > { %9453 = vst [vmem:[#allocation70_spill] sm:$0xff] %v6243_v54  ;;  %4770 = vmatmul.msk.f32.gmra.mxu1 %vm572_vm1, %v5818_v57  ;;  %v6261_v54 = vld [vmem:[%s5221_s25 + $0x1e8] sm:$0xff] }
 0x1f5   : > { %4697 = vmatmul.msk.f32.gmra.mxu2 %vm572_vm1, %v6252_v28 }
 0x1f6   : > { %v6254_v50 = vpop.f32.mrf.mxu3 }
 0x1f7   : > { %v1497_v31 = vpop.f32.mrf.mxu0  ;;  %9455 = vst [vmem:[#allocation72_spill] sm:$0xff] %v6254_v50  ;;  %4938 = vmatmul.msk.f32.gmra.mxu3 %vm572_vm1, %v5883_v0  ;;  %v6269_v39 = vpop.f32.mrf.mxu2  ;;  %v6272_v50 = vld [vmem:[%s5221_s25 + $0x710] sm:$0xff] }
 0x1f8   : > { %9457 = vst [vmem:[#allocation74_spill] sm:$0xff] %v6269_v39 }
 0x1fa   : > { %4532 = vmatmul.msk.f32.gmra.mxu0 %vm572_vm1, %v6241_v51  ;;  %v6263_v57 = vpop.f32.mrf.mxu1 }
 0x1fb   : > { %9456 = vst [vmem:[#allocation73_spill] sm:$0xff] %v6263_v57  ;;  %4771 = vmatmul.msk.f32.gmra.mxu1 %vm572_vm1, %v5836_v60  ;;  %v6281_v57 = vld [vmem:[%s5221_s25 + $0x1f0] sm:$0xff] }
 0x1fd   : > { %4698 = vmatmul.msk.f32.gmra.mxu2 %vm572_vm1, %v6272_v50 }
 0x1fe   : > { %v6274_v10 = vpop.f32.mrf.mxu3 }
 0x1ff   : > { %v1500_v27 = vpop.f32.mrf.mxu0  ;;  %9458 = vst [vmem:[#allocation75_spill] sm:$0xff] %v6274_v10  ;;  %4939 = vmatmul.msk.f32.gmra.mxu3 %vm572_vm1, %v5903_v61  ;;  %v6289_v12 = vpop.f32.mrf.mxu2  ;;  %v6292_v10 = vld [vmem:[%s5221_s25 + $0x718] sm:$0xff] }
 0x200   : > { %9460 = vst [vmem:[#allocation77_spill] sm:$0xff] %v6289_v12 }
 0x202   : > { %4533 = vmatmul.msk.f32.gmra.mxu0 %vm572_vm1, %v6261_v54  ;;  %v6283_v60 = vpop.f32.mrf.mxu1 }
 0x203   : > { %9459 = vst [vmem:[#allocation76_spill] sm:$0xff] %v6283_v60  ;;  %4772 = vmatmul.msk.f32.gmra.mxu1 %vm572_vm1, %v5852_v63  ;;  %v6301_v60 = vld [vmem:[%s5221_s25 + $0x1f8] sm:$0xff] }
 0x205   : > { %4699 = vmatmul.msk.f32.gmra.mxu2 %vm572_vm1, %v6292_v10 }
 0x206   : > { %v6294_v39 = vpop.f32.mrf.mxu3 }
 0x207   : > { %v1503_v0 = vpop.f32.mrf.mxu0  ;;  %9461 = vst [vmem:[#allocation78_spill] sm:$0xff] %v6294_v39  ;;  %4940 = vmatmul.msk.f32.gmra.mxu3 %vm572_vm1, %v5923_v7  ;;  %v1501_v39 = vadd.f32 %v1500_v27, %v5609_v20  ;;  %v6312_v7 = vpop.f32.mrf.mxu2 }
 0x208   : > { %v1504_v12 = vadd.f32 %v1503_v0, %v5609_v20  ;;  %9463 = vst [vmem:[#allocation80_spill] sm:$0xff] %v6312_v7 }
 0x209   : > { %v3008_v27 = vmax.f32 %v1501_v39, 0.0 }
 0x20a   : > { %4534 = vmatmul.msk.f32.gmra.mxu0 %vm572_vm1, %v6281_v57  ;;  %v6303_v63 = vpop.f32.mrf.mxu1  ;;  %v3010_v0 = vmax.f32 %v1504_v12, 0.0 }
 0x20b   : > { %9462 = vst [vmem:[#allocation79_spill] sm:$0xff] %v6303_v63  ;;  %4773 = vmatmul.msk.f32.gmra.mxu1 %vm572_vm1, %v5872_v19  ;;  %v1498_v19 = vadd.f32 %v1497_v31, %v5609_v20  ;;  %v6328_v63 = vld [vmem:[%s5221_s25 + $0x200] sm:$0xff]  ;;  %v6343_v31 = vld [vmem:[%s5221_s25 + $0x728] sm:$0xff] }
 0x20d   : > { %4700 = vmatmul.msk.f32.gmra.mxu2 %vm572_vm1, %v6315_v42  ;;  %v3006_v12 = vmax.f32 %v1498_v19, 0.0 }
 0x20e   : > { %v6317_v13 = vpop.f32.mrf.mxu3 }
 0x20f   : > { %v1506_v61 = vpop.f32.mrf.mxu0  ;;  %9464 = vst [vmem:[#allocation81_spill] sm:$0xff] %v6317_v13  ;;  %4941 = vmatmul.msk.f32.gmra.mxu3 %vm572_vm1, %v5946_v17  ;;  %v1489_v17 = vadd.f32 %v6176_v36, %v5609_v20  ;;  %v1483_v36 = vadd.f32 %v6132_v49, %v5609_v20 }
 0x210   : > { %v1507_v18 = vadd.f32 %v1506_v61, %v5609_v20 }
 0x211   : > { %v3000_v19 = vmax.f32 %v1489_v17, 0.0  ;;  %v2996_v49 = vmax.f32 %v1483_v36, 0.0 }
 0x212   : > { %v3012_v56 = vmax.f32 %v1507_v18, 0.0  ;;  %4535 = vmatmul.msk.f32.gmra.mxu0 %vm572_vm1, %v6301_v60  ;;  %v1495_v18 = vadd.f32 %v1494_v34, %v5609_v20  ;;  %v6330_v13 = vpop.f32.mrf.mxu1  ;;  %v6340_v34 = vpop.f32.mrf.mxu2 }
 0x213   : > { %9465 = vst [vmem:[#allocation82_spill] sm:$0xff] %v6330_v13  ;;  %4774 = vmatmul.msk.f32.gmra.mxu1 %vm572_vm1, %v5892_v59  ;;  %v1486_v59 = vadd.f32 %v6154_v46, %v5609_v20  ;;  %v1480_v46 = vadd.f32 %v6110_v52, %v5609_v20 }
 0x214   : > { %3486 = vmatpush.msra.mxu2 %v3012_v56  ;;  %v1492_v56 = vadd.f32 %v6198_v37, %v5609_v20  ;;  %v3004_v39 = vmax.f32 %v1495_v18, 0.0  ;;  %9466 = vst [vmem:[#allocation83_spill] sm:$0xff] %v6340_v34 }
 0x215   : > { %4701 = vmatmul.msk.f32.gmra.mxu2 %vm572_vm1, %v6343_v31  ;;  %v2994_v52 = vmax.f32 %v1480_v46, 0.0 }
 0x216   : > { %3487 = vmatpush.msra.mxu2 %v3010_v0  ;;  %v6345_v0 = vpop.f32.mrf.mxu3  ;;  %v3002_v37 = vmax.f32 %v1492_v56, 0.0  ;;  %v2998_v56 = vmax.f32 %v1486_v59, 0.0 }
 0x217   : > { %v6325_v61 = vpop.f32.mrf.mxu0  ;;  %9467 = vst [vmem:[#allocation84_spill] sm:$0xff] %v6345_v0  ;;  %4942 = vmatmul.msk.f32.gmra.mxu3 %vm572_vm1, %v5974_v2  ;;  %v1477_v2 = vadd.f32 %v6088_v41, %v5609_v20  ;;  %v1471_v41 = vadd.f32 %v6044_v16, %v5609_v20 }
 0x218   : > { %3488 = vmatpush.msra.mxu2 %v3008_v27  ;;  %v6358_v27 = vld [vmem:[%s5221_s25 + $0x208] sm:$0xff] }
 0x219   : > { %v2992_v59 = vmax.f32 %v1477_v2, 0.0  ;;  %v2988_v16 = vmax.f32 %v1471_v41, 0.0  ;;  %v6416_v41 = vld [vmem:[%s5221_s25 + $0x218] sm:$0xff] }
 0x21a   : > { %4536 = vmatmul.msk.f32.gmra.mxu0 %vm572_vm1, %v6328_v63  ;;  %3489 = vmatpush.msra.mxu2 %v3006_v12  ;;  %v6360_v12 = vpop.f32.mrf.mxu1  ;;  %v6370_v17 = vpop.f32.mrf.mxu2 }
 0x21b   : > { %9468 = vst [vmem:[#allocation85_spill] sm:$0xff] %v6360_v12  ;;  %4775 = vmatmul.msk.f32.gmra.mxu1 %vm572_vm1, %v5912_v62  ;;  %v1474_v62 = vadd.f32 %v6066_v26, %v5609_v20  ;;  %v1468_v26 = vadd.f32 %v6016_v53, %v5609_v20 }
 0x21c   : > { %3490 = vmatpush.msra.mxu2 %v3004_v39  ;;  %9469 = vst [vmem:[#allocation86_spill] sm:$0xff] %v6370_v17  ;;  %v6373_v39 = vld [vmem:[%s5221_s25 + $0x730] sm:$0xff] }
 0x21d   : > { %4702 = vmatmul.msk.f32.gmra.mxu2 %vm572_vm1, %v6373_v39  ;;  %v2990_v46 = vmax.f32 %v1474_v62, 0.0  ;;  %v2986_v53 = vmax.f32 %v1468_v26, 0.0 }
 0x21e   : > { %3491 = vmatpush.msra.mxu2 %v3002_v37  ;;  %v6375_v37 = vpop.f32.mrf.mxu3 }
 0x21f   : > { %v6355_v18 = vpop.f32.mrf.mxu0  ;;  %9470 = vst [vmem:[#allocation87_spill] sm:$0xff] %v6375_v37  ;;  %4943 = vmatmul.msk.f32.gmra.mxu3 %vm572_vm1, %v6004_v5  ;;  %v1465_v5 = vadd.f32 %v5986_v6, %v5609_v20 }
 0x220   : > { %3492 = vmatpush.msra.mxu2 %v3000_v19  ;;  %v6388_v19 = vld [vmem:[%s5221_s25 + $0x210] sm:$0xff] }
 0x221   : > { %v2984_v6 = vmax.f32 %v1465_v5, 0.0  ;;  %v6438_v5 = vld [vmem:[%s5221_s25 + $0x220] sm:$0xff] }
 0x222   : > { %4537 = vmatmul.msk.f32.gmra.mxu0 %vm572_vm1, %v6358_v27  ;;  %3493 = vmatpush.msra.mxu2 %v2998_v56  ;;  %v6390_v56 = vpop.f32.mrf.mxu1  ;;  %v6400_v2 = vpop.f32.mrf.mxu2 }
 0x223   : > { %9471 = vst [vmem:[#allocation88_spill] sm:$0xff] %v6390_v56  ;;  %4776 = vmatmul.msk.f32.gmra.mxu1 %vm572_vm1, %v5932_v1  ;;  %v1462_v1 = vadd.f32 %v5956_v14, %v5609_v20  ;;  %v6515_v56 = vld [vmem:[%s5221_s25 + $0x760] sm:$0xff] }
 0x224   : > { %3494 = vmatpush.msra.mxu2 %v2996_v49  ;;  %9472 = vst [vmem:[#allocation89_spill] sm:$0xff] %v6400_v2  ;;  %v6403_v49 = vld [vmem:[%s5221_s25 + $0x738] sm:$0xff] }
 0x225   : > { %4703 = vmatmul.msk.f32.gmra.mxu2 %vm572_vm1, %v6403_v49 }
 0x226   : > { %3495 = vmatpush.msra.mxu2 %v2994_v52  ;;  %v6405_v52 = vpop.f32.mrf.mxu3 }
 0x227   : > { %v6385_v36 = vpop.f32.mrf.mxu0  ;;  %9473 = vst [vmem:[#allocation90_spill] sm:$0xff] %v6405_v52  ;;  %4944 = vmatmul.msk.f32.gmra.mxu3 %vm572_vm1, %v6034_v44  ;;  %v6427_v44 = vld [vmem:[%s5221_s25 + $0x740] sm:$0xff]  ;;  %v6493_v52 = vld [vmem:[%s5221_s25 + $0x758] sm:$0xff] }
 0x228   : > { %3496 = vmatpush.msra.mxu2 %v2992_v59 }
 0x22a   : > { %4538 = vmatmul.msk.f32.gmra.mxu0 %vm572_vm1, %v6388_v19  ;;  %3497 = vmatpush.msra.mxu2 %v2990_v46  ;;  %v6418_v59 = vpop.f32.mrf.mxu1  ;;  %v2982_v46 = vmax.f32 %v1462_v1, 0.0  ;;  %v6424_v14 = vpop.f32.mrf.mxu2 }
 0x22b   : > { %9474 = vst [vmem:[#allocation91_spill] sm:$0xff] %v6418_v59  ;;  %4777 = vmatmul.msk.f32.gmra.mxu1 %vm572_vm1, %v5959_v4 }
 0x22c   : > { %3498 = vmatpush.msra.mxu2 %v2988_v16  ;;  %9475 = vst [vmem:[#allocation92_spill] sm:$0xff] %v6424_v14 }
 0x22d   : > { %4704 = vmatmul.msk.f32.gmra.mxu2 %vm572_vm1, %v6427_v44 }
 0x22e   : > { %3499 = vmatpush.msra.mxu2 %v2986_v53  ;;  %v6429_v26 = vpop.f32.mrf.mxu3  ;;  %v6449_v53 = vld [vmem:[%s5221_s25 + $0x748] sm:$0xff] }
 0x22f   : > { %v6413_v62 = vpop.f32.mrf.mxu0  ;;  %9476 = vst [vmem:[#allocation93_spill] sm:$0xff] %v6429_v26  ;;  %4945 = vmatmul.msk.f32.gmra.mxu3 %vm572_vm1, %v6058_v32 }
 0x230   : > { %3500 = vmatpush.msra.mxu2 %v2984_v6 }
 0x232   : > { %4539 = vmatmul.msk.f32.gmra.mxu0 %vm572_vm1, %v6416_v41  ;;  %3501 = vmatpush.msra.mxu2 %v2982_v46  ;;  %v6440_v16 = vpop.f32.mrf.mxu1  ;;  %v6446_v1 = vpop.f32.mrf.mxu2 }
 0x233   : > { %9477 = vst [vmem:[#allocation94_spill] sm:$0xff] %v6440_v16  ;;  %4778 = vmatmul.msk.f32.gmra.mxu1 %vm572_vm1, %v5989_v9  ;;  %v6460_v9 = vld [vmem:[%s5221_s25 + $0x228] sm:$0xff] }
 0x234   : > { %9478 = vst [vmem:[#allocation95_spill] sm:$0xff] %v6446_v1  ;;  %v6581_v1 = vld [vmem:[%s5221_s25 + $0x778] sm:$0xff] }
 0x235   : > { %4705 = vmatmul.msk.f32.gmra.mxu2 %vm572_vm1, %v6449_v53 }
 0x236   : > { %v6451_v6 = vpop.f32.mrf.mxu3 }
 0x237   : > { %v6435_v4 = vpop.f32.mrf.mxu0  ;;  %9479 = vst [vmem:[#allocation96_spill] sm:$0xff] %v6451_v6  ;;  %4946 = vmatmul.msk.f32.gmra.mxu3 %vm572_vm1, %v6080_v23  ;;  %v6471_v6 = vld [vmem:[%s5221_s25 + $0x750] sm:$0xff] }
 0x23a   : > { %4540 = vmatmul.msk.f32.gmra.mxu0 %vm572_vm1, %v6438_v5  ;;  %v6462_v46 = vpop.f32.mrf.mxu1  ;;  %v6468_v26 = vpop.f32.mrf.mxu2 }
 0x23b   : > { %9480 = vst [vmem:[#allocation97_spill] sm:$0xff] %v6462_v46  ;;  %4779 = vmatmul.msk.f32.gmra.mxu1 %vm572_vm1, %v6019_v8  ;;  %v6482_v8 = vld [vmem:[%s5221_s25 + $0x230] sm:$0xff]  ;;  %v6537_v46 = vld [vmem:[%s5221_s25 + $0x768] sm:$0xff] }
 0x23c   : > { %9481 = vst [vmem:[#allocation98_spill] sm:$0xff] %v6468_v26 }
 0x23d   : > { %4706 = vmatmul.msk.f32.gmra.mxu2 %vm572_vm1, %v6471_v6 }
 0x23e   : > { %v6473_v0 = vpop.f32.mrf.mxu3 }
 0x23f   : > { %v6457_v32 = vpop.f32.mrf.mxu0  ;;  %9482 = vst [vmem:[#allocation99_spill] sm:$0xff] %v6473_v0  ;;  %4947 = vmatmul.msk.f32.gmra.mxu3 %vm572_vm1, %v6102_v24 }
 0x242   : > { %4541 = vmatmul.msk.f32.gmra.mxu0 %vm572_vm1, %v6460_v9  ;;  %v6484_v37 = vpop.f32.mrf.mxu1  ;;  %v6490_v0 = vpop.f32.mrf.mxu2 }
 0x243   : > { %9483 = vst [vmem:[#allocation100_spill] sm:$0xff] %v6484_v37  ;;  %4780 = vmatmul.msk.f32.gmra.mxu1 %vm572_vm1, %v6047_v38  ;;  %v6504_v38 = vld [vmem:[%s5221_s25 + $0x238] sm:$0xff] }
 0x244   : > { %9484 = vst [vmem:[#allocation101_spill] sm:$0xff] %v6490_v0 }
 0x245   : > { %4707 = vmatmul.msk.f32.gmra.mxu2 %vm572_vm1, %v6493_v52 }
 0x246   : > { %v6495_v13 = vpop.f32.mrf.mxu3 }
 0x247   : > { %v6479_v23 = vpop.f32.mrf.mxu0  ;;  %9485 = vst [vmem:[#allocation102_spill] sm:$0xff] %v6495_v13  ;;  %4948 = vmatmul.msk.f32.gmra.mxu3 %vm572_vm1, %v6124_v35 }
 0x24a   : > { %4542 = vmatmul.msk.f32.gmra.mxu0 %vm572_vm1, %v6482_v8  ;;  %v6506_v12 = vpop.f32.mrf.mxu1  ;;  %v6512_v13 = vpop.f32.mrf.mxu2 }
 0x24b   : > { %9486 = vst [vmem:[#allocation103_spill] sm:$0xff] %v6506_v12  ;;  %4781 = vmatmul.msk.f32.gmra.mxu1 %vm572_vm1, %v6069_v40  ;;  %v6526_v40 = vld [vmem:[%s5221_s25 + $0x240] sm:$0xff] }
 0x24c   : > { %9487 = vst [vmem:[#allocation104_spill] sm:$0xff] %v6512_v13 }
 0x24d   : > { %4708 = vmatmul.msk.f32.gmra.mxu2 %vm572_vm1, %v6515_v56 }
 0x24e   : > { %v6517_v59 = vpop.f32.mrf.mxu3 }
 0x24f   : > { %v6501_v24 = vpop.f32.mrf.mxu0  ;;  %9488 = vst [vmem:[#allocation105_spill] sm:$0xff] %v6517_v59  ;;  %4949 = vmatmul.msk.f32.gmra.mxu3 %vm572_vm1, %v6146_v3 }
 0x252   : > { %4543 = vmatmul.msk.f32.gmra.mxu0 %vm572_vm1, %v6504_v38  ;;  %v6528_v16 = vpop.f32.mrf.mxu1  ;;  %v6534_v59 = vpop.f32.mrf.mxu2 }
 0x253   : > { %9489 = vst [vmem:[#allocation106_spill] sm:$0xff] %v6528_v16  ;;  %4782 = vmatmul.msk.f32.gmra.mxu1 %vm572_vm1, %v6091_v15  ;;  %v6548_v15 = vld [vmem:[%s5221_s25 + $0x248] sm:$0xff]  ;;  %v6559_v16 = vld [vmem:[%s5221_s25 + $0x770] sm:$0xff] }
 0x254   : > { %9490 = vst [vmem:[#allocation107_spill] sm:$0xff] %v6534_v59 }
 0x255   : > { %4709 = vmatmul.msk.f32.gmra.mxu2 %vm572_vm1, %v6537_v46 }
 0x256   : > { %v6539_v37 = vpop.f32.mrf.mxu3 }
 0x257   : > { %v6523_v35 = vpop.f32.mrf.mxu0  ;;  %9491 = vst [vmem:[#allocation108_spill] sm:$0xff] %v6539_v37  ;;  %4950 = vmatmul.msk.f32.gmra.mxu3 %vm572_vm1, %v6168_v21 }
 0x25a   : > { %4544 = vmatmul.msk.f32.gmra.mxu0 %vm572_vm1, %v6526_v40  ;;  %v6550_v12 = vpop.f32.mrf.mxu1  ;;  %v6556_v37 = vpop.f32.mrf.mxu2 }
 0x25b   : > { %9492 = vst [vmem:[#allocation109_spill] sm:$0xff] %v6550_v12  ;;  %4783 = vmatmul.msk.f32.gmra.mxu1 %vm572_vm1, %v6113_v25  ;;  %v6570_v25 = vld [vmem:[%s5221_s25 + $0x250] sm:$0xff] }
 0x25c   : > { %9493 = vst [vmem:[#allocation110_spill] sm:$0xff] %v6556_v37 }
 0x25d   : > { %4710 = vmatmul.msk.f32.gmra.mxu2 %vm572_vm1, %v6559_v16 }
 0x25e   : > { %v6561_v14 = vpop.f32.mrf.mxu3 }
 0x25f   : > { %v6545_v3 = vpop.f32.mrf.mxu0  ;;  %9494 = vst [vmem:[#allocation111_spill] sm:$0xff] %v6561_v14  ;;  %4951 = vmatmul.msk.f32.gmra.mxu3 %vm572_vm1, %v6190_v47 }
 0x262   : > { %4545 = vmatmul.msk.f32.gmra.mxu0 %vm572_vm1, %v6548_v15  ;;  %v6572_v12 = vpop.f32.mrf.mxu1  ;;  %v6578_v14 = vpop.f32.mrf.mxu2 }
 0x263   : > { %9495 = vst [vmem:[#allocation112_spill] sm:$0xff] %v6572_v12  ;;  %4784 = vmatmul.msk.f32.gmra.mxu1 %vm572_vm1, %v6135_v58  ;;  %v6590_v12 = vld [vmem:[%s5221_s25 + $0x258] sm:$0xff] }
 0x264   : > { %9496 = vst [vmem:[#allocation113_spill] sm:$0xff] %v6578_v14 }
 0x265   : > { %4711 = vmatmul.msk.f32.gmra.mxu2 %vm572_vm1, %v6581_v1 }
 0x266   : > { %v6583_v26 = vpop.f32.mrf.mxu3 }
 0x267   : > { %v6567_v21 = vpop.f32.mrf.mxu0  ;;  %9497 = vst [vmem:[#allocation114_spill] sm:$0xff] %v6583_v26  ;;  %4952 = vmatmul.msk.f32.gmra.mxu3 %vm572_vm1, %v6212_v22  ;;  %v6601_v26 = vld [vmem:[%s5221_s25 + $0x780] sm:$0xff] }
 0x26a   : > { %4546 = vmatmul.msk.f32.gmra.mxu0 %vm572_vm1, %v6570_v25  ;;  %v6592_v58 = vpop.f32.mrf.mxu1  ;;  %v6598_v0 = vpop.f32.mrf.mxu2 }
 0x26b   : > { %9498 = vst [vmem:[#allocation115_spill] sm:$0xff] %v6592_v58  ;;  %4785 = vmatmul.msk.f32.gmra.mxu1 %vm572_vm1, %v6157_v33  ;;  %v6610_v58 = vld [vmem:[%s5221_s25 + $0x260] sm:$0xff] }
 0x26c   : > { %9499 = vst [vmem:[#allocation116_spill] sm:$0xff] %v6598_v0 }
 0x26d   : > { %4712 = vmatmul.msk.f32.gmra.mxu2 %vm572_vm1, %v6601_v26 }
 0x26e   : > { %v6603_v7 = vpop.f32.mrf.mxu3 }
 0x26f   : > { %v1542_v47 = vpop.f32.mrf.mxu0  ;;  %9500 = vst [vmem:[#allocation117_spill] sm:$0xff] %v6603_v7  ;;  %4953 = vmatmul.msk.f32.gmra.mxu3 %vm572_vm1, %v6232_v11  ;;  %v6621_v7 = vld [vmem:[%s5221_s25 + $0x788] sm:$0xff] }
 0x272   : > { %4547 = vmatmul.msk.f32.gmra.mxu0 %vm572_vm1, %v6590_v12  ;;  %v6612_v33 = vpop.f32.mrf.mxu1  ;;  %v6618_v13 = vpop.f32.mrf.mxu2 }
 0x273   : > { %9501 = vst [vmem:[#allocation118_spill] sm:$0xff] %v6612_v33  ;;  %4786 = vmatmul.msk.f32.gmra.mxu1 %vm572_vm1, %v6179_v45  ;;  %v6630_v33 = vld [vmem:[%s5221_s25 + $0x268] sm:$0xff] }
 0x274   : > { %9502 = vst [vmem:[#allocation119_spill] sm:$0xff] %v6618_v13 }
 0x275   : > { %4713 = vmatmul.msk.f32.gmra.mxu2 %vm572_vm1, %v6621_v7 }
 0x276   : > { %v6623_v34 = vpop.f32.mrf.mxu3 }
 0x277   : > { %v1545_v22 = vpop.f32.mrf.mxu0  ;;  %9503 = vst [vmem:[#allocation120_spill] sm:$0xff] %v6623_v34  ;;  %4954 = vmatmul.msk.f32.gmra.mxu3 %vm572_vm1, %v6252_v28  ;;  %v6641_v34 = vld [vmem:[%s5221_s25 + $0x790] sm:$0xff] }
 0x27a   : > { %4548 = vmatmul.msk.f32.gmra.mxu0 %vm572_vm1, %v6610_v58  ;;  %v6632_v45 = vpop.f32.mrf.mxu1  ;;  %v6638_v59 = vpop.f32.mrf.mxu2 }
 0x27b   : > { %9504 = vst [vmem:[#allocation121_spill] sm:$0xff] %v6632_v45  ;;  %4787 = vmatmul.msk.f32.gmra.mxu1 %vm572_vm1, %v6201_v48  ;;  %v6650_v45 = vld [vmem:[%s5221_s25 + $0x270] sm:$0xff] }
 0x27c   : > { %9505 = vst [vmem:[#allocation122_spill] sm:$0xff] %v6638_v59  ;;  %v6684_v59 = vld [vmem:[%s5221_s25 + $0x7a0] sm:$0xff] }
 0x27d   : > { %4714 = vmatmul.msk.f32.gmra.mxu2 %vm572_vm1, %v6641_v34 }
 0x27e   : > { %v6643_v17 = vpop.f32.mrf.mxu3 }
 0x27f   : > { %v1548_v11 = vpop.f32.mrf.mxu0  ;;  %9506 = vst [vmem:[#allocation123_spill] sm:$0xff] %v6643_v17  ;;  %4955 = vmatmul.msk.f32.gmra.mxu3 %vm572_vm1, %v6272_v50  ;;  %v6661_v17 = vld [vmem:[%s5221_s25 + $0x798] sm:$0xff] }
 0x282   : > { %4549 = vmatmul.msk.f32.gmra.mxu0 %vm572_vm1, %v6630_v33  ;;  %v6652_v48 = vpop.f32.mrf.mxu1  ;;  %v6658_v37 = vpop.f32.mrf.mxu2 }
 0x283   : > { %9507 = vst [vmem:[#allocation124_spill] sm:$0xff] %v6652_v48  ;;  %4788 = vmatmul.msk.f32.gmra.mxu1 %vm572_vm1, %v6221_v29  ;;  %v6670_v48 = vld [vmem:[%s5221_s25 + $0x278] sm:$0xff] }
 0x284   : > { %9508 = vst [vmem:[#allocation125_spill] sm:$0xff] %v6658_v37 }
 0x285   : > { %4715 = vmatmul.msk.f32.gmra.mxu2 %vm572_vm1, %v6661_v17 }
 0x286   : > { %v6663_v2 = vpop.f32.mrf.mxu3 }
 0x287   : > { %v1551_v28 = vpop.f32.mrf.mxu0  ;;  %9509 = vst [vmem:[#allocation126_spill] sm:$0xff] %v6663_v2  ;;  %4956 = vmatmul.msk.f32.gmra.mxu3 %vm572_vm1, %v6292_v10  ;;  %v1549_v2 = vadd.f32 %v1548_v11, %v5609_v20 }
 0x288   : > { %v1552_v14 = vadd.f32 %v1551_v28, %v5609_v20 }
 0x289   : > { %v3040_v11 = vmax.f32 %v1549_v2, 0.0 }
 0x28a   : > { %4550 = vmatmul.msk.f32.gmra.mxu0 %vm572_vm1, %v6650_v45  ;;  %v6672_v29 = vpop.f32.mrf.mxu1  ;;  %v6681_v10 = vpop.f32.mrf.mxu2  ;;  %v3042_v28 = vmax.f32 %v1552_v14, 0.0 }
 0x28b   : > { %9510 = vst [vmem:[#allocation127_spill] sm:$0xff] %v6672_v29  ;;  %4789 = vmatmul.msk.f32.gmra.mxu1 %vm572_vm1, %v6241_v51  ;;  %v1546_v51 = vadd.f32 %v1545_v22, %v5609_v20  ;;  %v6697_v29 = vld [vmem:[%s5221_s25 + $0x280] sm:$0xff]  ;;  %v6712_v22 = vld [vmem:[%s5221_s25 + $0x7a8] sm:$0xff] }
 0x28d   : > { %4716 = vmatmul.msk.f32.gmra.mxu2 %vm572_vm1, %v6684_v59  ;;  %v3038_v14 = vmax.f32 %v1546_v51, 0.0 }
 0x28e   : > { %v6686_v37 = vpop.f32.mrf.mxu3 }
 0x28f   : > { %v1554_v50 = vpop.f32.mrf.mxu0  ;;  %9511 = vst [vmem:[#allocation128_spill] sm:$0xff] %v6686_v37  ;;  %4957 = vmatmul.msk.f32.gmra.mxu3 %vm572_vm1, %v6315_v42  ;;  %v1537_v42 = vadd.f32 %v6545_v3, %v5609_v20  ;;  %v1531_v3 = vadd.f32 %v6501_v24, %v5609_v20 }
 0x290   : > { %v1555_v0 = vadd.f32 %v1554_v50, %v5609_v20 }
 0x291   : > { %v3032_v51 = vmax.f32 %v1537_v42, 0.0  ;;  %v3028_v24 = vmax.f32 %v1531_v3, 0.0 }
 0x292   : > { %v3044_v13 = vmax.f32 %v1555_v0, 0.0  ;;  %4551 = vmatmul.msk.f32.gmra.mxu0 %vm572_vm1, %v6670_v48  ;;  %v1543_v0 = vadd.f32 %v1542_v47, %v5609_v20  ;;  %v6699_v37 = vpop.f32.mrf.mxu1  ;;  %v6709_v47 = vpop.f32.mrf.mxu2 }
 0x293   : > { %9512 = vst [vmem:[#allocation129_spill] sm:$0xff] %v6699_v37  ;;  %4790 = vmatmul.msk.f32.gmra.mxu1 %vm572_vm1, %v6261_v54  ;;  %v1534_v54 = vadd.f32 %v6523_v35, %v5609_v20  ;;  %v1528_v35 = vadd.f32 %v6479_v23, %v5609_v20 }
 0x294   : > { %3506 = vmatpush.msra.mxu3 %v3044_v13  ;;  %v1540_v13 = vadd.f32 %v6567_v21, %v5609_v20  ;;  %v3036_v2 = vmax.f32 %v1543_v0, 0.0 }
 0x295   : > { %4717 = vmatmul.msk.f32.gmra.mxu2 %vm572_vm1, %v6712_v22  ;;  %v3026_v23 = vmax.f32 %v1528_v35, 0.0 }
 0x296   : > { %3507 = vmatpush.msra.mxu3 %v3042_v28  ;;  %v6714_v28 = vpop.f32.mrf.mxu3  ;;  %v3034_v21 = vmax.f32 %v1540_v13, 0.0  ;;  %v3030_v13 = vmax.f32 %v1534_v54, 0.0 }
 0x297   : > { %v6694_v50 = vpop.f32.mrf.mxu0  ;;  %9513 = vst [vmem:[#allocation130_spill] sm:$0xff] %v6714_v28  ;;  %4958 = vmatmul.msk.f32.gmra.mxu3 %vm572_vm1, %v6343_v31  ;;  %v1525_v31 = vadd.f32 %v6457_v32, %v5609_v20  ;;  %v1519_v32 = vadd.f32 %v6413_v62, %v5609_v20 }
 0x298   : > { %3508 = vmatpush.msra.mxu3 %v3040_v11  ;;  %v6727_v11 = vld [vmem:[%s5221_s25 + $0x288] sm:$0xff] }
 0x299   : > { %v3024_v54 = vmax.f32 %v1525_v31, 0.0  ;;  %v3020_v62 = vmax.f32 %v1519_v32, 0.0  ;;  %v6785_v32 = vld [vmem:[%s5221_s25 + $0x298] sm:$0xff] }
 0x29a   : > { %4552 = vmatmul.msk.f32.gmra.mxu0 %vm572_vm1, %v6697_v29  ;;  %3509 = vmatpush.msra.mxu3 %v3038_v14  ;;  %v6729_v14 = vpop.f32.mrf.mxu1  ;;  %v6739_v42 = vpop.f32.mrf.mxu2 }
 0x29b   : > { %9514 = vst [vmem:[#allocation131_spill] sm:$0xff] %v6729_v14  ;;  %4791 = vmatmul.msk.f32.gmra.mxu1 %vm572_vm1, %v6281_v57  ;;  %v1522_v57 = vadd.f32 %v6435_v4, %v5609_v20  ;;  %v1516_v4 = vadd.f32 %v6385_v36, %v5609_v20 }
 0x29c   : > { %3510 = vmatpush.msra.mxu3 %v3036_v2  ;;  %v6742_v2 = vld [vmem:[%s5221_s25 + $0x7b0] sm:$0xff] }
 0x29d   : > { %4718 = vmatmul.msk.f32.gmra.mxu2 %vm572_vm1, %v6742_v2  ;;  %v3022_v35 = vmax.f32 %v1522_v57, 0.0  ;;  %v3018_v36 = vmax.f32 %v1516_v4, 0.0 }
 0x29e   : > { %3511 = vmatpush.msra.mxu3 %v3034_v21  ;;  %v6744_v21 = vpop.f32.mrf.mxu3 }
 0x29f   : > { %v6724_v0 = vpop.f32.mrf.mxu0  ;;  %9515 = vst [vmem:[#allocation132_spill] sm:$0xff] %v6744_v21  ;;  %4959 = vmatmul.msk.f32.gmra.mxu3 %vm572_vm1, %v6373_v39  ;;  %v1513_v39 = vadd.f32 %v6355_v18, %v5609_v20 }
 0x2a0   : > { %3512 = vmatpush.msra.mxu3 %v3032_v51  ;;  %v6757_v51 = vld [vmem:[%s5221_s25 + $0x290] sm:$0xff] }
 0x2a1   : > { %v3016_v18 = vmax.f32 %v1513_v39, 0.0  ;;  %v6807_v39 = vld [vmem:[%s5221_s25 + $0x2a0] sm:$0xff] }
 0x2a2   : > { %4553 = vmatmul.msk.f32.gmra.mxu0 %vm572_vm1, %v6727_v11  ;;  %3513 = vmatpush.msra.mxu3 %v3030_v13  ;;  %v6759_v13 = vpop.f32.mrf.mxu1  ;;  %v6769_v31 = vpop.f32.mrf.mxu2 }
 0x2a3   : > { %9516 = vst [vmem:[#allocation133_spill] sm:$0xff] %v6759_v13  ;;  %4792 = vmatmul.msk.f32.gmra.mxu1 %vm572_vm1, %v6301_v60  ;;  %v1510_v60 = vadd.f32 %v6325_v61, %v5609_v20  ;;  %v6884_v13 = vld [vmem:[%s5221_s25 + $0x7e0] sm:$0xff] }
 0x2a4   : > { %3514 = vmatpush.msra.mxu3 %v3028_v24  ;;  %v6772_v24 = vld [vmem:[%s5221_s25 + $0x7b8] sm:$0xff] }
 0x2a5   : > { %4719 = vmatmul.msk.f32.gmra.mxu2 %vm572_vm1, %v6772_v24 }
 0x2a6   : > { %3515 = vmatpush.msra.mxu3 %v3026_v23  ;;  %v6774_v23 = vpop.f32.mrf.mxu3 }
 0x2a7   : > { %v6754_v3 = vpop.f32.mrf.mxu0  ;;  %9517 = vst [vmem:[#allocation134_spill] sm:$0xff] %v6774_v23  ;;  %4960 = vmatmul.msk.f32.gmra.mxu3 %vm572_vm1, %v6403_v49  ;;  %v6796_v49 = vld [vmem:[%s5221_s25 + $0x7c0] sm:$0xff]  ;;  %v6862_v23 = vld [vmem:[%s5221_s25 + $0x7d8] sm:$0xff] }
 0x2a8   : > { %3516 = vmatpush.msra.mxu3 %v3024_v54 }
 0x2aa   : > { %4554 = vmatmul.msk.f32.gmra.mxu0 %vm572_vm1, %v6757_v51  ;;  %3517 = vmatpush.msra.mxu3 %v3022_v35  ;;  %v6787_v54 = vpop.f32.mrf.mxu1  ;;  %v3014_v35 = vmax.f32 %v1510_v60, 0.0  ;;  %v6793_v61 = vpop.f32.mrf.mxu2 }
 0x2ab   : > { %9518 = vst [vmem:[#allocation135_spill] sm:$0xff] %v6787_v54  ;;  %4793 = vmatmul.msk.f32.gmra.mxu1 %vm572_vm1, %v6328_v63 }
 0x2ac   : > { %3518 = vmatpush.msra.mxu3 %v3020_v62  ;;  %9519 = vst [vmem:[#allocation136_spill] sm:$0xff] %v6793_v61 }
 0x2ad   : > { %4720 = vmatmul.msk.f32.gmra.mxu2 %vm572_vm1, %v6796_v49 }
 0x2ae   : > { %3519 = vmatpush.msra.mxu3 %v3018_v36  ;;  %v6798_v4 = vpop.f32.mrf.mxu3  ;;  %v6818_v36 = vld [vmem:[%s5221_s25 + $0x7c8] sm:$0xff] }
 0x2af   : > { %v6782_v57 = vpop.f32.mrf.mxu0  ;;  %9520 = vst [vmem:[#allocation137_spill] sm:$0xff] %v6798_v4  ;;  %4961 = vmatmul.msk.f32.gmra.mxu3 %vm572_vm1, %v6427_v44 }
 0x2b0   : > { %3520 = vmatpush.msra.mxu3 %v3016_v18 }
 0x2b2   : > { %4555 = vmatmul.msk.f32.gmra.mxu0 %vm572_vm1, %v6785_v32  ;;  %3521 = vmatpush.msra.mxu3 %v3014_v35  ;;  %v6809_v62 = vpop.f32.mrf.mxu1  ;;  %v6815_v60 = vpop.f32.mrf.mxu2 }
 0x2b3   : > { %9521 = vst [vmem:[#allocation138_spill] sm:$0xff] %v6809_v62  ;;  %4794 = vmatmul.msk.f32.gmra.mxu1 %vm572_vm1, %v6358_v27  ;;  %v6829_v27 = vld [vmem:[%s5221_s25 + $0x2a8] sm:$0xff] }
 0x2b4   : > { %9522 = vst [vmem:[#allocation139_spill] sm:$0xff] %v6815_v60 }
 0x2b5   : > { %4721 = vmatmul.msk.f32.gmra.mxu2 %vm572_vm1, %v6818_v36 }
 0x2b6   : > { %v6820_v18 = vpop.f32.mrf.mxu3 }
 0x2b7   : > { %v6804_v63 = vpop.f32.mrf.mxu0  ;;  %9523 = vst [vmem:[#allocation140_spill] sm:$0xff] %v6820_v18  ;;  %4962 = vmatmul.msk.f32.gmra.mxu3 %vm572_vm1, %v6449_v53  ;;  %v6840_v18 = vld [vmem:[%s5221_s25 + $0x7d0] sm:$0xff] }
 0x2ba   : > { %4556 = vmatmul.msk.f32.gmra.mxu0 %vm572_vm1, %v6807_v39  ;;  %v6831_v35 = vpop.f32.mrf.mxu1  ;;  %v6837_v4 = vpop.f32.mrf.mxu2 }
 0x2bb   : > { %9524 = vst [vmem:[#allocation141_spill] sm:$0xff] %v6831_v35  ;;  %4795 = vmatmul.msk.f32.gmra.mxu1 %vm572_vm1, %v6388_v19  ;;  %v6851_v19 = vld [vmem:[%s5221_s25 + $0x2b0] sm:$0xff]  ;;  %v6906_v35 = vld [vmem:[%s5221_s25 + $0x7e8] sm:$0xff] }
 0x2bc   : > { %9525 = vst [vmem:[#allocation142_spill] sm:$0xff] %v6837_v4 }
 0x2bd   : > { %4722 = vmatmul.msk.f32.gmra.mxu2 %vm572_vm1, %v6840_v18 }
 0x2be   : > { %v6842_v28 = vpop.f32.mrf.mxu3 }
 0x2bf   : > { %v6826_v44 = vpop.f32.mrf.mxu0  ;;  %9526 = vst [vmem:[#allocation143_spill] sm:$0xff] %v6842_v28  ;;  %4963 = vmatmul.msk.f32.gmra.mxu3 %vm572_vm1, %v6471_v6 }
 0x2c2   : > { %4557 = vmatmul.msk.f32.gmra.mxu0 %vm572_vm1, %v6829_v27  ;;  %v6853_v21 = vpop.f32.mrf.mxu1  ;;  %v6859_v28 = vpop.f32.mrf.mxu2 }
 0x2c3   : > { %9527 = vst [vmem:[#allocation144_spill] sm:$0xff] %v6853_v21  ;;  %4796 = vmatmul.msk.f32.gmra.mxu1 %vm572_vm1, %v6416_v41  ;;  %v6873_v41 = vld [vmem:[%s5221_s25 + $0x2b8] sm:$0xff] }
 0x2c4   : > { %9528 = vst [vmem:[#allocation145_spill] sm:$0xff] %v6859_v28 }
 0x2c5   : > { %4723 = vmatmul.msk.f32.gmra.mxu2 %vm572_vm1, %v6862_v23 }
 0x2c6   : > { %v6864_v37 = vpop.f32.mrf.mxu3 }
 0x2c7   : > { %v6848_v53 = vpop.f32.mrf.mxu0  ;;  %9529 = vst [vmem:[#allocation146_spill] sm:$0xff] %v6864_v37  ;;  %4964 = vmatmul.msk.f32.gmra.mxu3 %vm572_vm1, %v6493_v52 }
 0x2ca   : > { %4558 = vmatmul.msk.f32.gmra.mxu0 %vm572_vm1, %v6851_v19  ;;  %v6875_v14 = vpop.f32.mrf.mxu1  ;;  %v6881_v37 = vpop.f32.mrf.mxu2 }
 0x2cb   : > { %9530 = vst [vmem:[#allocation147_spill] sm:$0xff] %v6875_v14  ;;  %4797 = vmatmul.msk.f32.gmra.mxu1 %vm572_vm1, %v6438_v5  ;;  %v6895_v5 = vld [vmem:[%s5221_s25 + $0x2c0] sm:$0xff] }
 0x2cc   : > { %9531 = vst [vmem:[#allocation148_spill] sm:$0xff] %v6881_v37  ;;  %v6975_v37 = vld [vmem:[%s5221_s25 + $0x2e0] sm:$0xff] }
 0x2cd   : > { %4724 = vmatmul.msk.f32.gmra.mxu2 %vm572_vm1, %v6884_v13 }
 0x2ce   : > { %v6886_v54 = vpop.f32.mrf.mxu3 }
 0x2cf   : > { %v6870_v6 = vpop.f32.mrf.mxu0  ;;  %9532 = vst [vmem:[#allocation149_spill] sm:$0xff] %v6886_v54  ;;  %4965 = vmatmul.msk.f32.gmra.mxu3 %vm572_vm1, %v6515_v56 }
 0x2d2   : > { %4559 = vmatmul.msk.f32.gmra.mxu0 %vm572_vm1, %v6873_v41  ;;  %v6897_v62 = vpop.f32.mrf.mxu1  ;;  %v6903_v54 = vpop.f32.mrf.mxu2 }
 0x2d3   : > { %9533 = vst [vmem:[#allocation150_spill] sm:$0xff] %v6897_v62  ;;  %4798 = vmatmul.msk.f32.gmra.mxu1 %vm572_vm1, %v6460_v9  ;;  %v6917_v9 = vld [vmem:[%s5221_s25 + $0x2c8] sm:$0xff]  ;;  %v6928_v62 = vld [vmem:[%s5221_s25 + $0x7f0] sm:$0xff] }
 0x2d4   : > { %9534 = vst [vmem:[#allocation151_spill] sm:$0xff] %v6903_v54 }
 0x2d5   : > { %4725 = vmatmul.msk.f32.gmra.mxu2 %vm572_vm1, %v6906_v35 }
 0x2d6   : > { %v6908_v21 = vpop.f32.mrf.mxu3 }
 0x2d7   : > { %v6892_v52 = vpop.f32.mrf.mxu0  ;;  %9535 = vst [vmem:[#allocation152_spill] sm:$0xff] %v6908_v21  ;;  %4966 = vmatmul.msk.f32.gmra.mxu3 %vm572_vm1, %v6537_v46 }
 0x2da   : > { %4560 = vmatmul.msk.f32.gmra.mxu0 %vm572_vm1, %v6895_v5  ;;  %v6919_v14 = vpop.f32.mrf.mxu1  ;;  %v6925_v21 = vpop.f32.mrf.mxu2 }
 0x2db   : > { %9536 = vst [vmem:[#allocation153_spill] sm:$0xff] %v6919_v14  ;;  %4799 = vmatmul.msk.f32.gmra.mxu1 %vm572_vm1, %v6482_v8  ;;  %v6937_v14 = vld [vmem:[%s5221_s25 + $0x2d0] sm:$0xff] }
 0x2dc   : > { %9537 = vst [vmem:[#allocation154_spill] sm:$0xff] %v6925_v21 }
 0x2dd   : > { %4726 = vmatmul.msk.f32.gmra.mxu2 %vm572_vm1, %v6928_v62 }
 0x2de   : > { %v6930_v61 = vpop.f32.mrf.mxu3 }
 0x2df   : > { %v6914_v56 = vpop.f32.mrf.mxu0  ;;  %9538 = vst [vmem:[#allocation155_spill] sm:$0xff] %v6930_v61  ;;  %4967 = vmatmul.msk.f32.gmra.mxu3 %vm572_vm1, %v6559_v16  ;;  %v6948_v61 = vld [vmem:[%s5221_s25 + $0x7f8] sm:$0xff] }
 0x2e2   : > { %4561 = vmatmul.msk.f32.gmra.mxu0 %vm572_vm1, %v6917_v9  ;;  %v6939_v8 = vpop.f32.mrf.mxu1  ;;  %v6945_v60 = vpop.f32.mrf.mxu2 }
 0x2e3   : > { %9539 = vst [vmem:[#allocation156_spill] sm:$0xff] %v6939_v8  ;;  %4800 = vmatmul.msk.f32.gmra.mxu1 %vm572_vm1, %v6504_v38  ;;  %v6957_v8 = vld [vmem:[%s5221_s25 + $0x2d8] sm:$0xff] }
 0x2e4   : > { %9540 = vst [vmem:[#allocation157_spill] sm:$0xff] %v6945_v60 }
 0x2e5   : > { %4727 = vmatmul.msk.f32.gmra.mxu2 %vm572_vm1, %v6948_v61 }
 0x2e6   : > { %v6950_v4 = vpop.f32.mrf.mxu3 }
 0x2e7   : > { %v1587_v46 = vpop.f32.mrf.mxu0  ;;  %9541 = vst [vmem:[#allocation158_spill] sm:$0xff] %v6950_v4  ;;  %4968 = vmatmul.msk.f32.gmra.mxu3 %vm572_vm1, %v6581_v1  ;;  %v3430_v1 = vld [vmem:[%s9378_s1] sm:$0xff] }
 0x2ea   : > { %4562 = vmatmul.msk.f32.gmra.mxu0 %vm572_vm1, %v6937_v14  ;;  %v6959_v38 = vpop.f32.mrf.mxu1  ;;  %v6965_v28 = vpop.f32.mrf.mxu2 }
 0x2eb   : > { %9542 = vst [vmem:[#allocation159_spill] sm:$0xff] %v6959_v38  ;;  %4801 = vmatmul.msk.f32.gmra.mxu1 %vm572_vm1, %v6526_v40 }
 0x2ec   : > { %9543 = vst [vmem:[#allocation160_spill] sm:$0xff] %v6965_v28 }
 0x2ed   : > { %3462 = vmatmul.f32.vlgmr.msrb.gmra.mxu2 %v3430_v1 }
 0x2ee   : > { %v6967_v4 = vpop.f32.mrf.mxu3 }
 0x2ef   : > { %v1590_v16 = vpop.f32.mrf.mxu0  ;;  %9544 = vst [vmem:[#allocation161_spill] sm:$0xff] %v6967_v4  ;;  %4969 = vmatmul.msk.f32.gmra.mxu3 %vm572_vm1, %v6601_v26  ;;  %v6988_v26 = vld [vmem:[%s5221_s25 + $0x2e8] sm:$0xff] }
 0x2f2   : > { %4563 = vmatmul.msk.f32.gmra.mxu0 %vm572_vm1, %v6957_v8  ;;  %v6977_v40 = vpop.f32.mrf.mxu1 }
 0x2f3   : > { %9545 = vst [vmem:[#allocation162_spill] sm:$0xff] %v6977_v40  ;;  %4802 = vmatmul.msk.f32.gmra.mxu1 %vm572_vm1, %v6548_v15  ;;  %v7001_v40 = vld [vmem:[%s5221_s25 + $0x2f0] sm:$0xff] }
 0x2f6   : > { %v6983_v4 = vpop.f32.mrf.mxu3 }
 0x2f7   : > { %v1593_v38 = vpop.f32.mrf.mxu0  ;;  %9546 = vst [vmem:[#allocation163_spill] sm:$0xff] %v6983_v4  ;;  %4970 = vmatmul.msk.f32.gmra.mxu3 %vm572_vm1, %v6621_v7 }
 0x2fa   : > { %4564 = vmatmul.msk.f32.gmra.mxu0 %vm572_vm1, %v6975_v37  ;;  %v6990_v54 = vpop.f32.mrf.mxu1 }
 0x2fb   : > { %9547 = vst [vmem:[#allocation164_spill] sm:$0xff] %v6990_v54  ;;  %4803 = vmatmul.msk.f32.gmra.mxu1 %vm572_vm1, %v6570_v25  ;;  %v7014_v54 = vld [vmem:[%s5221_s25 + $0x2f8] sm:$0xff] }
 0x2fe   : > { %v6996_v15 = vpop.f32.mrf.mxu3 }
 0x2ff   : > { %v1596_v1 = vpop.f32.mrf.mxu0  ;;  %9548 = vst [vmem:[#allocation165_spill] sm:$0xff] %v6996_v15  ;;  %4971 = vmatmul.msk.f32.gmra.mxu3 %vm572_vm1, %v6641_v34 }
 0x300   : > { %v1597_v21 = vadd.f32 %v1596_v1, %v5609_v20  ;;  %v7034_v1 = vld [vmem:[%s5221_s25 + $0x300] sm:$0xff] }
 0x302   : > { %4565 = vmatmul.msk.f32.gmra.mxu0 %vm572_vm1, %v6988_v26  ;;  %v7003_v7 = vpop.f32.mrf.mxu1 }
 0x303   : > { %9549 = vst [vmem:[#allocation166_spill] sm:$0xff] %v7003_v7  ;;  %4804 = vmatmul.msk.f32.gmra.mxu1 %vm572_vm1, %v6590_v12 }
 0x306   : > { %v7009_v25 = vpop.f32.mrf.mxu3 }
 0x307   : > { %v1599_v4 = vpop.f32.mrf.mxu0  ;;  %9550 = vst [vmem:[#allocation167_spill] sm:$0xff] %v7009_v25  ;;  %4972 = vmatmul.msk.f32.gmra.mxu3 %vm572_vm1, %v6661_v17  ;;  %v1594_v25 = vadd.f32 %v1593_v38, %v5609_v20  ;;  %v1588_v38 = vadd.f32 %v1587_v46, %v5609_v20 }
 0x308   : > { %v1600_v7 = vadd.f32 %v1599_v4, %v5609_v20  ;;  %v3072_v4 = vmax.f32 %v1597_v21, 0.0  ;;  %v1582_v21 = vadd.f32 %v6892_v52, %v5609_v20  ;;  %v1576_v52 = vadd.f32 %v6848_v53, %v5609_v20 }
 0x309   : > { %v1567_v53 = vadd.f32 %v6782_v57, %v5609_v20 }
 0x30a   : > { %4566 = vmatmul.msk.f32.gmra.mxu0 %vm572_vm1, %v7001_v40  ;;  %v7016_v34 = vpop.f32.mrf.mxu1  ;;  %v3074_v28 = vmax.f32 %v1600_v7, 0.0  ;;  %v3066_v7 = vmax.f32 %v1588_v38, 0.0 }
 0x30b   : > { %9551 = vst [vmem:[#allocation168_spill] sm:$0xff] %v7016_v34  ;;  %4805 = vmatmul.msk.f32.gmra.mxu1 %vm572_vm1, %v6610_v58  ;;  %v1591_v58 = vadd.f32 %v1590_v16, %v5609_v20  ;;  %v3052_v57 = vmax.f32 %v1567_v53, 0.0 }
 0x30d   : > { %v3068_v16 = vmax.f32 %v1591_v58, 0.0 }
 0x30e   : > { %v7025_v17 = vpop.f32.mrf.mxu3 }
 0x30f   : > { %v1602_v15 = vpop.f32.mrf.mxu0  ;;  %9552 = vst [vmem:[#allocation169_spill] sm:$0xff] %v7025_v17  ;;  %4973 = vmatmul.msk.f32.gmra.mxu3 %vm572_vm1, %v6684_v59  ;;  %v1585_v59 = vadd.f32 %v6914_v56, %v5609_v20 }
 0x310   : > { %v1603_v12 = vadd.f32 %v1602_v15, %v5609_v20 }
 0x311   : > { %v3064_v46 = vmax.f32 %v1585_v59, 0.0 }
 0x312   : > { %v3076_v60 = vmax.f32 %v1603_v12, 0.0  ;;  %4567 = vmatmul.msk.f32.gmra.mxu0 %vm572_vm1, %v7014_v54  ;;  %v7036_v12 = vpop.f32.mrf.mxu1 }
 0x313   : > { %9553 = vst [vmem:[#allocation170_spill] sm:$0xff] %v7036_v12  ;;  %4806 = vmatmul.msk.f32.gmra.mxu1 %vm572_vm1, %v6630_v33  ;;  %v1579_v33 = vadd.f32 %v6870_v6, %v5609_v20 }
 0x314   : > { %3526 = vmatpush.msrb.mxu2 %v3076_v60  ;;  %v3070_v60 = vmax.f32 %v1594_v25, 0.0  ;;  %v7056_v25 = vld [vmem:[%s5221_s25 + $0x308] sm:$0xff] }
 0x315   : > { %v3060_v6 = vmax.f32 %v1579_v33, 0.0 }
 0x316   : > { %3527 = vmatpush.msrb.mxu2 %v3074_v28  ;;  %v7045_v28 = vpop.f32.mrf.mxu3 }
 0x317   : > { %v7031_v15 = vpop.f32.mrf.mxu0  ;;  %9554 = vst [vmem:[#allocation171_spill] sm:$0xff] %v7045_v28  ;;  %4974 = vmatmul.msk.f32.gmra.mxu3 %vm572_vm1, %v6712_v22  ;;  %v1573_v22 = vadd.f32 %v6826_v44, %v5609_v20  ;;  %v7255_v28 = vld [vmem:[%s5221_s25 + $0x378] sm:$0xff] }
 0x318   : > { %3528 = vmatpush.msrb.mxu2 %v3072_v4  ;;  %v3062_v4 = vmax.f32 %v1582_v21, 0.0 }
 0x319   : > { %v3056_v59 = vmax.f32 %v1573_v22, 0.0 }
 0x31a   : > { %4568 = vmatmul.msk.f32.gmra.mxu0 %vm572_vm1, %v7034_v1  ;;  %3529 = vmatpush.msrb.mxu2 %v3070_v60  ;;  %v7058_v58 = vpop.f32.mrf.mxu1  ;;  %v1570_v60 = vadd.f32 %v6804_v63, %v5609_v20  ;;  %v1564_v63 = vadd.f32 %v6754_v3, %v5609_v20 }
 0x31b   : > { %9555 = vst [vmem:[#allocation172_spill] sm:$0xff] %v7058_v58  ;;  %4807 = vmatmul.msk.f32.gmra.mxu1 %vm572_vm1, %v6650_v45  ;;  %v3058_v45 = vmax.f32 %v1576_v52, 0.0 }
 0x31c   : > { %3530 = vmatpush.msrb.mxu2 %v3068_v16  ;;  %v7079_v16 = vld [vmem:[%s5221_s25 + $0x310] sm:$0xff] }
 0x31e   : > { %3531 = vmatpush.msrb.mxu2 %v3066_v7  ;;  %v7068_v38 = vpop.f32.mrf.mxu3  ;;  %v3054_v7 = vmax.f32 %v1570_v60, 0.0 }
 0x31f   : > { %v7053_v56 = vpop.f32.mrf.mxu0  ;;  %9556 = vst [vmem:[#allocation173_spill] sm:$0xff] %v7068_v38  ;;  %4975 = vmatmul.msk.f32.gmra.mxu3 %vm572_vm1, %v6742_v2  ;;  %v1561_v2 = vadd.f32 %v6724_v0, %v5609_v20  ;;  %v7100_v0 = vld [vmem:[%s5221_s25 + $0x318] sm:$0xff] }
 0x320   : > { %3532 = vmatpush.msrb.mxu2 %v3064_v46  ;;  %v1558_v46 = vadd.f32 %v6694_v50, %v5609_v20 }
 0x321   : > { %v3048_v3 = vmax.f32 %v1561_v2, 0.0 }
 0x322   : > { %4569 = vmatmul.msk.f32.gmra.mxu0 %vm572_vm1, %v7056_v25  ;;  %3533 = vmatpush.msrb.mxu2 %v3062_v4  ;;  %v7081_v21 = vpop.f32.mrf.mxu1  ;;  %v3046_v22 = vmax.f32 %v1558_v46, 0.0 }
 0x323   : > { %4808 = vmatmul.msk.f32.gmra.mxu1 %vm572_vm1, %v6670_v48  ;;  %v3050_v48 = vmax.f32 %v1564_v63, 0.0 }
 0x324   : > { %3534 = vmatpush.msrb.mxu2 %v3060_v6  ;;  %v7115_v6 = vld [vmem:[%s5221_s25 + $0x320] sm:$0xff] }
 0x326   : > { %3535 = vmatpush.msrb.mxu2 %v3058_v45  ;;  %v7091_v33 = vpop.f32.mrf.mxu3  ;;  %v7130_v45 = vld [vmem:[%s5221_s25 + $0x328] sm:$0xff] }
 0x327   : > { %v7076_v44 = vpop.f32.mrf.mxu0  ;;  %9557 = vst [vmem:[#allocation174_spill] sm:$0xff] %v7091_v33  ;;  %4976 = vmatmul.msk.f32.gmra.mxu3 %vm572_vm1, %v6772_v24 }
 0x328   : > { %3536 = vmatpush.msrb.mxu2 %v3056_v59  ;;  %v7145_v59 = vld [vmem:[%s5221_s25 + $0x330] sm:$0xff] }
 0x32a   : > { %4570 = vmatmul.msk.f32.gmra.mxu0 %vm572_vm1, %v7079_v16  ;;  %3537 = vmatpush.msrb.mxu2 %v3054_v7  ;;  %v7102_v4 = vpop.f32.mrf.mxu1  ;;  %v7160_v7 = vld [vmem:[%s5221_s25 + $0x338] sm:$0xff] }
 0x32b   : > { %4809 = vmatmul.msk.f32.gmra.mxu1 %vm572_vm1, %v6697_v29 }
 0x32c   : > { %3538 = vmatpush.msrb.mxu2 %v3052_v57  ;;  %v7175_v57 = vld [vmem:[%s5221_s25 + $0x340] sm:$0xff] }
 0x32e   : > { %3539 = vmatpush.msrb.mxu2 %v3050_v48  ;;  %v7108_v50 = vpop.f32.mrf.mxu3  ;;  %v7188_v48 = vld [vmem:[%s5221_s25 + $0x348] sm:$0xff] }
 0x32f   : > { %v7097_v52 = vpop.f32.mrf.mxu0  ;;  %9558 = vst [vmem:[#allocation175_spill] sm:$0xff] %v7108_v50  ;;  %4977 = vmatmul.msk.f32.gmra.mxu3 %vm572_vm1, %v6796_v49 }
 0x330   : > { %3540 = vmatpush.msrb.mxu2 %v3048_v3 }
 0x332   : > { %4571 = vmatmul.msk.f32.gmra.mxu0 %vm572_vm1, %v7100_v0  ;;  %3541 = vmatpush.msrb.mxu2 %v3046_v22  ;;  %v7117_v60 = vpop.f32.mrf.mxu1 }
 0x333   : > { %4810 = vmatmul.msk.f32.gmra.mxu1 %vm572_vm1, %v6727_v11 }
 0x336   : > { %v7123_v29 = vpop.f32.mrf.mxu3 }
 0x337   : > { %v7112_v24 = vpop.f32.mrf.mxu0  ;;  %9559 = vst [vmem:[#allocation176_spill] sm:$0xff] %v7123_v29  ;;  %4978 = vmatmul.msk.f32.gmra.mxu3 %vm572_vm1, %v6818_v36 }
 0x33a   : > { %4572 = vmatmul.msk.f32.gmra.mxu0 %vm572_vm1, %v7115_v6  ;;  %v7132_v53 = vpop.f32.mrf.mxu1 }
 0x33b   : > { %4811 = vmatmul.msk.f32.gmra.mxu1 %vm572_vm1, %v6757_v51 }
 0x33e   : > { %v7138_v11 = vpop.f32.mrf.mxu3 }
 0x33f   : > { %v7127_v49 = vpop.f32.mrf.mxu0  ;;  %9560 = vst [vmem:[#allocation177_spill] sm:$0xff] %v7138_v11  ;;  %4979 = vmatmul.msk.f32.gmra.mxu3 %vm572_vm1, %v6840_v18 }
 0x342   : > { %4573 = vmatmul.msk.f32.gmra.mxu0 %vm572_vm1, %v7130_v45  ;;  %v7147_v63 = vpop.f32.mrf.mxu1 }
 0x343   : > { %4812 = vmatmul.msk.f32.gmra.mxu1 %vm572_vm1, %v6785_v32 }
 0x346   : > { %v7153_v51 = vpop.f32.mrf.mxu3 }
 0x347   : > { %v7142_v36 = vpop.f32.mrf.mxu0  ;;  %9561 = vst [vmem:[#allocation178_spill] sm:$0xff] %v7153_v51  ;;  %4980 = vmatmul.msk.f32.gmra.mxu3 %vm572_vm1, %v6862_v23 }
 0x34a   : > { %4574 = vmatmul.msk.f32.gmra.mxu0 %vm572_vm1, %v7145_v59  ;;  %v7162_v2 = vpop.f32.mrf.mxu1 }
 0x34b   : > { %4813 = vmatmul.msk.f32.gmra.mxu1 %vm572_vm1, %v6807_v39 }
 0x34e   : > { %v7168_v32 = vpop.f32.mrf.mxu3 }
 0x34f   : > { %v7157_v18 = vpop.f32.mrf.mxu0  ;;  %9562 = vst [vmem:[#allocation179_spill] sm:$0xff] %v7168_v32  ;;  %4981 = vmatmul.msk.f32.gmra.mxu3 %vm572_vm1, %v6884_v13  ;;  %v7228_v32 = vld [vmem:[%s5221_s25 + $0x360] sm:$0xff] }
 0x352   : > { %4575 = vmatmul.msk.f32.gmra.mxu0 %vm572_vm1, %v7160_v7  ;;  %v7177_v46 = vpop.f32.mrf.mxu1 }
 0x353   : > { %4814 = vmatmul.msk.f32.gmra.mxu1 %vm572_vm1, %v6829_v27 }
 0x356   : > { %v7183_v39 = vpop.f32.mrf.mxu3 }
 0x357   : > { %v7172_v23 = vpop.f32.mrf.mxu0  ;;  %9563 = vst [vmem:[#allocation180_spill] sm:$0xff] %v7183_v39  ;;  %4982 = vmatmul.msk.f32.gmra.mxu3 %vm572_vm1, %v6906_v35  ;;  %v7201_v35 = vld [vmem:[%s5221_s25 + $0x350] sm:$0xff] }
 0x35a   : > { %4576 = vmatmul.msk.f32.gmra.mxu0 %vm572_vm1, %v7175_v57  ;;  %v7190_v3 = vpop.f32.mrf.mxu1 }
 0x35b   : > { %4815 = vmatmul.msk.f32.gmra.mxu1 %vm572_vm1, %v6851_v19 }
 0x35e   : > { %v7196_v27 = vpop.f32.mrf.mxu3 }
 0x35f   : > { %v1632_v13 = vpop.f32.mrf.mxu0  ;;  %9564 = vst [vmem:[#allocation181_spill] sm:$0xff] %v7196_v27  ;;  %4983 = vmatmul.msk.f32.gmra.mxu3 %vm572_vm1, %v6928_v62  ;;  %v7214_v62 = vld [vmem:[%s5221_s25 + $0x358] sm:$0xff]  ;;  %v7237_v27 = vld [vmem:[%s5221_s25 + $0x368] sm:$0xff] }
 0x362   : > { %4577 = vmatmul.msk.f32.gmra.mxu0 %vm572_vm1, %v7188_v48  ;;  %v7203_v50 = vpop.f32.mrf.mxu1 }
 0x363   : > { %4816 = vmatmul.msk.f32.gmra.mxu1 %vm572_vm1, %v6873_v41  ;;  %v3431_v41 = vld [vmem:[%s9378_s1 + $0x8] sm:$0xff] }
 0x366   : > { %v7209_v19 = vpop.f32.mrf.mxu3 }
 0x367   : > { %v1635_v22 = vpop.f32.mrf.mxu0  ;;  %9565 = vst [vmem:[#allocation182_spill] sm:$0xff] %v7209_v19  ;;  %4984 = vmatmul.msk.f32.gmra.mxu3 %vm572_vm1, %v6948_v61 }
 0x36a   : > { %4578 = vmatmul.msk.f32.gmra.mxu0 %vm572_vm1, %v7201_v35  ;;  %v7216_v11 = vpop.f32.mrf.mxu1 }
 0x36b   : > { %9566 = vst [vmem:[#allocation183_spill] sm:$0xff] %v7216_v11  ;;  %4817 = vmatmul.msk.f32.gmra.mxu1 %vm572_vm1, %v6895_v5 }
 0x36e   : > { %v7225_v51 = vpop.f32.mrf.mxu3 }
 0x36f   : > { %v1638_v29 = vpop.f32.mrf.mxu0  ;;  %9567 = vst [vmem:[#allocation184_spill] sm:$0xff] %v7225_v51  ;;  %3482 = vmatmul.f32.vlgmr.msrb.gmra.mxu3 %v3431_v41  ;;  %v7246_v51 = vld [vmem:[%s5221_s25 + $0x370] sm:$0xff] }
 0x372   : > { %4579 = vmatmul.msk.f32.gmra.mxu0 %vm572_vm1, %v7214_v62  ;;  %v7230_v39 = vpop.f32.mrf.mxu1 }
 0x373   : > { %9568 = vst [vmem:[#allocation185_spill] sm:$0xff] %v7230_v39  ;;  %4818 = vmatmul.msk.f32.gmra.mxu1 %vm572_vm1, %v6917_v9 }
 0x377   : > { %v1641_v61 = vpop.f32.mrf.mxu0 }
 0x37a   : > { %4580 = vmatmul.msk.f32.gmra.mxu0 %vm572_vm1, %v7228_v32  ;;  %v7239_v19 = vpop.f32.mrf.mxu1 }
 0x37b   : > { %9569 = vst [vmem:[#allocation186_spill] sm:$0xff] %v7239_v19  ;;  %4819 = vmatmul.msk.f32.gmra.mxu1 %vm572_vm1, %v6937_v14 }
 0x37f   : > { %v1644_v5 = vpop.f32.mrf.mxu0 }
 0x380   : > { %v1645_v11 = vadd.f32 %v1644_v5, %v5609_v20 }
 0x382   : > { %4581 = vmatmul.msk.f32.gmra.mxu0 %vm572_vm1, %v7237_v27  ;;  %v7248_v17 = vpop.f32.mrf.mxu1 }
 0x383   : > { %9570 = vst [vmem:[#allocation187_spill] sm:$0xff] %v7248_v17  ;;  %4820 = vmatmul.msk.f32.gmra.mxu1 %vm572_vm1, %v6957_v8  ;;  %v1642_v8 = vadd.f32 %v1641_v61, %v5609_v20  ;;  %v1639_v17 = vadd.f32 %v1638_v29, %v5609_v20  ;;  %v1630_v29 = vadd.f32 %v7172_v23, %v5609_v20 }
 0x385   : > { %v3102_v5 = vmax.f32 %v1642_v8, 0.0  ;;  %v3100_v61 = vmax.f32 %v1639_v17, 0.0  ;;  %v1624_v17 = vadd.f32 %v7142_v36, %v5609_v20  ;;  %v3094_v23 = vmax.f32 %v1630_v29, 0.0 }
 0x386   : > { %v1606_v29 = vadd.f32 %v7031_v15, %v5609_v20 }
 0x387   : > { %v1647_v41 = vpop.f32.mrf.mxu0  ;;  %v3090_v8 = vmax.f32 %v1624_v17, 0.0  ;;  %v7335_v17 = vld [vmem:[%s5221_s25 + $0x3a0] sm:$0xff] }
 0x388   : > { %v1648_v14 = vadd.f32 %v1647_v41, %v5609_v20 }
 0x38a   : > { %4582 = vmatmul.msk.f32.gmra.mxu0 %vm572_vm1, %v7246_v51  ;;  %v7257_v38 = vpop.f32.mrf.mxu1  ;;  %v3106_v19 = vmax.f32 %v1648_v14, 0.0  ;;  %v1618_v14 = vadd.f32 %v7112_v24, %v5609_v20  ;;  %v1612_v24 = vadd.f32 %v7076_v44, %v5609_v20 }
 0x38b   : > { %9571 = vst [vmem:[#allocation188_spill] sm:$0xff] %v7257_v38  ;;  %4821 = vmatmul.msk.f32.gmra.mxu1 %vm572_vm1, %v6975_v37  ;;  %v3104_v38 = vmax.f32 %v1645_v11, 0.0  ;;  %v7271_v37 = vld [vmem:[%s5221_s25 + $0x380] sm:$0xff] }
 0x38f   : > { %v1650_v9 = vpop.f32.mrf.mxu0 }
 0x390   : > { %v1651_v33 = vadd.f32 %v1650_v9, %v5609_v20 }
 0x392   : > { %v3108_v39 = vmax.f32 %v1651_v33, 0.0  ;;  %4583 = vmatmul.msk.f32.gmra.mxu0 %vm572_vm1, %v7255_v28  ;;  %v7273_v41 = vpop.f32.mrf.mxu1  ;;  %v1636_v33 = vadd.f32 %v1635_v22, %v5609_v20 }
 0x393   : > { %9572 = vst [vmem:[#allocation189_spill] sm:$0xff] %v7273_v41  ;;  %4822 = vmatmul.msk.f32.gmra.mxu1 %vm572_vm1, %v6988_v26  ;;  %v7414_v41 = vpop.f32.mrf.mxu2 }
 0x394   : > { %3546 = vmatpush.msrb.mxu3 %v3108_v39  ;;  %v1633_v39 = vadd.f32 %v1632_v13, %v5609_v20  ;;  %v3098_v11 = vmax.f32 %v1636_v33, 0.0 }
 0x396   : > { %3547 = vmatpush.msrb.mxu3 %v3106_v19  ;;  %v1627_v19 = vadd.f32 %v7157_v18, %v5609_v20  ;;  %v3096_v26 = vmax.f32 %v1633_v39, 0.0  ;;  %v1621_v18 = vadd.f32 %v7127_v49, %v5609_v20  ;;  %v3086_v39 = vmax.f32 %v1618_v14, 0.0 }
 0x397   : > { %v7268_v34 = vpop.f32.mrf.mxu0 }
 0x398   : > { %3548 = vmatpush.msrb.mxu3 %v3104_v38  ;;  %v7288_v38 = vld [vmem:[%s5221_s25 + $0x388] sm:$0xff]  ;;  %v3092_v9 = vmax.f32 %v1627_v19, 0.0  ;;  %v3088_v33 = vmax.f32 %v1621_v18, 0.0  ;;  %v7324_v19 = vld [vmem:[%s5221_s25 + $0x398] sm:$0xff] }
 0x399   : > { %v7346_v18 = vld [vmem:[%s5221_s25 + $0x3a8] sm:$0xff] }
 0x39a   : > { %4584 = vmatmul.msk.f32.gmra.mxu0 %vm572_vm1, %v7271_v37  ;;  %3549 = vmatpush.msrb.mxu3 %v3102_v5  ;;  %v7290_v13 = vpop.f32.mrf.mxu1  ;;  %v7307_v5 = vld [vmem:[%s5221_s25 + $0x390] sm:$0xff] }
 0x39b   : > { %9573 = vst [vmem:[#allocation190_spill] sm:$0xff] %v7290_v13  ;;  %4823 = vmatmul.msk.f32.gmra.mxu1 %vm572_vm1, %v7001_v40  ;;  %v1615_v40 = vadd.f32 %v7097_v52, %v5609_v20  ;;  %v1609_v52 = vadd.f32 %v7053_v56, %v5609_v20  ;;  %v3078_v56 = vmax.f32 %v1606_v29, 0.0 }
 0x39c   : > { %3550 = vmatpush.msrb.mxu3 %v3100_v61 }
 0x39d   : > { %v3084_v61 = vmax.f32 %v1615_v40, 0.0 }
 0x39e   : > { %3551 = vmatpush.msrb.mxu3 %v3098_v11  ;;  %v3082_v11 = vmax.f32 %v1612_v24, 0.0 }
 0x39f   : > { %v7285_v22 = vpop.f32.mrf.mxu0 }
 0x3a0   : > { %3552 = vmatpush.msrb.mxu3 %v3096_v26 }
 0x3a2   : > { %4585 = vmatmul.msk.f32.gmra.mxu0 %vm572_vm1, %v7288_v38  ;;  %3553 = vmatpush.msrb.mxu3 %v3094_v23  ;;  %v7309_v49 = vpop.f32.mrf.mxu1 }
 0x3a3   : > { %9574 = vst [vmem:[#allocation191_spill] sm:$0xff] %v7309_v49  ;;  %4824 = vmatmul.msk.f32.gmra.mxu1 %vm572_vm1, %v7014_v54  ;;  %v3080_v54 = vmax.f32 %v1609_v52, 0.0  ;;  %v7420_v49 = vld [vmem:[%s5221_s25 + $0x3e0] sm:$0xff] }
 0x3a4   : > { %3554 = vmatpush.msrb.mxu3 %v3092_v9 }
 0x3a6   : > { %3555 = vmatpush.msrb.mxu3 %v3090_v8 }
 0x3a7   : > { %v7304_v36 = vpop.f32.mrf.mxu0 }
 0x3a8   : > { %3556 = vmatpush.msrb.mxu3 %v3088_v33 }
 0x3aa   : > { %4586 = vmatmul.msk.f32.gmra.mxu0 %vm572_vm1, %v7307_v5  ;;  %3557 = vmatpush.msrb.mxu3 %v3086_v39  ;;  %v7326_v26 = vpop.f32.mrf.mxu1 }
 0x3ab   : > { %9575 = vst [vmem:[#allocation192_spill] sm:$0xff] %v7326_v26  ;;  %4825 = vmatmul.msk.f32.gmra.mxu1 %vm572_vm1, %v7034_v1 }
 0x3ac   : > { %3558 = vmatpush.msrb.mxu3 %v3084_v61  ;;  %v7388_v61 = vld [vmem:[%s5221_s25 + $0x3c8] sm:$0xff] }
 0x3ae   : > { %3559 = vmatpush.msrb.mxu3 %v3082_v11  ;;  %v7397_v11 = vld [vmem:[%s5221_s25 + $0x3d0] sm:$0xff] }
 0x3af   : > { %v7321_v44 = vpop.f32.mrf.mxu0 }
 0x3b0   : > { %3560 = vmatpush.msrb.mxu3 %v3080_v54 }
 0x3b2   : > { %4587 = vmatmul.msk.f32.gmra.mxu0 %vm572_vm1, %v7324_v19  ;;  %3561 = vmatpush.msrb.mxu3 %v3078_v56  ;;  %v7337_v23 = vpop.f32.mrf.mxu1  ;;  %v7406_v56 = vld [vmem:[%s5221_s25 + $0x3d8] sm:$0xff] }
 0x3b3   : > { %9576 = vst [vmem:[#allocation193_spill] sm:$0xff] %v7337_v23  ;;  %4826 = vmatmul.msk.f32.gmra.mxu1 %vm572_vm1, %v7056_v25  ;;  %v7357_v25 = vld [vmem:[%s5221_s25 + $0x3b0] sm:$0xff]  ;;  %v7429_v23 = vld [vmem:[%s5221_s25 + $0x3e8] sm:$0xff] }
 0x3b7   : > { %v7332_v15 = vpop.f32.mrf.mxu0 }
 0x3ba   : > { %4588 = vmatmul.msk.f32.gmra.mxu0 %vm572_vm1, %v7335_v17  ;;  %v7348_v9 = vpop.f32.mrf.mxu1 }
 0x3bb   : > { %9577 = vst [vmem:[#allocation194_spill] sm:$0xff] %v7348_v9  ;;  %4827 = vmatmul.msk.f32.gmra.mxu1 %vm572_vm1, %v7079_v16  ;;  %v7368_v16 = vld [vmem:[%s5221_s25 + $0x3b8] sm:$0xff]  ;;  %v7438_v9 = vld [vmem:[%s5221_s25 + $0x3f0] sm:$0xff] }
 0x3bf   : > { %v7343_v1 = vpop.f32.mrf.mxu0 }
 0x3c2   : > { %4589 = vmatmul.msk.f32.gmra.mxu0 %vm572_vm1, %v7346_v18  ;;  %v7359_v8 = vpop.f32.mrf.mxu1 }
 0x3c3   : > { %9578 = vst [vmem:[#allocation195_spill] sm:$0xff] %v7359_v8  ;;  %4828 = vmatmul.msk.f32.gmra.mxu1 %vm572_vm1, %v7100_v0  ;;  %v7379_v0 = vld [vmem:[%s5221_s25 + $0x3c0] sm:$0xff]  ;;  %v7447_v8 = vld [vmem:[%s5221_s25 + $0x3f8] sm:$0xff] }
 0x3c7   : > { %v7354_v14 = vpop.f32.mrf.mxu0 }
 0x3ca   : > { %4590 = vmatmul.msk.f32.gmra.mxu0 %vm572_vm1, %v7357_v25  ;;  %v7370_v33 = vpop.f32.mrf.mxu1 }
 0x3cb   : > { %9579 = vst [vmem:[#allocation196_spill] sm:$0xff] %v7370_v33  ;;  %4829 = vmatmul.msk.f32.gmra.mxu1 %vm572_vm1, %v7115_v6 }
 0x3cf   : > { %v7365_v40 = vpop.f32.mrf.mxu0 }
 0x3d2   : > { %4591 = vmatmul.msk.f32.gmra.mxu0 %vm572_vm1, %v7368_v16  ;;  %v7381_v39 = vpop.f32.mrf.mxu1 }
 0x3d3   : > { %9580 = vst [vmem:[#allocation197_spill] sm:$0xff] %v7381_v39  ;;  %4830 = vmatmul.msk.f32.gmra.mxu1 %vm572_vm1, %v7130_v45 }
 0x3d7   : > { %v7376_v24 = vpop.f32.mrf.mxu0 }
 0x3da   : > { %4592 = vmatmul.msk.f32.gmra.mxu0 %vm572_vm1, %v7379_v0  ;;  %v7390_v6 = vpop.f32.mrf.mxu1 }
 0x3db   : > { %9581 = vst [vmem:[#allocation198_spill] sm:$0xff] %v7390_v6  ;;  %4831 = vmatmul.msk.f32.gmra.mxu1 %vm572_vm1, %v7145_v59 }
 0x3df   : > { %v1680_v52 = vpop.f32.mrf.mxu0 }
 0x3e2   : > { %4593 = vmatmul.msk.f32.gmra.mxu0 %vm572_vm1, %v7388_v61  ;;  %v7399_v54 = vpop.f32.mrf.mxu1 }
 0x3e3   : > { %9582 = vst [vmem:[#allocation199_spill] sm:$0xff] %v7399_v54  ;;  %4832 = vmatmul.msk.f32.gmra.mxu1 %vm572_vm1, %v7160_v7  ;;  %v3432_v7 = vld [vmem:[%s9378_s1 + $0x10] sm:$0xff] }
 0x3e4   : > { %3502 = vmatmul.f32.vlgmr.msra.gmra.mxu2 %v3432_v7 }
 0x3e7   : > { %v1683_v29 = vpop.f32.mrf.mxu0 }
 0x3ea   : > { %4594 = vmatmul.msk.f32.gmra.mxu0 %vm572_vm1, %v7397_v11  ;;  %v7408_v59 = vpop.f32.mrf.mxu1 }
 0x3eb   : > { %9583 = vst [vmem:[#allocation200_spill] sm:$0xff] %v7408_v59  ;;  %4833 = vmatmul.msk.f32.gmra.mxu1 %vm572_vm1, %v7175_v57 }
 0x3ef   : > { %v1686_v45 = vpop.f32.mrf.mxu0 }
 0x3f0   : > { %v1687_v54 = vadd.f32 %v1686_v45, %v5609_v20  ;;  %v1675_v45 = vadd.f32 %v7365_v40, %v5609_v20  ;;  %v1669_v40 = vadd.f32 %v7343_v1, %v5609_v20 }
 0x3f2   : > { %4595 = vmatmul.msk.f32.gmra.mxu0 %vm572_vm1, %v7406_v56  ;;  %v7422_v26 = vpop.f32.mrf.mxu1 }
 0x3f3   : > { %9584 = vst [vmem:[#allocation201_spill] sm:$0xff] %v7422_v26  ;;  %4834 = vmatmul.msk.f32.gmra.mxu1 %vm572_vm1, %v7188_v48 }
 0x3f7   : > { %v1689_v13 = vpop.f32.mrf.mxu0 }
 0x3fa   : > { %4596 = vmatmul.msk.f32.gmra.mxu0 %vm572_vm1, %v7420_v49  ;;  %v7431_v59 = vpop.f32.mrf.mxu1 }
 0x3fb   : > { %9585 = vst [vmem:[#allocation202_spill] sm:$0xff] %v7431_v59  ;;  %4835 = vmatmul.msk.f32.gmra.mxu1 %vm572_vm1, %v7201_v35 }
 0x3ff   : > { %v1692_v57 = vpop.f32.mrf.mxu0 }
 0x402   : > { %4597 = vmatmul.msk.f32.gmra.mxu0 %vm572_vm1, %v7429_v23  ;;  %v7440_v26 = vpop.f32.mrf.mxu1 }
 0x403   : > { %9586 = vst [vmem:[#allocation203_spill] sm:$0xff] %v7440_v26  ;;  %4836 = vmatmul.msk.f32.gmra.mxu1 %vm572_vm1, %v7214_v62  ;;  %v1693_v26 = vadd.f32 %v1692_v57, %v5609_v20  ;;  %v1690_v62 = vadd.f32 %v1689_v13, %v5609_v20  ;;  %v1681_v13 = vadd.f32 %v1680_v52, %v5609_v20 }
 0x405   : > { %v3134_v57 = vmax.f32 %v1690_v62, 0.0 }
 0x407   : > { %v1695_v7 = vpop.f32.mrf.mxu0 }
 0x408   : > { %v1696_v35 = vadd.f32 %v1695_v7, %v5609_v20 }
 0x40a   : > { %4598 = vmatmul.msk.f32.gmra.mxu0 %vm572_vm1, %v7438_v9  ;;  %v7449_v59 = vpop.f32.mrf.mxu1  ;;  %v3138_v6 = vmax.f32 %v1696_v35, 0.0  ;;  %v1666_v35 = vadd.f32 %v7332_v15, %v5609_v20  ;;  %v1660_v15 = vadd.f32 %v7304_v36, %v5609_v20 }
 0x40b   : > { %9587 = vst [vmem:[#allocation204_spill] sm:$0xff] %v7449_v59  ;;  %4837 = vmatmul.msk.f32.gmra.mxu1 %vm572_vm1, %v7228_v32  ;;  %v3136_v59 = vmax.f32 %v1693_v26, 0.0  ;;  %v7463_v32 = vld [vmem:[%s5221_s25 + $0x400] sm:$0xff]  ;;  %v1678_v26 = vadd.f32 %v7376_v24, %v5609_v20  ;;  %v1672_v24 = vadd.f32 %v7354_v14, %v5609_v20 }
 0x40d   : > { %v3122_v62 = vmax.f32 %v1672_v24, 0.0  ;;  %v7527_v24 = vld [vmem:[%s5221_s25 + $0x420] sm:$0xff] }
 0x40f   : > { %v1698_v48 = vpop.f32.mrf.mxu0 }
 0x410   : > { %v1699_v33 = vadd.f32 %v1698_v48, %v5609_v20  ;;  %v3124_v48 = vmax.f32 %v1675_v45, 0.0  ;;  %v7516_v45 = vld [vmem:[%s5221_s25 + $0x418] sm:$0xff] }
 0x412   : > { %v3140_v39 = vmax.f32 %v1699_v33, 0.0  ;;  %4599 = vmatmul.msk.f32.gmra.mxu0 %vm572_vm1, %v7447_v8  ;;  %v7465_v7 = vpop.f32.mrf.mxu1  ;;  %v1684_v33 = vadd.f32 %v1683_v29, %v5609_v20 }
 0x413   : > { %9588 = vst [vmem:[#allocation205_spill] sm:$0xff] %v7465_v7  ;;  %4838 = vmatmul.msk.f32.gmra.mxu1 %vm572_vm1, %v7237_v27  ;;  %v3128_v27 = vmax.f32 %v1681_v13, 0.0  ;;  %v3118_v13 = vmax.f32 %v1666_v35, 0.0  ;;  %v7606_v7 = vpop.f32.mrf.mxu3 }
 0x414   : > { %3566 = vmatpush.msra.mxu2 %v3140_v39  ;;  %v3132_v39 = vmax.f32 %v1687_v54, 0.0  ;;  %v3126_v54 = vmax.f32 %v1678_v26, 0.0  ;;  %v1654_v26 = vadd.f32 %v7268_v34, %v5609_v20  ;;  %9600 = vst [vmem:[#allocation217_spill] sm:$0xff] %v7606_v7 }
 0x416   : > { %3567 = vmatpush.msra.mxu2 %v3138_v6  ;;  %v3130_v6 = vmax.f32 %v1684_v33, 0.0  ;;  %v3120_v33 = vmax.f32 %v1669_v40, 0.0  ;;  %v7538_v40 = vld [vmem:[%s5221_s25 + $0x428] sm:$0xff] }
 0x417   : > { %v7460_v12 = vpop.f32.mrf.mxu0 }
 0x418   : > { %3568 = vmatpush.msra.mxu2 %v3136_v59  ;;  %v7480_v59 = vld [vmem:[%s5221_s25 + $0x408] sm:$0xff] }
 0x41a   : > { %4600 = vmatmul.msk.f32.gmra.mxu0 %vm572_vm1, %v7463_v32  ;;  %3569 = vmatpush.msra.mxu2 %v3134_v57  ;;  %v7482_v52 = vpop.f32.mrf.mxu1  ;;  %v7499_v57 = vld [vmem:[%s5221_s25 + $0x410] sm:$0xff] }
 0x41b   : > { %9589 = vst [vmem:[#allocation206_spill] sm:$0xff] %v7482_v52  ;;  %4839 = vmatmul.msk.f32.gmra.mxu1 %vm572_vm1, %v7246_v51  ;;  %v1663_v51 = vadd.f32 %v7321_v44, %v5609_v20  ;;  %v1657_v44 = vadd.f32 %v7285_v22, %v5609_v20  ;;  %v3110_v22 = vmax.f32 %v1654_v26, 0.0 }
 0x41c   : > { %3570 = vmatpush.msra.mxu2 %v3132_v39 }
 0x41d   : > { %v3116_v39 = vmax.f32 %v1663_v51, 0.0 }
 0x41e   : > { %3571 = vmatpush.msra.mxu2 %v3130_v6  ;;  %v3114_v6 = vmax.f32 %v1660_v15, 0.0 }
 0x41f   : > { %v7477_v29 = vpop.f32.mrf.mxu0 }
 0x420   : > { %3572 = vmatpush.msra.mxu2 %v3128_v27 }
 0x422   : > { %4601 = vmatmul.msk.f32.gmra.mxu0 %vm572_vm1, %v7480_v59  ;;  %3573 = vmatpush.msra.mxu2 %v3126_v54  ;;  %v7501_v1 = vpop.f32.mrf.mxu1 }
 0x423   : > { %9590 = vst [vmem:[#allocation207_spill] sm:$0xff] %v7501_v1  ;;  %4840 = vmatmul.msk.f32.gmra.mxu1 %vm572_vm1, %v7255_v28  ;;  %v3112_v28 = vmax.f32 %v1657_v44, 0.0  ;;  %v7612_v1 = vld [vmem:[%s5221_s25 + $0x460] sm:$0xff] }
 0x424   : > { %3574 = vmatpush.msra.mxu2 %v3124_v48 }
 0x426   : > { %3575 = vmatpush.msra.mxu2 %v3122_v62 }
 0x427   : > { %v7496_v14 = vpop.f32.mrf.mxu0 }
 0x428   : > { %3576 = vmatpush.msra.mxu2 %v3120_v33 }
 0x42a   : > { %4602 = vmatmul.msk.f32.gmra.mxu0 %vm572_vm1, %v7499_v57  ;;  %3577 = vmatpush.msra.mxu2 %v3118_v13  ;;  %v7518_v27 = vpop.f32.mrf.mxu1 }
 0x42b   : > { %9591 = vst [vmem:[#allocation208_spill] sm:$0xff] %v7518_v27  ;;  %4841 = vmatmul.msk.f32.gmra.mxu1 %vm572_vm1, %v7271_v37 }
 0x42c   : > { %3578 = vmatpush.msra.mxu2 %v3116_v39  ;;  %v7580_v39 = vld [vmem:[%s5221_s25 + $0x448] sm:$0xff] }
 0x42e   : > { %3579 = vmatpush.msra.mxu2 %v3114_v6  ;;  %v7589_v6 = vld [vmem:[%s5221_s25 + $0x450] sm:$0xff] }
 0x42f   : > { %v7513_v36 = vpop.f32.mrf.mxu0 }
 0x430   : > { %3580 = vmatpush.msra.mxu2 %v3112_v28 }
 0x432   : > { %4603 = vmatmul.msk.f32.gmra.mxu0 %vm572_vm1, %v7516_v45  ;;  %3581 = vmatpush.msra.mxu2 %v3110_v22  ;;  %v7529_v54 = vpop.f32.mrf.mxu1  ;;  %v7598_v22 = vld [vmem:[%s5221_s25 + $0x458] sm:$0xff] }
 0x433   : > { %9592 = vst [vmem:[#allocation209_spill] sm:$0xff] %v7529_v54  ;;  %4842 = vmatmul.msk.f32.gmra.mxu1 %vm572_vm1, %v7288_v38  ;;  %v7549_v38 = vld [vmem:[%s5221_s25 + $0x430] sm:$0xff] }
 0x434   : > { %v7630_v54 = vld [vmem:[%s5221_s25 + $0x470] sm:$0xff] }
 0x437   : > { %v7524_v34 = vpop.f32.mrf.mxu0 }
 0x43a   : > { %4604 = vmatmul.msk.f32.gmra.mxu0 %vm572_vm1, %v7527_v24  ;;  %v7540_v48 = vpop.f32.mrf.mxu1 }
 0x43b   : > { %9593 = vst [vmem:[#allocation210_spill] sm:$0xff] %v7540_v48  ;;  %4843 = vmatmul.msk.f32.gmra.mxu1 %vm572_vm1, %v7307_v5  ;;  %v7560_v5 = vld [vmem:[%s5221_s25 + $0x438] sm:$0xff] }
 0x43f   : > { %v7535_v37 = vpop.f32.mrf.mxu0 }
 0x442   : > { %4605 = vmatmul.msk.f32.gmra.mxu0 %vm572_vm1, %v7538_v40  ;;  %v7551_v62 = vpop.f32.mrf.mxu1 }
 0x443   : > { %9594 = vst [vmem:[#allocation211_spill] sm:$0xff] %v7551_v62  ;;  %4844 = vmatmul.msk.f32.gmra.mxu1 %vm572_vm1, %v7324_v19  ;;  %v7571_v19 = vld [vmem:[%s5221_s25 + $0x440] sm:$0xff] }
 0x447   : > { %v7546_v35 = vpop.f32.mrf.mxu0 }
 0x44a   : > { %4606 = vmatmul.msk.f32.gmra.mxu0 %vm572_vm1, %v7549_v38  ;;  %v7562_v33 = vpop.f32.mrf.mxu1 }
 0x44b   : > { %9595 = vst [vmem:[#allocation212_spill] sm:$0xff] %v7562_v33  ;;  %4845 = vmatmul.msk.f32.gmra.mxu1 %vm572_vm1, %v7335_v17 }
 0x44f   : > { %v7557_v51 = vpop.f32.mrf.mxu0 }
 0x452   : > { %4607 = vmatmul.msk.f32.gmra.mxu0 %vm572_vm1, %v7560_v5  ;;  %v7573_v13 = vpop.f32.mrf.mxu1 }
 0x453   : > { %9596 = vst [vmem:[#allocation213_spill] sm:$0xff] %v7573_v13  ;;  %4846 = vmatmul.msk.f32.gmra.mxu1 %vm572_vm1, %v7346_v18 }
 0x457   : > { %v7568_v15 = vpop.f32.mrf.mxu0 }
 0x45a   : > { %4608 = vmatmul.msk.f32.gmra.mxu0 %vm572_vm1, %v7571_v19  ;;  %v7582_v17 = vpop.f32.mrf.mxu1 }
 0x45b   : > { %9597 = vst [vmem:[#allocation214_spill] sm:$0xff] %v7582_v17  ;;  %4847 = vmatmul.msk.f32.gmra.mxu1 %vm572_vm1, %v7357_v25 }
 0x45f   : > { %v1728_v44 = vpop.f32.mrf.mxu0 }
 0x462   : > { %4609 = vmatmul.msk.f32.gmra.mxu0 %vm572_vm1, %v7580_v39  ;;  %v7591_v28 = vpop.f32.mrf.mxu1 }
 0x463   : > { %9598 = vst [vmem:[#allocation215_spill] sm:$0xff] %v7591_v28  ;;  %4848 = vmatmul.msk.f32.gmra.mxu1 %vm572_vm1, %v7368_v16  ;;  %v3433_v16 = vld [vmem:[%s9378_s1 + $0x18] sm:$0xff] }
 0x464   : > { %3522 = vmatmul.f32.vlgmr.msra.gmra.mxu3 %v3433_v16 }
 0x467   : > { %v1731_v26 = vpop.f32.mrf.mxu0 }
 0x46a   : > { %4610 = vmatmul.msk.f32.gmra.mxu0 %vm572_vm1, %v7589_v6  ;;  %v7600_v25 = vpop.f32.mrf.mxu1 }
 0x46b   : > { %9599 = vst [vmem:[#allocation216_spill] sm:$0xff] %v7600_v25  ;;  %4849 = vmatmul.msk.f32.gmra.mxu1 %vm572_vm1, %v7379_v0  ;;  %v7621_v25 = vld [vmem:[%s5221_s25 + $0x468] sm:$0xff] }
 0x46f   : > { %v1734_v18 = vpop.f32.mrf.mxu0 }
 0x470   : > { %v1735_v17 = vadd.f32 %v1734_v18, %v5609_v20  ;;  %v1723_v18 = vadd.f32 %v7557_v51, %v5609_v20  ;;  %v1717_v51 = vadd.f32 %v7535_v37, %v5609_v20 }
 0x472   : > { %4611 = vmatmul.msk.f32.gmra.mxu0 %vm572_vm1, %v7598_v22  ;;  %v7614_v27 = vpop.f32.mrf.mxu1 }
 0x473   : > { %9601 = vst [vmem:[#allocation218_spill] sm:$0xff] %v7614_v27  ;;  %4850 = vmatmul.msk.f32.gmra.mxu1 %vm572_vm1, %v7388_v61 }
 0x477   : > { %v1737_v52 = vpop.f32.mrf.mxu0 }
 0x47a   : > { %4612 = vmatmul.msk.f32.gmra.mxu0 %vm572_vm1, %v7612_v1  ;;  %v7623_v7 = vpop.f32.mrf.mxu1 }
 0x47b   : > { %9602 = vst [vmem:[#allocation219_spill] sm:$0xff] %v7623_v7  ;;  %4851 = vmatmul.msk.f32.gmra.mxu1 %vm572_vm1, %v7397_v11  ;;  %v7639_v7 = vld [vmem:[%s5221_s25 + $0x478] sm:$0xff] }
 0x47f   : > { %v1740_v0 = vpop.f32.mrf.mxu0 }
 0x482   : > { %4613 = vmatmul.msk.f32.gmra.mxu0 %vm572_vm1, %v7621_v25  ;;  %v7632_v27 = vpop.f32.mrf.mxu1 }
 0x483   : > { %9603 = vst [vmem:[#allocation220_spill] sm:$0xff] %v7632_v27  ;;  %4852 = vmatmul.msk.f32.gmra.mxu1 %vm572_vm1, %v7406_v56  ;;  %v1741_v27 = vadd.f32 %v1740_v0, %v5609_v20  ;;  %v1738_v56 = vadd.f32 %v1737_v52, %v5609_v20  ;;  %v1729_v52 = vadd.f32 %v1728_v44, %v5609_v20 }
 0x485   : > { %v3166_v0 = vmax.f32 %v1738_v56, 0.0 }
 0x487   : > { %v1743_v16 = vpop.f32.mrf.mxu0 }
 0x488   : > { %v1744_v11 = vadd.f32 %v1743_v16, %v5609_v20 }
 0x48a   : > { %4614 = vmatmul.msk.f32.gmra.mxu0 %vm572_vm1, %v7630_v54  ;;  %v7641_v48 = vpop.f32.mrf.mxu1  ;;  %v3170_v13 = vmax.f32 %v1744_v11, 0.0  ;;  %v1714_v11 = vadd.f32 %v7524_v34, %v5609_v20  ;;  %v1708_v34 = vadd.f32 %v7496_v14, %v5609_v20 }
 0x48b   : > { %9604 = vst [vmem:[#allocation221_spill] sm:$0xff] %v7641_v48  ;;  %4853 = vmatmul.msk.f32.gmra.mxu1 %vm572_vm1, %v7420_v49  ;;  %v3168_v48 = vmax.f32 %v1741_v27, 0.0  ;;  %v7655_v49 = vld [vmem:[%s5221_s25 + $0x480] sm:$0xff]  ;;  %v1726_v27 = vadd.f32 %v7568_v15, %v5609_v20  ;;  %v1720_v15 = vadd.f32 %v7546_v35, %v5609_v20 }
 0x48d   : > { %v3154_v56 = vmax.f32 %v1720_v15, 0.0  ;;  %v7719_v15 = vld [vmem:[%s5221_s25 + $0x4a0] sm:$0xff] }
 0x48f   : > { %v1746_v61 = vpop.f32.mrf.mxu0 }
 0x490   : > { %v1747_v62 = vadd.f32 %v1746_v61, %v5609_v20  ;;  %v3156_v61 = vmax.f32 %v1723_v18, 0.0  ;;  %v7708_v18 = vld [vmem:[%s5221_s25 + $0x498] sm:$0xff] }
 0x492   : > { %v3172_v33 = vmax.f32 %v1747_v62, 0.0  ;;  %4615 = vmatmul.msk.f32.gmra.mxu0 %vm572_vm1, %v7639_v7  ;;  %v7657_v16 = vpop.f32.mrf.mxu1  ;;  %v1732_v62 = vadd.f32 %v1731_v26, %v5609_v20 }
 0x493   : > { %9605 = vst [vmem:[#allocation222_spill] sm:$0xff] %v7657_v16  ;;  %4854 = vmatmul.msk.f32.gmra.mxu1 %vm572_vm1, %v7429_v23  ;;  %v3160_v23 = vmax.f32 %v1729_v52, 0.0  ;;  %v3150_v52 = vmax.f32 %v1714_v11, 0.0  ;;  %v7798_v16 = vpop.f32.mrf.mxu2 }
 0x494   : > { %3586 = vmatpush.msra.mxu3 %v3172_v33  ;;  %v3164_v33 = vmax.f32 %v1735_v17, 0.0  ;;  %v3158_v17 = vmax.f32 %v1726_v27, 0.0  ;;  %v1702_v27 = vadd.f32 %v7460_v12, %v5609_v20 }
 0x496   : > { %3587 = vmatpush.msra.mxu3 %v3170_v13  ;;  %v3162_v13 = vmax.f32 %v1732_v62, 0.0  ;;  %v3152_v62 = vmax.f32 %v1717_v51, 0.0  ;;  %v7730_v51 = vld [vmem:[%s5221_s25 + $0x4a8] sm:$0xff] }
 0x497   : > { %v7652_v28 = vpop.f32.mrf.mxu0 }
 0x498   : > { %3588 = vmatpush.msra.mxu3 %v3168_v48  ;;  %v7672_v48 = vld [vmem:[%s5221_s25 + $0x488] sm:$0xff] }
 0x49a   : > { %4616 = vmatmul.msk.f32.gmra.mxu0 %vm572_vm1, %v7655_v49  ;;  %3589 = vmatpush.msra.mxu3 %v3166_v0  ;;  %v7674_v44 = vpop.f32.mrf.mxu1  ;;  %v7691_v0 = vld [vmem:[%s5221_s25 + $0x490] sm:$0xff] }
 0x49b   : > { %9606 = vst [vmem:[#allocation223_spill] sm:$0xff] %v7674_v44  ;;  %4855 = vmatmul.msk.f32.gmra.mxu1 %vm572_vm1, %v7438_v9  ;;  %v1711_v9 = vadd.f32 %v7513_v36, %v5609_v20  ;;  %v1705_v36 = vadd.f32 %v7477_v29, %v5609_v20  ;;  %v3142_v29 = vmax.f32 %v1702_v27, 0.0 }
 0x49c   : > { %3590 = vmatpush.msra.mxu3 %v3164_v33 }
 0x49d   : > { %v3148_v33 = vmax.f32 %v1711_v9, 0.0 }
 0x49e   : > { %3591 = vmatpush.msra.mxu3 %v3162_v13  ;;  %v3146_v13 = vmax.f32 %v1708_v34, 0.0 }
 0x49f   : > { %v7669_v26 = vpop.f32.mrf.mxu0 }
 0x4a0   : > { %3592 = vmatpush.msra.mxu3 %v3160_v23 }
 0x4a2   : > { %4617 = vmatmul.msk.f32.gmra.mxu0 %vm572_vm1, %v7672_v48  ;;  %3593 = vmatpush.msra.mxu3 %v3158_v17  ;;  %v7693_v37 = vpop.f32.mrf.mxu1 }
 0x4a3   : > { %9607 = vst [vmem:[#allocation224_spill] sm:$0xff] %v7693_v37  ;;  %4856 = vmatmul.msk.f32.gmra.mxu1 %vm572_vm1, %v7447_v8  ;;  %v3144_v8 = vmax.f32 %v1705_v36, 0.0  ;;  %v7804_v37 = vld [vmem:[%s5221_s25 + $0x4e0] sm:$0xff] }
 0x4a4   : > { %3594 = vmatpush.msra.mxu3 %v3156_v61 }
 0x4a6   : > { %3595 = vmatpush.msra.mxu3 %v3154_v56 }
 0x4a7   : > { %v7688_v35 = vpop.f32.mrf.mxu0 }
 0x4a8   : > { %3596 = vmatpush.msra.mxu3 %v3152_v62 }
 0x4aa   : > { %4618 = vmatmul.msk.f32.gmra.mxu0 %vm572_vm1, %v7691_v0  ;;  %3597 = vmatpush.msra.mxu3 %v3150_v52  ;;  %v7710_v23 = vpop.f32.mrf.mxu1 }
 0x4ab   : > { %9608 = vst [vmem:[#allocation225_spill] sm:$0xff] %v7710_v23  ;;  %4857 = vmatmul.msk.f32.gmra.mxu1 %vm572_vm1, %v7463_v32 }
 0x4ac   : > { %3598 = vmatpush.msra.mxu3 %v3148_v33  ;;  %v7772_v33 = vld [vmem:[%s5221_s25 + $0x4c8] sm:$0xff] }
 0x4ae   : > { %3599 = vmatpush.msra.mxu3 %v3146_v13  ;;  %v7781_v13 = vld [vmem:[%s5221_s25 + $0x4d0] sm:$0xff] }
 0x4af   : > { %v7705_v14 = vpop.f32.mrf.mxu0 }
 0x4b0   : > { %3600 = vmatpush.msra.mxu3 %v3144_v8 }
 0x4b2   : > { %4619 = vmatmul.msk.f32.gmra.mxu0 %vm572_vm1, %v7708_v18  ;;  %3601 = vmatpush.msra.mxu3 %v3142_v29  ;;  %v7721_v17 = vpop.f32.mrf.mxu1  ;;  %v7790_v29 = vld [vmem:[%s5221_s25 + $0x4d8] sm:$0xff] }
 0x4b3   : > { %9609 = vst [vmem:[#allocation226_spill] sm:$0xff] %v7721_v17  ;;  %4858 = vmatmul.msk.f32.gmra.mxu1 %vm572_vm1, %v7480_v59  ;;  %v7741_v59 = vld [vmem:[%s5221_s25 + $0x4b0] sm:$0xff]  ;;  %v7813_v17 = vld [vmem:[%s5221_s25 + $0x4e8] sm:$0xff] }
 0x4b7   : > { %v7716_v12 = vpop.f32.mrf.mxu0 }
 0x4ba   : > { %4620 = vmatmul.msk.f32.gmra.mxu0 %vm572_vm1, %v7719_v15  ;;  %v7732_v61 = vpop.f32.mrf.mxu1 }
 0x4bb   : > { %9610 = vst [vmem:[#allocation227_spill] sm:$0xff] %v7732_v61  ;;  %4859 = vmatmul.msk.f32.gmra.mxu1 %vm572_vm1, %v7499_v57  ;;  %v7752_v57 = vld [vmem:[%s5221_s25 + $0x4b8] sm:$0xff]  ;;  %v7822_v61 = vld [vmem:[%s5221_s25 + $0x4f0] sm:$0xff] }
 0x4bf   : > { %v7727_v32 = vpop.f32.mrf.mxu0 }
 0x4c2   : > { %4621 = vmatmul.msk.f32.gmra.mxu0 %vm572_vm1, %v7730_v51  ;;  %v7743_v56 = vpop.f32.mrf.mxu1 }
 0x4c3   : > { %9611 = vst [vmem:[#allocation228_spill] sm:$0xff] %v7743_v56  ;;  %4860 = vmatmul.msk.f32.gmra.mxu1 %vm572_vm1, %v7516_v45  ;;  %v7763_v45 = vld [vmem:[%s5221_s25 + $0x4c0] sm:$0xff]  ;;  %v7831_v56 = vld [vmem:[%s5221_s25 + $0x4f8] sm:$0xff] }
 0x4c7   : > { %v7738_v11 = vpop.f32.mrf.mxu0 }
 0x4ca   : > { %4622 = vmatmul.msk.f32.gmra.mxu0 %vm572_vm1, %v7741_v59  ;;  %v7754_v62 = vpop.f32.mrf.mxu1 }
 0x4cb   : > { %9612 = vst [vmem:[#allocation229_spill] sm:$0xff] %v7754_v62  ;;  %4861 = vmatmul.msk.f32.gmra.mxu1 %vm572_vm1, %v7527_v24 }
 0x4cf   : > { %v7749_v9 = vpop.f32.mrf.mxu0 }
 0x4d2   : > { %4623 = vmatmul.msk.f32.gmra.mxu0 %vm572_vm1, %v7752_v57  ;;  %v7765_v52 = vpop.f32.mrf.mxu1 }
 0x4d3   : > { %9613 = vst [vmem:[#allocation230_spill] sm:$0xff] %v7765_v52  ;;  %4862 = vmatmul.msk.f32.gmra.mxu1 %vm572_vm1, %v7538_v40 }
 0x4d7   : > { %v7760_v34 = vpop.f32.mrf.mxu0 }
 0x4da   : > { %4624 = vmatmul.msk.f32.gmra.mxu0 %vm572_vm1, %v7763_v45  ;;  %v7774_v24 = vpop.f32.mrf.mxu1 }
 0x4db   : > { %9614 = vst [vmem:[#allocation231_spill] sm:$0xff] %v7774_v24  ;;  %4863 = vmatmul.msk.f32.gmra.mxu1 %vm572_vm1, %v7549_v38  ;;  %v7845_v24 = vpop.f32.mrf.mxu2 }
 0x4df   : > { %v1776_v36 = vpop.f32.mrf.mxu0 }
 0x4e2   : > { %4625 = vmatmul.msk.f32.gmra.mxu0 %vm572_vm1, %v7772_v33  ;;  %v7783_v8 = vpop.f32.mrf.mxu1 }
 0x4e3   : > { %9615 = vst [vmem:[#allocation232_spill] sm:$0xff] %v7783_v8  ;;  %4864 = vmatmul.msk.f32.gmra.mxu1 %vm572_vm1, %v7560_v5  ;;  %v3434_v5 = vld [vmem:[%s9378_s1 + $0x20] sm:$0xff] }
 0x4e4   : > { %3542 = vmatmul.f32.vlgmr.msrb.gmra.mxu2 %v3434_v5 }
 0x4e7   : > { %v1779_v27 = vpop.f32.mrf.mxu0 }
 0x4ea   : > { %4626 = vmatmul.msk.f32.gmra.mxu0 %vm572_vm1, %v7781_v13  ;;  %v7792_v38 = vpop.f32.mrf.mxu1 }
 0x4eb   : > { %9616 = vst [vmem:[#allocation233_spill] sm:$0xff] %v7792_v38  ;;  %4865 = vmatmul.msk.f32.gmra.mxu1 %vm572_vm1, %v7571_v19 }
 0x4ef   : > { %v1782_v40 = vpop.f32.mrf.mxu0 }
 0x4f2   : > { %4627 = vmatmul.msk.f32.gmra.mxu0 %vm572_vm1, %v7790_v29  ;;  %v7806_v23 = vpop.f32.mrf.mxu1 }
 0x4f3   : > { %9617 = vst [vmem:[#allocation234_spill] sm:$0xff] %v7806_v23  ;;  %4866 = vmatmul.msk.f32.gmra.mxu1 %vm572_vm1, %v7580_v39 }
 0x4f7   : > { %v1785_v44 = vpop.f32.mrf.mxu0 }
 0x4fa   : > { %4628 = vmatmul.msk.f32.gmra.mxu0 %vm572_vm1, %v7804_v37  ;;  %v7815_v38 = vpop.f32.mrf.mxu1 }
 0x4fb   : > { %9618 = vst [vmem:[#allocation235_spill] sm:$0xff] %v7815_v38  ;;  %4867 = vmatmul.msk.f32.gmra.mxu1 %vm572_vm1, %v7589_v6 }
 0x4ff   : > { %v1788_v19 = vpop.f32.mrf.mxu0 }
 0x502   : > { %4629 = vmatmul.msk.f32.gmra.mxu0 %vm572_vm1, %v7813_v17  ;;  %v7824_v23 = vpop.f32.mrf.mxu1 }
 0x503   : > { %9619 = vst [vmem:[#allocation236_spill] sm:$0xff] %v7824_v23  ;;  %4868 = vmatmul.msk.f32.gmra.mxu1 %vm572_vm1, %v7598_v22  ;;  %v1789_v23 = vadd.f32 %v1788_v19, %v5609_v20  ;;  %v3436_v22 = vld [vmem:[%s9378_s1 + $0x30] sm:$0xff] }
 0x504   : > { %3582 = vmatmul.f32.vlgmr.msra.gmra.mxu2 %v3436_v22  ;;  %v1780_v22 = vadd.f32 %v1779_v27, %v5609_v20 }
 0x507   : > { %v1791_v5 = vpop.f32.mrf.mxu0 }
 0x508   : > { %v1792_v6 = vadd.f32 %v1791_v5, %v5609_v20  ;;  %v1783_v5 = vadd.f32 %v1782_v40, %v5609_v20  ;;  %v3194_v40 = vmax.f32 %v1780_v22, 0.0 }
 0x50a   : > { %4630 = vmatmul.msk.f32.gmra.mxu0 %vm572_vm1, %v7822_v61  ;;  %v7833_v38 = vpop.f32.mrf.mxu1 }
 0x50b   : > { %9620 = vst [vmem:[#allocation237_spill] sm:$0xff] %v7833_v38  ;;  %4869 = vmatmul.msk.f32.gmra.mxu1 %vm572_vm1, %v7612_v1  ;;  %v1786_v1 = vadd.f32 %v1785_v44, %v5609_v20  ;;  %v3202_v38 = vmax.f32 %v1792_v6, 0.0  ;;  %v1777_v44 = vadd.f32 %v1776_v36, %v5609_v20  ;;  %v7869_v6 = vld [vmem:[%s5221_s25 + $0x508] sm:$0xff] }
 0x50d   : > { %v3198_v58 = vmax.f32 %v1786_v1, 0.0 }
 0x50f   : > { %v1794_v39 = vpop.f32.mrf.mxu0 }
 0x510   : > { %v1795_v62 = vadd.f32 %v1794_v39, %v5609_v20  ;;  %v3200_v39 = vmax.f32 %v1789_v23, 0.0  ;;  %v1774_v23 = vadd.f32 %v7760_v34, %v5609_v20 }
 0x512   : > { %v3204_v52 = vmax.f32 %v1795_v62, 0.0  ;;  %4631 = vmatmul.msk.f32.gmra.mxu0 %vm572_vm1, %v7831_v56  ;;  %v7852_v62 = vld [vmem:[%s5221_s25 + $0x500] sm:$0xff]  ;;  %v7854_v8 = vpop.f32.mrf.mxu1  ;;  %v3190_v34 = vmax.f32 %v1774_v23, 0.0 }
 0x513   : > { %9621 = vst [vmem:[#allocation238_spill] sm:$0xff] %v7854_v8  ;;  %4870 = vmatmul.msk.f32.gmra.mxu1 %vm572_vm1, %v7621_v25  ;;  %v3192_v25 = vmax.f32 %v1777_v44, 0.0  ;;  %v7888_v44 = vld [vmem:[%s5221_s25 + $0x510] sm:$0xff] }
 0x514   : > { %3606 = vmatpush.msrb.mxu2 %v3204_v52  ;;  %v3196_v52 = vmax.f32 %v1783_v5, 0.0  ;;  %v1762_v5 = vadd.f32 %v7716_v12, %v5609_v20 }
 0x516   : > { %3607 = vmatpush.msrb.mxu2 %v3202_v38  ;;  %v1771_v38 = vadd.f32 %v7749_v9, %v5609_v20  ;;  %v1765_v9 = vadd.f32 %v7727_v32, %v5609_v20  ;;  %v3182_v12 = vmax.f32 %v1762_v5, 0.0 }
 0x517   : > { %v7849_v19 = vpop.f32.mrf.mxu0 }
 0x518   : > { %3608 = vmatpush.msrb.mxu2 %v3200_v39  ;;  %v3188_v1 = vmax.f32 %v1771_v38, 0.0  ;;  %v3184_v22 = vmax.f32 %v1765_v9, 0.0 }
 0x51a   : > { %4632 = vmatmul.msk.f32.gmra.mxu0 %vm572_vm1, %v7852_v62  ;;  %3609 = vmatpush.msrb.mxu2 %v3198_v58  ;;  %v7871_v36 = vpop.f32.mrf.mxu1  ;;  %v1768_v58 = vadd.f32 %v7738_v11, %v5609_v20 }
 0x51b   : > { %9622 = vst [vmem:[#allocation239_spill] sm:$0xff] %v7871_v36  ;;  %4871 = vmatmul.msk.f32.gmra.mxu1 %vm572_vm1, %v7630_v54  ;;  %v1759_v54 = vadd.f32 %v7705_v14, %v5609_v20  ;;  %v1753_v14 = vadd.f32 %v7669_v26, %v5609_v20  ;;  %v1888_v26 = vadd.f32 %v5668_v55, %v5609_v20  ;;  %v9625_v55 = vld [vmem:[#allocation9_spill] sm:$0xff] }
 0x51c   : > { %3610 = vmatpush.msrb.mxu2 %v3196_v52  ;;  %v3186_v39 = vmax.f32 %v1768_v58, 0.0  ;;  %v1756_v52 = vadd.f32 %v7688_v35, %v5609_v20  ;;  %v1891_v35 = vadd.f32 %v5694_v43, %v5609_v20  ;;  %v1885_v43 = vadd.f32 %v5642_v30, %v5609_v20 }
 0x51d   : > { %v3180_v23 = vmax.f32 %v1759_v54, 0.0  ;;  %v1882_v5 = vadd.f32 %v9625_v55, %v5609_v20  ;;  %v9626_v54 = vld [vmem:[#allocation8_spill] sm:$0xff] }
 0x51e   : > { %3611 = vmatpush.msrb.mxu2 %v3194_v40  ;;  %v1750_v40 = vadd.f32 %v7652_v28, %v5609_v20  ;;  %v3178_v38 = vmax.f32 %v1756_v52, 0.0 }
 0x51f   : > { %v7866_v27 = vpop.f32.mrf.mxu0 }
 0x520   : > { %3612 = vmatpush.msrb.mxu2 %v3192_v25  ;;  %v3176_v25 = vmax.f32 %v1753_v14, 0.0  ;;  %v3174_v28 = vmax.f32 %v1750_v40, 0.0  ;;  %v3262_v14 = vmax.f32 %v1882_v5, 0.0  ;;  %v7932_v40 = vld [vmem:[%s5221_s25 + $0x520] sm:$0xff] }
 0x522   : > { %4633 = vmatmul.msk.f32.gmra.mxu0 %vm572_vm1, %v7869_v6  ;;  %3613 = vmatpush.msrb.mxu2 %v3190_v34  ;;  %v7890_v32 = vpop.f32.mrf.mxu1  ;;  %v7911_v34 = vld [vmem:[%s5221_s25 + $0x518] sm:$0xff] }
 0x523   : > { %9623 = vst [vmem:[#allocation240_spill] sm:$0xff] %v7890_v32  ;;  %4872 = vmatmul.msk.f32.gmra.mxu1 %vm572_vm1, %v7639_v7  ;;  %v7902_v7 = vpop.f32.mrf.mxu2 }
 0x524   : > { %3614 = vmatpush.msrb.mxu2 %v3188_v1  ;;  %v3268_v1 = vmax.f32 %v1891_v35, 0.0  ;;  %v9629_v35 = vld [vmem:[#allocation6_spill] sm:$0xff] }
 0x526   : > { %3615 = vmatpush.msrb.mxu2 %v3186_v39  ;;  %v3266_v39 = vmax.f32 %v1888_v26, 0.0 }
 0x527   : > { %v7885_v11 = vpop.f32.mrf.mxu0 }
 0x528   : > { %3616 = vmatpush.msrb.mxu2 %v3184_v22  ;;  %v1879_v22 = vadd.f32 %v9626_v54, %v5609_v20 }
 0x52a   : > { %4634 = vmatmul.msk.f32.gmra.mxu0 %vm572_vm1, %v7888_v44  ;;  %3617 = vmatpush.msrb.mxu2 %v3182_v12  ;;  %v7913_v9 = vpop.f32.mrf.mxu1  ;;  %v9627_v12 = vld [vmem:[#allocation7_spill] sm:$0xff]  ;;  %v3260_v26 = vmax.f32 %v1879_v22, 0.0 }
 0x52b   : > { %9624 = vst [vmem:[#allocation241_spill] sm:$0xff] %v7913_v9  ;;  %4873 = vmatmul.msk.f32.gmra.mxu1 %vm572_vm1, %v7655_v49  ;;  %v3264_v49 = vmax.f32 %v1885_v43, 0.0  ;;  %v7925_v52 = vpop.f32.mrf.mxu2  ;;  %v1876_v30 = vadd.f32 %v9627_v12, %v5609_v20  ;;  %v7960_v12 = vld [vmem:[%s5221_s25 + $0x530] sm:$0xff] }
 0x52c   : > { %3618 = vmatpush.msrb.mxu2 %v3180_v23 }
 0x52e   : > { %3619 = vmatpush.msrb.mxu2 %v3178_v38 }
 0x52f   : > { %v7908_v58 = vpop.f32.mrf.mxu0 }
 0x530   : > { %3620 = vmatpush.msrb.mxu2 %v3176_v25  ;;  %v1873_v25 = vadd.f32 %v9629_v35, %v5609_v20  ;;  %v3435_v35 = vld [vmem:[%s9378_s1 + $0x28] sm:$0xff] }
 0x532   : > { %4635 = vmatmul.msk.f32.gmra.mxu0 %vm572_vm1, %v7911_v34  ;;  %3621 = vmatpush.msrb.mxu2 %v3174_v28  ;;  %v7934_v38 = vpop.f32.mrf.mxu1  ;;  %v9630_v28 = vld [vmem:[#allocation5_spill] sm:$0xff]  ;;  %v3256_v55 = vmax.f32 %v1873_v25, 0.0 }
 0x533   : > { %9628 = vst [vmem:[#allocation9_spill] sm:$0xff] %v7934_v38  ;;  %4874 = vmatmul.msk.f32.gmra.mxu1 %vm572_vm1, %v7672_v48  ;;  %v1870_v43 = vadd.f32 %v9630_v28, %v5609_v20  ;;  %v7947_v48 = vld [vmem:[%s5221_s25 + $0x528] sm:$0xff]  ;;  %v7953_v22 = vpop.f32.mrf.mxu2  ;;  %v3437_v28 = vld [vmem:[%s9378_s1 + $0x38] sm:$0xff] }
 0x534   : > { %3646 = vmatpush.msra.mxu2 %v3268_v1  ;;  %v3258_v1 = vmax.f32 %v1876_v30, 0.0 }
 0x535   : > { %v3254_v5 = vmax.f32 %v1870_v43, 0.0  ;;  %v3438_v43 = vld [vmem:[%s9378_s1 + $0x40] sm:$0xff] }
 0x536   : > { %3647 = vmatpush.msra.mxu2 %v3266_v39 }
 0x537   : > { %v7929_v23 = vpop.f32.mrf.mxu0  ;;  %3622 = vmatmul.f32.vlgmr.msrb.gmra.mxu2 %v3438_v43 }
 0x538   : > { %3648 = vmatpush.msra.mxu2 %v3264_v49 }
 0x53a   : > { %3649 = vmatpush.msra.mxu2 %v3262_v14  ;;  %4636 = vmatmul.msk.f32.gmra.mxu0 %vm572_vm1, %v7932_v40  ;;  %v7949_v54 = vpop.f32.mrf.mxu1  ;;  %v7966_v14 = vpop.f32.mrf.mxu3 }
 0x53b   : > { %9631 = vst [vmem:[#allocation8_spill] sm:$0xff] %v7949_v54  ;;  %4875 = vmatmul.msk.f32.gmra.mxu1 %vm572_vm1, %v7691_v0  ;;  %v7970_v0 = vpop.f32.mrf.mxu2  ;;  %3562 = vmatmul.f32.vlgmr.msrb.gmra.mxu3 %v3435_v35 }
 0x53c   : > { %3650 = vmatpush.msra.mxu2 %v3260_v26  ;;  %9633 = vst [vmem:[#allocation6_spill] sm:$0xff] %v7966_v14 }
 0x53e   : > { %3651 = vmatpush.msra.mxu2 %v3258_v1 }
 0x53f   : > { %v7944_v39 = vpop.f32.mrf.mxu0 }
 0x540   : > { %3652 = vmatpush.msra.mxu2 %v3256_v55 }
 0x542   : > { %3653 = vmatpush.msra.mxu2 %v3254_v5  ;;  %4637 = vmatmul.msk.f32.gmra.mxu0 %vm572_vm1, %v7947_v48  ;;  %v7962_v30 = vpop.f32.mrf.mxu1  ;;  %v7989_v1 = vpop.f32.mrf.mxu3 }
 0x543   : > { %9632 = vst [vmem:[#allocation7_spill] sm:$0xff] %v7962_v30  ;;  %4876 = vmatmul.msk.f32.gmra.mxu1 %vm572_vm1, %v7708_v18  ;;  %v5034_v18 = vld [vmem:[%s5221_s25 + $0x538] sm:$0xff]  ;;  %3602 = vmatmul.f32.vlgmr.msra.gmra.mxu3 %v3437_v28  ;;  %v7991_v55 = vpop.f32.mrf.mxu2 }
 0x544   : > { %9635 = vst [vmem:[#allocation242_spill] sm:$0xff] %v7989_v1 }
 0x547   : > { %v7957_v49 = vpop.f32.mrf.mxu0 }
 0x54a   : > { %4638 = vmatmul.msk.f32.gmra.mxu0 %vm572_vm1, %v7960_v12  ;;  %v7977_v26 = vpop.f32.mrf.mxu1 }
 0x54b   : > { %9634 = vst [vmem:[#allocation5_spill] sm:$0xff] %v7977_v26  ;;  %4877 = vmatmul.msk.f32.gmra.mxu1 %vm572_vm1, %v7719_v15  ;;  %v7997_v15 = vpop.f32.mrf.mxu2 }
 0x54f   : > { %v7975_v25 = vpop.f32.mrf.mxu0 }
 0x552   : > { %4639 = vmatmul.msk.f32.gmra.mxu0 %vm572_vm1, %v5034_v18  ;;  %v7993_v35 = vpop.f32.mrf.mxu1 }
 0x553   : > { %9636 = vst [vmem:[#allocation243_spill] sm:$0xff] %v7993_v35  ;;  %4878 = vmatmul.msk.f32.gmra.mxu1 %vm572_vm1, %v7730_v51  ;;  %v8007_v28 = vpop.f32.mrf.mxu2 }
 0x557   : > { %v1821_v5 = vpop.f32.mrf.mxu0 }
 0x55a   : > { %v7999_v14 = vpop.f32.mrf.mxu1 }
 0x55b   : > { %9637 = vst [vmem:[#allocation244_spill] sm:$0xff] %v7999_v14  ;;  %4879 = vmatmul.msk.f32.gmra.mxu1 %vm572_vm1, %v7741_v59  ;;  %v8013_v51 = vpop.f32.mrf.mxu2 }
 0x55f   : > { %v1824_v18 = vpop.f32.mrf.mxu0 }
 0x562   : > { %v8003_v1 = vpop.f32.mrf.mxu1 }
 0x563   : > { %9638 = vst [vmem:[#allocation245_spill] sm:$0xff] %v8003_v1  ;;  %4880 = vmatmul.msk.f32.gmra.mxu1 %vm572_vm1, %v7752_v57  ;;  %v8019_v59 = vpop.f32.mrf.mxu2 }
 0x567   : > { %v1827_v8 = vpop.f32.mrf.mxu0 }
 0x56a   : > { %v8009_v36 = vpop.f32.mrf.mxu1 }
 0x56b   : > { %9639 = vst [vmem:[#allocation246_spill] sm:$0xff] %v8009_v36  ;;  %4881 = vmatmul.msk.f32.gmra.mxu1 %vm572_vm1, %v7763_v45  ;;  %v8025_v36 = vpop.f32.mrf.mxu2 }
 0x56f   : > { %v1830_v43 = vpop.f32.mrf.mxu0 }
 0x572   : > { %v8015_v9 = vpop.f32.mrf.mxu1 }
 0x573   : > { %9640 = vst [vmem:[#allocation247_spill] sm:$0xff] %v8015_v9  ;;  %4882 = vmatmul.msk.f32.gmra.mxu1 %vm572_vm1, %v7772_v33  ;;  %v8037_v26 = vpop.f32.mrf.mxu2 }
 0x577   : > { %v1833_v32 = vpop.f32.mrf.mxu0 }
 0x57a   : > { %v8021_v57 = vpop.f32.mrf.mxu1 }
 0x57b   : > { %9641 = vst [vmem:[#allocation248_spill] sm:$0xff] %v8021_v57  ;;  %4883 = vmatmul.msk.f32.gmra.mxu1 %vm572_vm1, %v7781_v13 }
 0x57f   : > { %v1836_v38 = vpop.f32.mrf.mxu0 }
 0x580   : > { %v1837_v13 = vadd.f32 %v1836_v38, %v5609_v20  ;;  %v1825_v38 = vadd.f32 %v1824_v18, %v5609_v20 }
 0x582   : > { %v8027_v45 = vpop.f32.mrf.mxu1  ;;  %v3232_v1 = vmax.f32 %v1837_v13, 0.0 }
 0x583   : > { %9642 = vst [vmem:[#allocation249_spill] sm:$0xff] %v8027_v45  ;;  %4884 = vmatmul.msk.f32.gmra.mxu1 %vm572_vm1, %v7790_v29  ;;  %v1834_v45 = vadd.f32 %v1833_v32, %v5609_v20  ;;  %v1831_v29 = vadd.f32 %v1830_v43, %v5609_v20  ;;  %v1822_v43 = vadd.f32 %v1821_v5, %v5609_v20 }
 0x584   : > { %v1813_v5 = vadd.f32 %v7944_v39, %v5609_v20 }
 0x585   : > { %v3228_v32 = vmax.f32 %v1831_v29, 0.0 }
 0x587   : > { %v1839_v54 = vpop.f32.mrf.mxu0 }
 0x588   : > { %v1840_v33 = vadd.f32 %v1839_v54, %v5609_v20  ;;  %v3230_v54 = vmax.f32 %v1834_v45, 0.0  ;;  %v3222_v45 = vmax.f32 %v1822_v43, 0.0 }
 0x58a   : > { %v8031_v30 = vpop.f32.mrf.mxu1  ;;  %v3234_v14 = vmax.f32 %v1840_v33, 0.0 }
 0x58b   : > { %9643 = vst [vmem:[#allocation250_spill] sm:$0xff] %v8031_v30  ;;  %4885 = vmatmul.msk.f32.gmra.mxu1 %vm572_vm1, %v7804_v37  ;;  %v1828_v37 = vadd.f32 %v1827_v8, %v5609_v20  ;;  %v1819_v8 = vadd.f32 %v7975_v25, %v5609_v20  ;;  %v1810_v25 = vadd.f32 %v7929_v23, %v5609_v20 }
 0x58c   : > { %v1801_v23 = vadd.f32 %v7866_v27, %v5609_v20 }
 0x58d   : > { %v3220_v33 = vmax.f32 %v1819_v8, 0.0  ;;  %v3214_v39 = vmax.f32 %v1810_v25, 0.0 }
 0x58e   : > { %v3208_v8 = vmax.f32 %v1801_v23, 0.0  ;;  %v9650_v23 = vld [vmem:[#allocation29_spill] sm:$0xff] }
 0x58f   : > { %v1842_v9 = vpop.f32.mrf.mxu0 }
 0x590   : > { %v1843_v57 = vadd.f32 %v1842_v9, %v5609_v20 }
 0x592   : > { %v3236_v35 = vmax.f32 %v1843_v57, 0.0  ;;  %v8045_v9 = vpop.f32.mrf.mxu1  ;;  %v3224_v57 = vmax.f32 %v1825_v38, 0.0 }
 0x593   : > { %9644 = vst [vmem:[#allocation251_spill] sm:$0xff] %v8045_v9  ;;  %4886 = vmatmul.msk.f32.gmra.mxu1 %vm572_vm1, %v7813_v17  ;;  %v1816_v17 = vadd.f32 %v7957_v49, %v5609_v20  ;;  %v1807_v49 = vadd.f32 %v7908_v58, %v5609_v20  ;;  %v1798_v58 = vadd.f32 %v7849_v19, %v5609_v20  ;;  %v3439_v19 = vld [vmem:[%s9378_s1 + $0x48] sm:$0xff] }
 0x594   : > { %3626 = vmatpush.msrb.mxu3 %v3236_v35  ;;  %v8050_v35 = vpop.f32.mrf.mxu2 }
 0x595   : > { %v3218_v13 = vmax.f32 %v1816_v17, 0.0  ;;  %v3206_v27 = vmax.f32 %v1798_v58, 0.0 }
 0x596   : > { %3627 = vmatpush.msrb.mxu3 %v3234_v14  ;;  %v3226_v14 = vmax.f32 %v1828_v37, 0.0  ;;  %v3216_v37 = vmax.f32 %v1813_v5, 0.0 }
 0x597   : > { %v8042_v30 = vpop.f32.mrf.mxu0 }
 0x598   : > { %3628 = vmatpush.msrb.mxu3 %v3232_v1 }
 0x59a   : > { %3629 = vmatpush.msrb.mxu3 %v3230_v54  ;;  %v8059_v18 = vpop.f32.mrf.mxu1 }
 0x59b   : > { %4887 = vmatmul.msk.f32.gmra.mxu1 %vm572_vm1, %v7822_v61  ;;  %v1804_v61 = vadd.f32 %v7885_v11, %v5609_v20 }
 0x59c   : > { %3630 = vmatpush.msrb.mxu3 %v3228_v32  ;;  %v8067_v29 = vpop.f32.mrf.mxu2  ;;  %v3212_v32 = vmax.f32 %v1807_v49, 0.0  ;;  %v8100_v49 = vpop.f32.mrf.mxu3 }
 0x59d   : > { %v3210_v43 = vmax.f32 %v1804_v61, 0.0 }
 0x59e   : > { %3631 = vmatpush.msrb.mxu3 %v3226_v14  ;;  %v9645_v14 = vld [vmem:[#allocation41_spill] sm:$0xff] }
 0x59f   : > { %v8055_v1 = vpop.f32.mrf.mxu0  ;;  %v1939_v11 = vadd.f32 %v9645_v14, %v5609_v20  ;;  %9648 = vst [vmem:[#allocation41_spill] sm:$0xff] %v8100_v49 }
 0x5a0   : > { %3632 = vmatpush.msrb.mxu3 %v3224_v57 }
 0x5a2   : > { %3633 = vmatpush.msrb.mxu3 %v3222_v45  ;;  %v8075_v38 = vpop.f32.mrf.mxu1 }
 0x5a3   : > { %4888 = vmatmul.msk.f32.gmra.mxu1 %vm572_vm1, %v7831_v56  ;;  %v9646_v56 = vld [vmem:[#allocation38_spill] sm:$0xff] }
 0x5a4   : > { %3634 = vmatpush.msrb.mxu3 %v3220_v33  ;;  %v8085_v57 = vpop.f32.mrf.mxu2  ;;  %v1936_v45 = vadd.f32 %v9646_v56, %v5609_v20  ;;  %v9647_v33 = vld [vmem:[#allocation35_spill] sm:$0xff] }
 0x5a5   : > { %v1933_v25 = vadd.f32 %v9647_v33, %v5609_v20  ;;  %v9653_v33 = vld [vmem:[#allocation20_spill] sm:$0xff] }
 0x5a6   : > { %3635 = vmatpush.msrb.mxu3 %v3218_v13  ;;  %v3300_v13 = vmax.f32 %v1939_v11, 0.0 }
 0x5a7   : > { %v8071_v54 = vpop.f32.mrf.mxu0  ;;  %v3296_v58 = vmax.f32 %v1933_v25, 0.0  ;;  %v1918_v25 = vadd.f32 %v9653_v33, %v5609_v20 }
 0x5a8   : > { %3636 = vmatpush.msrb.mxu3 %v3216_v37  ;;  %v9649_v37 = vld [vmem:[#allocation32_spill] sm:$0xff] }
 0x5a9   : > { %v1930_v61 = vadd.f32 %v9649_v37, %v5609_v20  ;;  %v9654_v37 = vld [vmem:[#allocation17_spill] sm:$0xff] }
 0x5aa   : > { %3637 = vmatpush.msrb.mxu3 %v3214_v39  ;;  %v8094_v5 = vpop.f32.mrf.mxu1  ;;  %v3298_v39 = vmax.f32 %v1936_v45, 0.0  ;;  %v9652_v45 = vld [vmem:[#allocation23_spill] sm:$0xff] }
 0x5ab   : > { %4889 = vmatmul.msk.f32.gmra.mxu1 %vm572_vm1, %v7852_v62  ;;  %v9651_v62 = vld [vmem:[#allocation26_spill] sm:$0xff]  ;;  %v3294_v11 = vmax.f32 %v1930_v61, 0.0  ;;  %v1915_v61 = vadd.f32 %v9654_v37, %v5609_v20 }
 0x5ac   : > { %3638 = vmatpush.msrb.mxu3 %v3212_v32  ;;  %v1927_v32 = vadd.f32 %v9650_v23, %v5609_v20  ;;  %v1924_v14 = vadd.f32 %v9651_v62, %v5609_v20  ;;  %v8114_v56 = vpop.f32.mrf.mxu2  ;;  %v3286_v62 = vmax.f32 %v1918_v25, 0.0  ;;  %v9658_v25 = vld [vmem:[#allocation13_spill] sm:$0xff] }
 0x5ae   : > { %3639 = vmatpush.msrb.mxu3 %v3210_v43 }
 0x5af   : > { %v8087_v17 = vpop.f32.mrf.mxu0 }
 0x5b0   : > { %3640 = vmatpush.msrb.mxu3 %v3208_v8 }
 0x5b2   : > { %3641 = vmatpush.msrb.mxu3 %v3206_v27  ;;  %v8110_v8 = vpop.f32.mrf.mxu1  ;;  %v1921_v27 = vadd.f32 %v9652_v45, %v5609_v20 }
 0x5b3   : > { %3642 = vmatmul.f32.vlgmr.msrb.gmra.mxu3 %v3439_v19  ;;  %4890 = vmatmul.msk.f32.gmra.mxu1 %vm572_vm1, %v7869_v6  ;;  %v3292_v19 = vmax.f32 %v1927_v32, 0.0  ;;  %v9655_v6 = vld [vmem:[#allocation16_spill] sm:$0xff]  ;;  %v9656_v32 = vld [vmem:[#allocation15_spill] sm:$0xff] }
 0x5b4   : > { %3666 = vmatpush.msra.mxu3 %v3300_v13  ;;  %v3290_v13 = vmax.f32 %v1924_v14, 0.0  ;;  %v1909_v14 = vadd.f32 %v9656_v32, %v5609_v20  ;;  %v8130_v45 = vpop.f32.mrf.mxu2 }
 0x5b6   : > { %3667 = vmatpush.msra.mxu3 %v3298_v39  ;;  %v3288_v39 = vmax.f32 %v1921_v27, 0.0  ;;  %v9657_v27 = vld [vmem:[#allocation14_spill] sm:$0xff]  ;;  %v3280_v37 = vmax.f32 %v1909_v14, 0.0 }
 0x5b7   : > { %v8106_v43 = vpop.f32.mrf.mxu0 }
 0x5b8   : > { %3668 = vmatpush.msra.mxu3 %v3296_v58  ;;  %v1912_v58 = vadd.f32 %v9655_v6, %v5609_v20 }
 0x5ba   : > { %3669 = vmatpush.msra.mxu3 %v3294_v11  ;;  %v8124_v49 = vpop.f32.mrf.mxu1  ;;  %v3284_v11 = vmax.f32 %v1915_v61, 0.0  ;;  %v3282_v33 = vmax.f32 %v1912_v58, 0.0 }
 0x5bb   : > { %4891 = vmatmul.msk.f32.gmra.mxu1 %vm572_vm1, %v7888_v44  ;;  %v9659_v44 = vld [vmem:[#allocation12_spill] sm:$0xff] }
 0x5bc   : > { %3670 = vmatpush.msra.mxu3 %v3292_v19  ;;  %v1906_v19 = vadd.f32 %v9657_v27, %v5609_v20  ;;  %v1900_v6 = vadd.f32 %v9659_v44, %v5609_v20 }
 0x5be   : > { %3671 = vmatpush.msra.mxu3 %v3290_v13  ;;  %v1903_v13 = vadd.f32 %v9658_v25, %v5609_v20  ;;  %v3278_v9 = vmax.f32 %v1906_v19, 0.0  ;;  %v3274_v27 = vmax.f32 %v1900_v6, 0.0  ;;  %v8148_v19 = vpop.f32.mrf.mxu2 }
 0x5bf   : > { %v1860_v23 = vpop.f32.mrf.mxu0 }
 0x5c0   : > { %3672 = vmatpush.msra.mxu3 %v3288_v39  ;;  %v3276_v32 = vmax.f32 %v1903_v13, 0.0 }
 0x5c2   : > { %3673 = vmatpush.msra.mxu3 %v3286_v62  ;;  %v8138_v61 = vpop.f32.mrf.mxu1  ;;  %v9660_v62 = vld [vmem:[#allocation11_spill] sm:$0xff] }
 0x5c3   : > { %4892 = vmatmul.msk.f32.gmra.mxu1 %vm572_vm1, %v7911_v34  ;;  %v1897_v58 = vadd.f32 %v9660_v62, %v5609_v20  ;;  %v2032_v34 = vadd.f32 %v6739_v42, %v5609_v20  ;;  %v3441_v42 = vld [vmem:[%s9378_s1 + $0x58] sm:$0xff] }
 0x5c4   : > { %3674 = vmatpush.msra.mxu3 %v3284_v11  ;;  %v9661_v11 = vld [vmem:[#allocation10_spill] sm:$0xff] }
 0x5c5   : > { %v1894_v14 = vadd.f32 %v9661_v11, %v5609_v20  ;;  %v3272_v25 = vmax.f32 %v1897_v58, 0.0  ;;  %v1861_v58 = vadd.f32 %v1860_v23, %v5609_v20  ;;  %v3362_v11 = vmax.f32 %v2032_v34, 0.0 }
 0x5c6   : > { %3675 = vmatpush.msra.mxu3 %v3282_v33  ;;  %v2035_v33 = vadd.f32 %v6769_v31, %v5609_v20  ;;  %v2029_v31 = vadd.f32 %v6709_v47, %v5609_v20  ;;  %v1855_v23 = vadd.f32 %v8087_v17, %v5609_v20  ;;  %v9664_v17 = vld [vmem:[#allocation119_spill] sm:$0xff] }
 0x5c7   : > { %v1863_v39 = vpop.f32.mrf.mxu0  ;;  %v3270_v44 = vmax.f32 %v1894_v14, 0.0  ;;  %v8166_v14 = vpop.f32.mrf.mxu3 }
 0x5c8   : > { %3676 = vmatpush.msra.mxu3 %v3280_v37  ;;  %v1864_v13 = vadd.f32 %v1863_v39, %v5609_v20  ;;  %v3364_v6 = vmax.f32 %v2035_v33, 0.0  ;;  %v2026_v39 = vadd.f32 %v6681_v10, %v5609_v20  ;;  %v9663_v10 = vld [vmem:[#allocation122_spill] sm:$0xff] }
 0x5c9   : > { %v2020_v34 = vadd.f32 %v9663_v10, %v5609_v20 }
 0x5ca   : > { %3677 = vmatpush.msra.mxu3 %v3278_v9  ;;  %v8154_v62 = vpop.f32.mrf.mxu1  ;;  %v3250_v47 = vmax.f32 %v1864_v13, 0.0 }
 0x5cb   : > { %4893 = vmatmul.msk.f32.gmra.mxu1 %vm572_vm1, %v7932_v40  ;;  %v1858_v40 = vadd.f32 %v8106_v43, %v5609_v20  ;;  %v1852_v43 = vadd.f32 %v8071_v54, %v5609_v20 }
 0x5cc   : > { %3678 = vmatpush.msra.mxu3 %v3276_v32 }
 0x5cd   : > { %v3246_v13 = vmax.f32 %v1858_v40, 0.0  ;;  %v1846_v40 = vadd.f32 %v8042_v30, %v5609_v20 }
 0x5ce   : > { %3679 = vmatpush.msra.mxu3 %v3274_v27  ;;  %v9662_v27 = vld [vmem:[#allocation125_spill] sm:$0xff] }
 0x5cf   : > { %v1866_v37 = vpop.f32.mrf.mxu0  ;;  %v2023_v33 = vadd.f32 %v9662_v27, %v5609_v20 }
 0x5d0   : > { %v1867_v9 = vadd.f32 %v1866_v37, %v5609_v20  ;;  %3680 = vmatpush.msra.mxu3 %v3272_v25  ;;  %v3360_v25 = vmax.f32 %v2029_v31, 0.0  ;;  %v3248_v37 = vmax.f32 %v1861_v58, 0.0  ;;  %v2017_v31 = vadd.f32 %v9664_v17, %v5609_v20 }
 0x5d1   : > { %v1849_v58 = vadd.f32 %v8055_v1, %v5609_v20 }
 0x5d2   : > { %v3252_v32 = vmax.f32 %v1867_v9, 0.0  ;;  %3681 = vmatpush.msra.mxu3 %v3270_v44  ;;  %v3358_v44 = vmax.f32 %v2026_v39, 0.0  ;;  %v8176_v9 = vpop.f32.mrf.mxu2  ;;  %v9665_v39 = vld [vmem:[#allocation116_spill] sm:$0xff] }
 0x5d3   : > { %3682 = vmatmul.f32.vlgmr.msra.gmra.mxu3 %v3441_v42  ;;  %v3356_v42 = vmax.f32 %v2023_v33, 0.0  ;;  %v2014_v54 = vadd.f32 %v9665_v39, %v5609_v20  ;;  %v3352_v33 = vmax.f32 %v2017_v31, 0.0  ;;  %v9670_v31 = vld [vmem:[#allocation107_spill] sm:$0xff] }
 0x5d4   : > { %3706 = vmatpush.msrb.mxu3 %v3364_v6  ;;  %3654 = vmatpush.msra.mxu2 %v3252_v32  ;;  %v8180_v6 = vpop.f32.mrf.mxu1  ;;  %v3244_v32 = vmax.f32 %v1855_v23, 0.0  ;;  %v3240_v23 = vmax.f32 %v1849_v58, 0.0  ;;  %v9671_v39 = vld [vmem:[#allocation83_spill] sm:$0xff] }
 0x5d5   : > { %4894 = vmatmul.msk.f32.gmra.mxu1 %vm572_vm1, %v7947_v48  ;;  %v9666_v48 = vld [vmem:[#allocation113_spill] sm:$0xff] }
 0x5d6   : > { %3707 = vmatpush.msrb.mxu3 %v3362_v11  ;;  %3655 = vmatpush.msra.mxu2 %v3250_v47  ;;  %v3354_v11 = vmax.f32 %v2020_v34, 0.0  ;;  %v3242_v47 = vmax.f32 %v1852_v43, 0.0  ;;  %v2011_v27 = vadd.f32 %v9666_v48, %v5609_v20  ;;  %v3350_v34 = vmax.f32 %v2014_v54, 0.0 }
 0x5d7   : > { %v3238_v43 = vmax.f32 %v1846_v40, 0.0  ;;  %v1981_v54 = vadd.f32 %v9671_v39, %v5609_v20  ;;  %v9672_v40 = vld [vmem:[#allocation104_spill] sm:$0xff] }
 0x5d8   : > { %3708 = vmatpush.msrb.mxu3 %v3360_v25  ;;  %3656 = vmatpush.msra.mxu2 %v3248_v37  ;;  %v9667_v25 = vld [vmem:[#allocation89_spill] sm:$0xff]  ;;  %v9668_v37 = vld [vmem:[#allocation110_spill] sm:$0xff]  ;;  %v3348_v58 = vmax.f32 %v2011_v27, 0.0 }
 0x5d9   : > { %v1987_v1 = vadd.f32 %v9667_v25, %v5609_v20  ;;  %v2008_v10 = vadd.f32 %v9668_v37, %v5609_v20  ;;  %v9674_v27 = vld [vmem:[#allocation101_spill] sm:$0xff] }
 0x5da   : > { %3709 = vmatpush.msrb.mxu3 %v3358_v44  ;;  %3657 = vmatpush.msra.mxu2 %v3246_v13  ;;  %v9669_v44 = vld [vmem:[#allocation86_spill] sm:$0xff]  ;;  %v3440_v13 = vld [vmem:[%s9378_s1 + $0x50] sm:$0xff] }
 0x5db   : > { %v1984_v30 = vadd.f32 %v9669_v44, %v5609_v20  ;;  %v3346_v48 = vmax.f32 %v2008_v10, 0.0  ;;  %v3328_v44 = vmax.f32 %v1981_v54, 0.0  ;;  %v9679_v54 = vld [vmem:[#allocation71_spill] sm:$0xff] }
 0x5dc   : > { %3710 = vmatpush.msrb.mxu3 %v3356_v42  ;;  %3658 = vmatpush.msra.mxu2 %v3244_v32  ;;  %v8203_v17 = vpop.f32.mrf.mxu1  ;;  %v2005_v42 = vadd.f32 %v9670_v31, %v5609_v20  ;;  %v2127_v32 = vpop.f32.mrf.mxu2 }
 0x5dd   : > { %4895 = vmatmul.msk.f32.gmra.mxu1 %vm572_vm1, %v7960_v12  ;;  %v3330_v25 = vmax.f32 %v1984_v30, 0.0 }
 0x5de   : > { %3711 = vmatpush.msrb.mxu3 %v3354_v11  ;;  %3659 = vmatpush.msra.mxu2 %v3242_v47  ;;  %v3332_v11 = vmax.f32 %v1987_v1, 0.0  ;;  %v2002_v47 = vadd.f32 %v9672_v40, %v5609_v20  ;;  %v3344_v37 = vmax.f32 %v2005_v42, 0.0  ;;  %v9678_v42 = vld [vmem:[#allocation95_spill] sm:$0xff] }
 0x5e0   : > { %3712 = vmatpush.msrb.mxu3 %v3352_v33  ;;  %3660 = vmatpush.msra.mxu2 %v3240_v23  ;;  %v9673_v33 = vld [vmem:[#allocation80_spill] sm:$0xff]  ;;  %v1999_v23 = vadd.f32 %v9674_v27, %v5609_v20  ;;  %v3342_v31 = vmax.f32 %v2002_v47, 0.0 }
 0x5e1   : > { %v1978_v12 = vadd.f32 %v9673_v33, %v5609_v20  ;;  %v9680_v47 = vld [vmem:[#allocation92_spill] sm:$0xff] }
 0x5e2   : > { %3713 = vmatpush.msrb.mxu3 %v3350_v34  ;;  %3661 = vmatpush.msra.mxu2 %v3238_v43  ;;  %v9675_v34 = vld [vmem:[#allocation77_spill] sm:$0xff]  ;;  %v9676_v43 = vld [vmem:[#allocation98_spill] sm:$0xff]  ;;  %v3340_v40 = vmax.f32 %v1999_v23, 0.0 }
 0x5e3   : > { %3662 = vmatmul.f32.vlgmr.msra.gmra.mxu2 %v3440_v13  ;;  %v1975_v1 = vadd.f32 %v9675_v34, %v5609_v20  ;;  %v1996_v10 = vadd.f32 %v9676_v43, %v5609_v20  ;;  %v9677_v13 = vld [vmem:[#allocation74_spill] sm:$0xff]  ;;  %v3326_v30 = vmax.f32 %v1978_v12, 0.0  ;;  %v9681_v12 = vld [vmem:[#allocation68_spill] sm:$0xff] }
 0x5e4   : > { %3714 = vmatpush.msrb.mxu3 %v3348_v58  ;;  %3686 = vmatpush.msrb.mxu2 %v3332_v11  ;;  %v1972_v58 = vadd.f32 %v9677_v13, %v5609_v20  ;;  %v8223_v39 = vpop.f32.mrf.mxu1  ;;  %v1993_v11 = vadd.f32 %v9678_v42, %v5609_v20  ;;  %v1966_v34 = vadd.f32 %v9681_v12, %v5609_v20  ;;  %v9685_v12 = vld [vmem:[#allocation56_spill] sm:$0xff] }
 0x5e5   : > { %v3324_v33 = vmax.f32 %v1975_v1, 0.0  ;;  %v3338_v27 = vmax.f32 %v1996_v10, 0.0  ;;  %v9683_v10 = vld [vmem:[#allocation62_spill] sm:$0xff] }
 0x5e6   : > { %3715 = vmatpush.msrb.mxu3 %v3346_v48  ;;  %3687 = vmatpush.msrb.mxu2 %v3330_v25  ;;  %v1969_v48 = vadd.f32 %v9679_v54, %v5609_v20  ;;  %v1990_v25 = vadd.f32 %v9680_v47, %v5609_v20  ;;  %v3336_v23 = vmax.f32 %v1993_v11, 0.0  ;;  %v3318_v54 = vmax.f32 %v1966_v34, 0.0  ;;  %v3443_v11 = vld [vmem:[%s9378_s1 + $0x68] sm:$0xff] }
 0x5e7   : > { %v1954_v34 = vadd.f32 %v9685_v12, %v5609_v20 }
 0x5e8   : > { %3716 = vmatpush.msrb.mxu3 %v3344_v37  ;;  %3688 = vmatpush.msrb.mxu2 %v3328_v44  ;;  %v2130_v37 = vpop.f32.mrf.mxu2  ;;  %v3322_v44 = vmax.f32 %v1972_v58, 0.0  ;;  %v3320_v1 = vmax.f32 %v1969_v48, 0.0  ;;  %v3334_v42 = vmax.f32 %v1990_v25, 0.0  ;;  %v2125_v58 = vadd.f32 %v8176_v9, %v5609_v20  ;;  %v8250_v9 = vpop.f32.mrf.mxu3 }
 0x5e9   : > { %v2131_v43 = vadd.f32 %v2130_v37, %v5609_v20 }
 0x5ea   : > { %3717 = vmatpush.msrb.mxu3 %v3342_v31  ;;  %3689 = vmatpush.msrb.mxu2 %v3326_v30  ;;  %v9682_v31 = vld [vmem:[#allocation65_spill] sm:$0xff]  ;;  %v2128_v30 = vadd.f32 %v2127_v32, %v5609_v20  ;;  %v9684_v32 = vld [vmem:[#allocation59_spill] sm:$0xff] }
 0x5eb   : > { %v1963_v13 = vadd.f32 %v9682_v31, %v5609_v20  ;;  %v3428_v47 = vmax.f32 %v2131_v43, 0.0  ;;  %v1957_v48 = vadd.f32 %v9684_v32, %v5609_v20  ;;  %v2119_v43 = vadd.f32 %v8130_v45, %v5609_v20  ;;  %v9686_v31 = vld [vmem:[#allocation53_spill] sm:$0xff] }
 0x5ec   : > { %3718 = vmatpush.msrb.mxu3 %v3340_v40  ;;  %3690 = vmatpush.msrb.mxu2 %v3324_v33  ;;  %v1960_v40 = vadd.f32 %v9683_v10, %v5609_v20  ;;  %v8244_v33 = vpop.f32.mrf.mxu1  ;;  %v3426_v37 = vmax.f32 %v2128_v30, 0.0  ;;  %v2113_v45 = vadd.f32 %v8085_v57, %v5609_v20  ;;  %v2107_v57 = vadd.f32 %v8050_v35, %v5609_v20 }
 0x5ed   : > { %v3316_v25 = vmax.f32 %v1963_v13, 0.0  ;;  %v1951_v13 = vadd.f32 %v9686_v31, %v5609_v20  ;;  %v2080_v31 = vadd.f32 %v7953_v22, %v5609_v20  ;;  %v2101_v35 = vadd.f32 %v8025_v36, %v5609_v20 }
 0x5ee   : > { %3719 = vmatpush.msrb.mxu3 %v3338_v27  ;;  %3691 = vmatpush.msrb.mxu2 %v3322_v44  ;;  %v2122_v27 = vadd.f32 %v8148_v19, %v5609_v20  ;;  %v3314_v44 = vmax.f32 %v1960_v40, 0.0  ;;  %v3312_v19 = vmax.f32 %v1957_v48, 0.0  ;;  %v3310_v40 = vmax.f32 %v1954_v34, 0.0 }
 0x5ef   : > { %v3308_v32 = vmax.f32 %v1951_v13, 0.0  ;;  %v3416_v12 = vmax.f32 %v2113_v45, 0.0  ;;  %v3412_v13 = vmax.f32 %v2107_v57, 0.0  ;;  %v2074_v36 = vadd.f32 %v7902_v7, %v5609_v20 }
 0x5f0   : > { %3720 = vmatpush.msrb.mxu3 %v3336_v23  ;;  %3692 = vmatpush.msrb.mxu2 %v3320_v1  ;;  %v3424_v23 = vmax.f32 %v2125_v58, 0.0  ;;  %v2116_v1 = vadd.f32 %v8114_v56, %v5609_v20  ;;  %v3422_v30 = vmax.f32 %v2122_v27, 0.0  ;;  %v2110_v56 = vadd.f32 %v8067_v29, %v5609_v20 }
 0x5f1   : > { %v2104_v29 = vadd.f32 %v8037_v26, %v5609_v20  ;;  %v2077_v26 = vadd.f32 %v7925_v52, %v5609_v20  ;;  %v2071_v52 = vadd.f32 %v7845_v24, %v5609_v20  ;;  %v2068_v7 = vadd.f32 %v7798_v16, %v5609_v20  ;;  %v5035_v24 = vld [vmem:[%s9380_s3] sm:$0x3] }
 0x5f2   : > { %3721 = vmatpush.msrb.mxu3 %v3334_v42  ;;  %3693 = vmatpush.msrb.mxu2 %v3318_v54  ;;  %v9687_v42 = vld [vmem:[#allocation50_spill] sm:$0xff]  ;;  %v3420_v54 = vmax.f32 %v2119_v43, 0.0  ;;  %v3418_v48 = vmax.f32 %v2116_v1, 0.0  ;;  %v3414_v43 = vmax.f32 %v2110_v56, 0.0  ;;  %v2086_v16 = vadd.f32 %v7991_v55, %v5609_v20  ;;  %v9693_v55 = vld [vmem:[#allocation157_spill] sm:$0xff] }
 0x5f3   : > { %3722 = vmatmul.f32.vlgmr.msrb.gmra.mxu3 %v3443_v11  ;;  %v1948_v10 = vadd.f32 %v9687_v42, %v5609_v20  ;;  %v3410_v22 = vmax.f32 %v2104_v29, 0.0  ;;  %v3394_v42 = vmax.f32 %v2080_v31, 0.0  ;;  %v3392_v45 = vmax.f32 %v2077_v26, 0.0  ;;  %v9694_v31 = vld [vmem:[#allocation106_spill] sm:$0xff] }
 0x5f4   : > { %3746 = vmatpush.msra.mxu3 %v3428_v47  ;;  %3694 = vmatpush.msrb.mxu2 %v3316_v25  ;;  %v8264_v58 = vpop.f32.mrf.mxu1  ;;  %v9688_v47 = vld [vmem:[#allocation47_spill] sm:$0xff]  ;;  %v9689_v25 = vld [vmem:[#allocation44_spill] sm:$0xff]  ;;  %v3388_v56 = vmax.f32 %v2071_v52, 0.0  ;;  %v2059_v29 = vadd.f32 %v9693_v55, %v5609_v20  ;;  %v9695_v26 = vld [vmem:[#allocation154_spill] sm:$0xff] }
 0x5f5   : > { %v1945_v11 = vadd.f32 %v9688_v47, %v5609_v20  ;;  %v1942_v27 = vadd.f32 %v9689_v25, %v5609_v20  ;;  %v3390_v47 = vmax.f32 %v2074_v36, 0.0  ;;  %v9690_v25 = vld [vmem:[#allocation112_spill] sm:$0xff]  ;;  %v9704_v55 = vld [vmem:[#allocation91_spill] sm:$0xff] }
 0x5f6   : > { %3747 = vmatpush.msra.mxu3 %v3426_v37  ;;  %3695 = vmatpush.msrb.mxu2 %v3314_v44  ;;  %v3306_v37 = vmax.f32 %v1948_v10, 0.0  ;;  %v2083_v44 = vadd.f32 %v7970_v0, %v5609_v20  ;;  %v3442_v0 = vld [vmem:[%s9378_s1 + $0x60] sm:$0xff]  ;;  %v2095_v10 = vadd.f32 %v8013_v51, %v5609_v20  ;;  %v2089_v51 = vadd.f32 %v7997_v15, %v5609_v20 }
 0x5f7   : > { %v3304_v34 = vmax.f32 %v1945_v11, 0.0  ;;  %v3380_v52 = vmax.f32 %v2059_v29, 0.0 }
 0x5f8   : > { %3748 = vmatpush.msra.mxu3 %v3424_v23  ;;  %3696 = vmatpush.msrb.mxu2 %v3312_v19  ;;  %v3302_v23 = vmax.f32 %v1942_v27, 0.0  ;;  %v3396_v1 = vmax.f32 %v2083_v44, 0.0  ;;  %v3404_v11 = vmax.f32 %v2095_v10, 0.0  ;;  %v9697_v10 = vld [vmem:[#allocation151_spill] sm:$0xff] }
 0x5fa   : > { %3749 = vmatpush.msra.mxu3 %v3422_v30  ;;  %3697 = vmatpush.msrb.mxu2 %v3310_v40  ;;  %v2098_v30 = vadd.f32 %v8019_v59, %v5609_v20  ;;  %v3408_v40 = vmax.f32 %v2101_v35, 0.0  ;;  %v2092_v59 = vadd.f32 %v8007_v28, %v5609_v20  ;;  %v2065_v28 = vadd.f32 %v7414_v41, %v5609_v20  ;;  %v9692_v41 = vld [vmem:[#allocation109_spill] sm:$0xff] }
 0x5fc   : > { %3750 = vmatpush.msra.mxu3 %v3420_v54  ;;  %3698 = vmatpush.msrb.mxu2 %v3308_v32  ;;  %v8285_v19 = vpop.f32.mrf.mxu1  ;;  %v3406_v54 = vmax.f32 %v2098_v30, 0.0  ;;  %v8306_v32 = vperm.slane %v5035_v24, 1 }
 0x5fe   : > { %3751 = vmatpush.msra.mxu3 %v3418_v48  ;;  %3699 = vmatpush.msrb.mxu2 %v3306_v37  ;;  %v3402_v48 = vmax.f32 %v2092_v59, 0.0  ;;  %v2244_v27 = vadd.f32 %v9690_v25, %v8306_v32  ;;  %v9691_v37 = vld [vmem:[#allocation160_spill] sm:$0xff]  ;;  %v2241_v44 = vadd.f32 %v9692_v41, %v8306_v32  ;;  %v2238_v35 = vadd.f32 %v9694_v31, %v8306_v32 }
 0x5ff   : > { %v2062_v57 = vadd.f32 %v9691_v37, %v5609_v20  ;;  %v9698_v59 = vld [vmem:[#allocation100_spill] sm:$0xff]  ;;  %v9702_v37 = vld [vmem:[#allocation94_spill] sm:$0xff]  ;;  %v2223_v29 = vadd.f32 %v9704_v55, %v8306_v32 }
 0x600   : > { %3752 = vmatpush.msra.mxu3 %v3416_v12  ;;  %3700 = vmatpush.msrb.mxu2 %v3304_v34  ;;  %v3386_v12 = vmax.f32 %v2068_v7, 0.0  ;;  %v3400_v34 = vmax.f32 %v2089_v51, 0.0  ;;  %v2977_v7 = vmax.f32 %v2238_v35, 0.0 }
 0x601   : > { %v3382_v30 = vmax.f32 %v2062_v57, 0.0  ;;  %v2226_v57 = vadd.f32 %v9702_v37, %v8306_v32 }
 0x602   : > { %3753 = vmatpush.msra.mxu3 %v3414_v43  ;;  %3701 = vmatpush.msrb.mxu2 %v3302_v23  ;;  %v3384_v43 = vmax.f32 %v2065_v28, 0.0  ;;  %v3398_v23 = vmax.f32 %v2086_v16, 0.0  ;;  %v9700_v28 = vld [vmem:[#allocation97_spill] sm:$0xff] }
 0x603   : > { %3702 = vmatmul.f32.vlgmr.msrb.gmra.mxu2 %v3442_v0  ;;  %v3445_v0 = vld [vmem:[%s9378_s1 + $0x78] sm:$0xff] }
 0x604   : > { %3754 = vmatpush.msra.mxu3 %v3412_v13  ;;  %3726 = vmatpush.msra.mxu2 %v3396_v1  ;;  %v8312_v15 = vpop.f32.mrf.mxu1  ;;  %v2981_v13 = vmax.f32 %v2244_v27, 0.0  ;;  %v2056_v1 = vadd.f32 %v9695_v26, %v5609_v20  ;;  %v2969_v26 = vmax.f32 %v2226_v57, 0.0 }
 0x606   : > { %3755 = vmatpush.msra.mxu3 %v3410_v22  ;;  %3727 = vmatpush.msra.mxu2 %v3394_v42  ;;  %v9696_v22 = vld [vmem:[#allocation103_spill] sm:$0xff]  ;;  %v2979_v42 = vmax.f32 %v2241_v44, 0.0 }
 0x607   : > { %v2235_v36 = vadd.f32 %v9696_v22, %v8306_v32 }
 0x608   : > { %3756 = vmatpush.msra.mxu3 %v3408_v40  ;;  %3728 = vmatpush.msra.mxu2 %v3392_v45  ;;  %v2053_v40 = vadd.f32 %v9697_v10, %v5609_v20  ;;  %v8333_v45 = vpop.f32.mrf.mxu3  ;;  %v2967_v10 = vmax.f32 %v2223_v29, 0.0 }
 0x609   : > { %v2975_v16 = vmax.f32 %v2235_v36, 0.0  ;;  %v9708_v36 = vld [vmem:[#allocation85_spill] sm:$0xff] }
 0x60a   : > { %3757 = vmatpush.msra.mxu3 %v3406_v54  ;;  %3729 = vmatpush.msra.mxu2 %v3390_v47  ;;  %v2232_v54 = vadd.f32 %v9698_v59, %v8306_v32  ;;  %v9699_v47 = vld [vmem:[#allocation148_spill] sm:$0xff]  ;;  %v3376_v27 = vmax.f32 %v2053_v40, 0.0 }
 0x60b   : > { %v2050_v51 = vadd.f32 %v9699_v47, %v5609_v20  ;;  %v9709_v40 = vld [vmem:[#allocation64_spill] sm:$0xff] }
 0x60c   : > { %3758 = vmatpush.msra.mxu3 %v3404_v11  ;;  %3730 = vmatpush.msra.mxu2 %v3388_v56  ;;  %v3378_v11 = vmax.f32 %v2056_v1, 0.0  ;;  %v8339_v24 = vpop.f32.mrf.mxu1  ;;  %v2229_v56 = vadd.f32 %v9700_v28, %v8306_v32  ;;  %v9707_v1 = vld [vmem:[#allocation136_spill] sm:$0xff] }
 0x60d   : > { %v3374_v44 = vmax.f32 %v2050_v51, 0.0 }
 0x60e   : > { %3759 = vmatpush.msra.mxu3 %v3402_v48  ;;  %3731 = vmatpush.msra.mxu2 %v3386_v12  ;;  %v9701_v48 = vld [vmem:[#allocation145_spill] sm:$0xff]  ;;  %v2973_v12 = vmax.f32 %v2232_v54, 0.0 }
 0x60f   : > { %v2047_v25 = vadd.f32 %v9701_v48, %v5609_v20 }
 0x610   : > { %3760 = vmatpush.msra.mxu3 %v3400_v34  ;;  %3732 = vmatpush.msra.mxu2 %v3384_v43  ;;  %v9703_v34 = vld [vmem:[#allocation142_spill] sm:$0xff]  ;;  %v2971_v43 = vmax.f32 %v2229_v56, 0.0  ;;  %v3444_v56 = vld [vmem:[%s9378_s1 + $0x70] sm:$0xff] }
 0x611   : > { %v2044_v41 = vadd.f32 %v9703_v34, %v5609_v20  ;;  %v3372_v35 = vmax.f32 %v2047_v25, 0.0 }
 0x612   : > { %3761 = vmatpush.msra.mxu3 %v3398_v23  ;;  %3733 = vmatpush.msra.mxu2 %v3382_v30  ;;  %v9705_v23 = vld [vmem:[#allocation139_spill] sm:$0xff]  ;;  %v2038_v30 = vadd.f32 %v9707_v1, %v5609_v20 }
 0x613   : > { %3762 = vmatmul.f32.vlgmr.msra.gmra.mxu3 %v3445_v0  ;;  %v2041_v31 = vadd.f32 %v9705_v23, %v5609_v20  ;;  %v3370_v22 = vmax.f32 %v2044_v41, 0.0  ;;  %v9711_v20 = vld [vmem:[#allocation61_spill] sm:$0xff] }
 0x614   : > { %3786 = vmatpush.msrb.mxu3 %v2981_v13  ;;  %3734 = vmatpush.msra.mxu2 %v3380_v52  ;;  %v9706_v13 = vld [vmem:[#allocation88_spill] sm:$0xff]  ;;  %v2196_v52 = vadd.f32 %v9709_v40, %v8306_v32  ;;  %v8361_v54 = vpop.f32.mrf.mxu1  ;;  %v3366_v28 = vmax.f32 %v2038_v30, 0.0  ;;  %v9720_v40 = vld [vmem:[#allocation67_spill] sm:$0xff] }
 0x615   : > { %v2220_v0 = vadd.f32 %v9706_v13, %v8306_v32  ;;  %v3368_v59 = vmax.f32 %v2041_v31, 0.0 }
 0x616   : > { %3787 = vmatpush.msrb.mxu3 %v2979_v42  ;;  %3735 = vmatpush.msra.mxu2 %v3378_v11  ;;  %v2217_v42 = vadd.f32 %v9708_v36, %v8306_v32  ;;  %v2193_v11 = vadd.f32 %v9711_v20, %v8306_v32  ;;  %v2949_v57 = vmax.f32 %v2196_v52, 0.0  ;;  %v2199_v52 = vadd.f32 %v9720_v40, %v8306_v32 }
 0x617   : > { %v2965_v51 = vmax.f32 %v2220_v0, 0.0  ;;  %v2340_v20 = vadd.f32 %v7203_v50, %v8306_v32  ;;  %v2334_v50 = vadd.f32 %v7177_v46, %v8306_v32  ;;  %v9725_v46 = vld [vmem:[#allocation34_spill] sm:$0xff] }
 0x618   : > { %3788 = vmatpush.msrb.mxu3 %v2977_v7  ;;  %3736 = vmatpush.msra.mxu2 %v3376_v27  ;;  %v9710_v7 = vld [vmem:[#allocation82_spill] sm:$0xff]  ;;  %v2963_v25 = vmax.f32 %v2217_v42, 0.0  ;;  %v2947_v29 = vmax.f32 %v2193_v11, 0.0 }
 0x619   : > { %v2214_v47 = vadd.f32 %v9710_v7, %v8306_v32  ;;  %v9713_v27 = vld [vmem:[#allocation58_spill] sm:$0xff] }
 0x61a   : > { %3789 = vmatpush.msrb.mxu3 %v2975_v16  ;;  %3737 = vmatpush.msra.mxu2 %v3374_v44  ;;  %v9712_v16 = vld [vmem:[#allocation79_spill] sm:$0xff]  ;;  %v2190_v37 = vadd.f32 %v9713_v27, %v8306_v32  ;;  %v9721_v7 = vld [vmem:[#allocation46_spill] sm:$0xff]  ;;  %v9723_v27 = vld [vmem:[#allocation40_spill] sm:$0xff] }
 0x61b   : > { %v2211_v48 = vadd.f32 %v9712_v16, %v8306_v32  ;;  %v2961_v41 = vmax.f32 %v2214_v47, 0.0  ;;  %v9715_v44 = vld [vmem:[#allocation55_spill] sm:$0xff]  ;;  %v2178_v47 = vadd.f32 %v9721_v7, %v8306_v32 }
 0x61c   : > { %3790 = vmatpush.msrb.mxu3 %v2973_v12  ;;  %3738 = vmatpush.msra.mxu2 %v3372_v35  ;;  %v9714_v12 = vld [vmem:[#allocation76_spill] sm:$0xff]  ;;  %v2187_v55 = vadd.f32 %v9715_v44, %v8306_v32  ;;  %v2945_v0 = vmax.f32 %v2190_v37, 0.0  ;;  %v2172_v37 = vadd.f32 %v9723_v27, %v8306_v32 }
 0x61d   : > { %v2208_v34 = vadd.f32 %v9714_v12, %v8306_v32  ;;  %v2959_v31 = vmax.f32 %v2211_v48, 0.0  ;;  %v9717_v35 = vld [vmem:[#allocation52_spill] sm:$0xff]  ;;  %v2337_v48 = vadd.f32 %v7190_v3, %v8306_v32  ;;  %v3045_v12 = vmax.f32 %v2340_v20, 0.0  ;;  %v9729_v20 = vld [vmem:[#allocation22_spill] sm:$0xff] }
 0x61e   : > { %3791 = vmatpush.msrb.mxu3 %v2971_v43  ;;  %3739 = vmatpush.msra.mxu2 %v3370_v22  ;;  %v9716_v43 = vld [vmem:[#allocation73_spill] sm:$0xff]  ;;  %v2184_v13 = vadd.f32 %v9717_v35, %v8306_v32  ;;  %v2943_v42 = vmax.f32 %v2187_v55, 0.0  ;;  %v2331_v3 = vadd.f32 %v7162_v2, %v8306_v32  ;;  %v2328_v35 = vadd.f32 %v7147_v63, %v8306_v32  ;;  %v9731_v27 = vld [vmem:[#allocation172_spill] sm:$0xff] }
 0x61f   : > { %v2205_v23 = vadd.f32 %v9716_v43, %v8306_v32  ;;  %v2957_v30 = vmax.f32 %v2208_v34, 0.0  ;;  %v9719_v22 = vld [vmem:[#allocation49_spill] sm:$0xff]  ;;  %v3043_v55 = vmax.f32 %v2337_v48, 0.0  ;;  %v5036_v43 = vld [vmem:[%s9378_s1 + $0x8] sm:$0xff]  ;;  %v2322_v63 = vadd.f32 %v7117_v60, %v8306_v32 }
 0x620   : > { %3792 = vmatpush.msrb.mxu3 %v2969_v26  ;;  %3740 = vmatpush.msra.mxu2 %v3368_v59  ;;  %v9718_v26 = vld [vmem:[#allocation70_spill] sm:$0xff]  ;;  %v2181_v36 = vadd.f32 %v9719_v22, %v8306_v32  ;;  %v9724_v34 = vld [vmem:[#allocation37_spill] sm:$0xff]  ;;  %v3039_v22 = vmax.f32 %v2331_v3, 0.0  ;;  %v2316_v60 = vadd.f32 %v7081_v21, %v8306_v32 }
 0x621   : > { %v2202_v1 = vadd.f32 %v9718_v26, %v8306_v32  ;;  %v2955_v59 = vmax.f32 %v2205_v23, 0.0  ;;  %v2166_v23 = vadd.f32 %v9725_v46, %v8306_v32  ;;  %v9733_v21 = vld [vmem:[#allocation170_spill] sm:$0xff]  ;;  %v9734_v3 = vld [vmem:[#allocation153_spill] sm:$0xff]  ;;  %v9735_v46 = vld [vmem:[#allocation168_spill] sm:$0xff] }
 0x622   : > { %3793 = vmatpush.msrb.mxu3 %v2967_v10  ;;  %3741 = vmatpush.msra.mxu2 %v3366_v28  ;;  %v8386_v10 = vpop.f32.mrf.mxu1  ;;  %v9722_v28 = vld [vmem:[#allocation43_spill] sm:$0xff]  ;;  %v2939_v16 = vmax.f32 %v2181_v36, 0.0  ;;  %v9727_v36 = vld [vmem:[#allocation28_spill] sm:$0xff] }
 0x623   : > { %3742 = vmatmul.f32.vlgmr.msra.gmra.mxu2 %v3444_v56  ;;  %v2953_v11 = vmax.f32 %v2202_v1, 0.0  ;;  %v2175_v56 = vadd.f32 %v9722_v28, %v8306_v32  ;;  %v2929_v40 = vmax.f32 %v2166_v23, 0.0  ;;  %v2307_v23 = vadd.f32 %v9735_v46, %v8306_v32 }
 0x624   : > { %3794 = vmatpush.msrb.mxu3 %v2965_v51  ;;  %3766 = vmatpush.msrb.mxu2 %v2949_v57  ;;  %v2941_v51 = vmax.f32 %v2184_v13, 0.0  ;;  %v2937_v57 = vmax.f32 %v2178_v47, 0.0  ;;  %v3041_v13 = vmax.f32 %v2334_v50, 0.0  ;;  %v9732_v50 = vld [vmem:[#allocation156_spill] sm:$0xff] }
 0x625   : > { %v2935_v44 = vmax.f32 %v2175_v56, 0.0  ;;  %v3033_v56 = vmax.f32 %v2322_v63, 0.0 }
 0x626   : > { %3795 = vmatpush.msrb.mxu3 %v2963_v25  ;;  %3767 = vmatpush.msrb.mxu2 %v2947_v29  ;;  %v2951_v25 = vmax.f32 %v2199_v52, 0.0  ;;  %v8406_v29 = vpop.f32.mrf.mxu3  ;;  %v3037_v52 = vmax.f32 %v2328_v35, 0.0  ;;  %v9736_v35 = vld [vmem:[#allocation150_spill] sm:$0xff] }
 0x628   : > { %3796 = vmatpush.msrb.mxu3 %v2961_v41  ;;  %3768 = vmatpush.msrb.mxu2 %v2945_v0  ;;  %v2169_v41 = vadd.f32 %v9724_v34, %v8306_v32  ;;  %v9726_v0 = vld [vmem:[#allocation31_spill] sm:$0xff] }
 0x629   : > { %v2163_v26 = vadd.f32 %v9726_v0, %v8306_v32 }
 0x62a   : > { %3797 = vmatpush.msrb.mxu3 %v2959_v31  ;;  %3769 = vmatpush.msrb.mxu2 %v2943_v42  ;;  %v2933_v31 = vmax.f32 %v2172_v37, 0.0  ;;  %v8415_v2 = vpop.f32.mrf.mxu1  ;;  %v2931_v1 = vmax.f32 %v2169_v41, 0.0  ;;  %v2160_v42 = vadd.f32 %v9727_v36, %v8306_v32  ;;  %v2310_v41 = vadd.f32 %v9733_v21, %v8306_v32 }
 0x62b   : > { %v2927_v47 = vmax.f32 %v2163_v26, 0.0  ;;  %v9737_v26 = vld [vmem:[#allocation166_spill] sm:$0xff] }
 0x62c   : > { %3798 = vmatpush.msrb.mxu3 %v2957_v30  ;;  %3770 = vmatpush.msrb.mxu2 %v2941_v51  ;;  %v2325_v30 = vadd.f32 %v7132_v53, %v8306_v32  ;;  %v2319_v53 = vadd.f32 %v7102_v4, %v8306_v32  ;;  %v2925_v28 = vmax.f32 %v2160_v42, 0.0  ;;  %v2313_v4 = vadd.f32 %v9731_v27, %v8306_v32 }
 0x62e   : > { %3799 = vmatpush.msrb.mxu3 %v2955_v59  ;;  %3771 = vmatpush.msrb.mxu2 %v2939_v16  ;;  %v9728_v59 = vld [vmem:[#allocation25_spill] sm:$0xff]  ;;  %v3035_v51 = vmax.f32 %v2325_v30, 0.0  ;;  %v9730_v16 = vld [vmem:[#allocation19_spill] sm:$0xff]  ;;  %v3031_v37 = vmax.f32 %v2319_v53, 0.0  ;;  %v3025_v30 = vmax.f32 %v2310_v41, 0.0 }
 0x62f   : > { %v2157_v7 = vadd.f32 %v9728_v59, %v8306_v32  ;;  %v2151_v48 = vadd.f32 %v9730_v16, %v8306_v32  ;;  %v5037_v59 = vld [vmem:[%s9378_s1] sm:$0xff]  ;;  %v9746_v41 = vld [vmem:[#allocation135_spill] sm:$0xff] }
 0x630   : > { %3800 = vmatpush.msrb.mxu3 %v2953_v11  ;;  %3772 = vmatpush.msrb.mxu2 %v2937_v57  ;;  %v2154_v11 = vadd.f32 %v9729_v20, %v8306_v32 }
 0x632   : > { %3801 = vmatpush.msrb.mxu3 %v2951_v25  ;;  %3773 = vmatpush.msrb.mxu2 %v2935_v44  ;;  %v2923_v25 = vmax.f32 %v2157_v7, 0.0  ;;  %v8437_v57 = vpop.f32.mrf.mxu1  ;;  %v2921_v34 = vmax.f32 %v2154_v11, 0.0  ;;  %v3029_v44 = vmax.f32 %v2316_v60, 0.0  ;;  %v9740_v7 = vld [vmem:[#allocation144_spill] sm:$0xff]  ;;  %v9742_v60 = vld [vmem:[#allocation141_spill] sm:$0xff] }
 0x633   : > { %3802 = vmatmul.f32.vlgmr.msrb.gmra.mxu3 %v5036_v43  ;;  %v2919_v43 = vmax.f32 %v2151_v48, 0.0  ;;  %v9743_v48 = vld [vmem:[#allocation159_spill] sm:$0xff] }
 0x634   : > { %3826 = vmatpush.msra.mxu3 %v3045_v12  ;;  %3774 = vmatpush.msrb.mxu2 %v2933_v31  ;;  %v2292_v12 = vadd.f32 %v9732_v50, %v8306_v32  ;;  %v3027_v31 = vmax.f32 %v2313_v4, 0.0  ;;  %v9744_v4 = vld [vmem:[#allocation138_spill] sm:$0xff] }
 0x636   : > { %3827 = vmatpush.msra.mxu3 %v3043_v55  ;;  %3775 = vmatpush.msrb.mxu2 %v2931_v1  ;;  %v2289_v55 = vadd.f32 %v9734_v3, %v8306_v32  ;;  %v3013_v0 = vmax.f32 %v2292_v12, 0.0  ;;  %v2304_v1 = vadd.f32 %v9737_v26, %v8306_v32  ;;  %v9745_v12 = vld [vmem:[#allocation215_spill] sm:$0xff] }
 0x638   : > { %3828 = vmatpush.msra.mxu3 %v3041_v13  ;;  %3776 = vmatpush.msrb.mxu2 %v2929_v40  ;;  %v2286_v13 = vadd.f32 %v9736_v35, %v8306_v32  ;;  %v3011_v42 = vmax.f32 %v2289_v55, 0.0  ;;  %v9739_v40 = vld [vmem:[#allocation164_spill] sm:$0xff]  ;;  %v3021_v11 = vmax.f32 %v2304_v1, 0.0  ;;  %v9747_v55 = vld [vmem:[#allocation214_spill] sm:$0xff]  ;;  %v9750_v1 = vld [vmem:[#allocation131_spill] sm:$0xff] }
 0x639   : > { %v2301_v63 = vadd.f32 %v9739_v40, %v8306_v32 }
 0x63a   : > { %3829 = vmatpush.msra.mxu3 %v3039_v22  ;;  %3777 = vmatpush.msrb.mxu2 %v2927_v47  ;;  %v9738_v22 = vld [vmem:[#allocation147_spill] sm:$0xff]  ;;  %v2280_v47 = vadd.f32 %v9740_v7, %v8306_v32  ;;  %v3009_v53 = vmax.f32 %v2286_v13, 0.0  ;;  %v9749_v13 = vld [vmem:[#allocation213_spill] sm:$0xff] }
 0x63b   : > { %v2283_v36 = vadd.f32 %v9738_v22, %v8306_v32  ;;  %v3019_v27 = vmax.f32 %v2301_v63, 0.0  ;;  %v8484_v63 = vpop.f32.mrf.mxu3  ;;  %v9752_v7 = vld [vmem:[#allocation129_spill] sm:$0xff] }
 0x63c   : > { %3830 = vmatpush.msra.mxu3 %v3037_v52  ;;  %3778 = vmatpush.msrb.mxu2 %v2925_v28  ;;  %v3023_v52 = vmax.f32 %v2307_v23, 0.0  ;;  %v8462_v28 = vpop.f32.mrf.mxu1  ;;  %v3005_v50 = vmax.f32 %v2280_v47, 0.0  ;;  %v9748_v23 = vld [vmem:[#allocation133_spill] sm:$0xff]  ;;  %v2262_v47 = vadd.f32 %v9752_v7, %v8306_v32  ;;  %v9764_v7 = vld [vmem:[#allocation199_spill] sm:$0xff] }
 0x63d   : > { %v3007_v16 = vmax.f32 %v2283_v36, 0.0  ;;  %v9751_v36 = vld [vmem:[#allocation212_spill] sm:$0xff] }
 0x63e   : > { %3831 = vmatpush.msra.mxu3 %v3035_v51  ;;  %3779 = vmatpush.msrb.mxu2 %v2923_v25  ;;  %v9741_v51 = vld [vmem:[#allocation162_spill] sm:$0xff]  ;;  %v2295_v25 = vadd.f32 %v9743_v48, %v8306_v32 }
 0x63f   : > { %v2298_v20 = vadd.f32 %v9741_v51, %v8306_v32  ;;  %v9753_v51 = vld [vmem:[#allocation211_spill] sm:$0xff]  ;;  %v9755_v48 = vld [vmem:[#allocation210_spill] sm:$0xff] }
 0x640   : > { %3832 = vmatpush.msra.mxu3 %v3033_v56  ;;  %3780 = vmatpush.msrb.mxu2 %v2921_v34  ;;  %v2277_v56 = vadd.f32 %v9742_v60, %v8306_v32  ;;  %v2436_v34 = vadd.f32 %v9745_v12, %v8306_v32  ;;  %v3015_v46 = vmax.f32 %v2295_v25, 0.0  ;;  %v9754_v60 = vld [vmem:[#allocation127_spill] sm:$0xff]  ;;  %v2421_v25 = vadd.f32 %v9755_v48, %v8306_v32  ;;  %v9757_v12 = vld [vmem:[#allocation209_spill] sm:$0xff]  ;;  %v9767_v48 = vld [vmem:[#allocation204_spill] sm:$0xff] }
 0x641   : > { %v3017_v21 = vmax.f32 %v2298_v20, 0.0  ;;  %v2424_v20 = vadd.f32 %v9753_v51, %v8306_v32  ;;  %v9765_v51 = vld [vmem:[#allocation205_spill] sm:$0xff] }
 0x642   : > { %3833 = vmatpush.msra.mxu3 %v3031_v37  ;;  %3781 = vmatpush.msrb.mxu2 %v2919_v43  ;;  %v2274_v37 = vadd.f32 %v9744_v4, %v8306_v32  ;;  %v3003_v3 = vmax.f32 %v2277_v56, 0.0  ;;  %v2433_v43 = vadd.f32 %v9747_v55, %v8306_v32  ;;  %v3109_v26 = vmax.f32 %v2436_v34, 0.0  ;;  %v9756_v4 = vld [vmem:[#allocation124_spill] sm:$0xff] }
 0x643   : > { %3782 = vmatmul.f32.vlgmr.msrb.gmra.mxu2 %v5037_v59  ;;  %v5038_v59 = vld [vmem:[%s9378_s1 + $0x18] sm:$0xff]  ;;  %v2259_v56 = vadd.f32 %v9754_v60, %v8306_v32  ;;  %v2418_v34 = vadd.f32 %v9757_v12, %v8306_v32  ;;  %v9766_v60 = vld [vmem:[#allocation198_spill] sm:$0xff]  ;;  %v9769_v12 = vld [vmem:[#allocation203_spill] sm:$0xff] }
 0x644   : > { %3834 = vmatpush.msra.mxu3 %v3029_v44  ;;  %3806 = vmatpush.msra.mxu2 %v3013_v0  ;;  %v2271_v44 = vadd.f32 %v9746_v41, %v8306_v32  ;;  %v3001_v35 = vmax.f32 %v2274_v37, 0.0  ;;  %v2430_v0 = vadd.f32 %v9749_v13, %v8306_v32  ;;  %v3107_v40 = vmax.f32 %v2433_v43, 0.0  ;;  %v9758_v41 = vld [vmem:[#allocation121_spill] sm:$0xff]  ;;  %v9759_v55 = vld [vmem:[#allocation208_spill] sm:$0xff]  ;;  %v9761_v13 = vld [vmem:[#allocation207_spill] sm:$0xff] }
 0x645   : > { %v2256_v37 = vadd.f32 %v9756_v4, %v8306_v32  ;;  %v2415_v43 = vadd.f32 %v9759_v55, %v8306_v32  ;;  %v9768_v4 = vld [vmem:[#allocation197_spill] sm:$0xff] }
 0x646   : > { %3835 = vmatpush.msra.mxu3 %v3027_v31  ;;  %3807 = vmatpush.msra.mxu2 %v3011_v42  ;;  %v2268_v31 = vadd.f32 %v9748_v23, %v8306_v32  ;;  %v2999_v22 = vmax.f32 %v2271_v44, 0.0  ;;  %v2427_v42 = vadd.f32 %v9751_v36, %v8306_v32  ;;  %v2253_v44 = vadd.f32 %v9758_v41, %v8306_v32  ;;  %v9760_v23 = vld [vmem:[#allocation118_spill] sm:$0xff]  ;;  %v8529_v41 = vpop.f32.mrf.mxu3 }
 0x648   : > { %3836 = vmatpush.msra.mxu3 %v3025_v30  ;;  %3808 = vmatpush.msra.mxu2 %v3009_v53  ;;  %v2265_v30 = vadd.f32 %v9750_v1, %v8306_v32  ;;  %v2997_v53 = vmax.f32 %v2268_v31, 0.0  ;;  %v2250_v31 = vadd.f32 %v9760_v23, %v8306_v32  ;;  %v2987_v36 = vmax.f32 %v2253_v44, 0.0  ;;  %v9770_v44 = vld [vmem:[#allocation196_spill] sm:$0xff] }
 0x64a   : > { %3837 = vmatpush.msra.mxu3 %v3023_v52  ;;  %3809 = vmatpush.msra.mxu2 %v3007_v16  ;;  %v8486_v52 = vpop.f32.mrf.mxu1  ;;  %v2995_v16 = vmax.f32 %v2265_v30, 0.0  ;;  %v9762_v30 = vld [vmem:[#allocation115_spill] sm:$0xff] }
 0x64c   : > { %3838 = vmatpush.msra.mxu3 %v3021_v11  ;;  %3810 = vmatpush.msra.mxu2 %v3005_v50  ;;  %v3105_v11 = vmax.f32 %v2430_v0, 0.0  ;;  %v2993_v50 = vmax.f32 %v2262_v47, 0.0  ;;  %v2412_v0 = vadd.f32 %v9761_v13, %v8306_v32  ;;  %v2388_v47 = vadd.f32 %v9764_v7, %v8306_v32  ;;  %v9775_v7 = vld [vmem:[#allocation200_spill] sm:$0xff] }
 0x64e   : > { %3839 = vmatpush.msra.mxu3 %v3019_v27  ;;  %3811 = vmatpush.msra.mxu2 %v3003_v3  ;;  %v3103_v27 = vmax.f32 %v2427_v42, 0.0  ;;  %v2991_v3 = vmax.f32 %v2259_v56, 0.0  ;;  %v9763_v42 = vld [vmem:[#allocation206_spill] sm:$0xff]  ;;  %v2385_v56 = vadd.f32 %v9766_v60, %v8306_v32  ;;  %v9777_v60 = vld [vmem:[#allocation245_spill] sm:$0xff] }
 0x650   : > { %3840 = vmatpush.msra.mxu3 %v3017_v21  ;;  %3812 = vmatpush.msra.mxu2 %v3001_v35  ;;  %v3101_v21 = vmax.f32 %v2424_v20, 0.0  ;;  %v2989_v35 = vmax.f32 %v2256_v37, 0.0  ;;  %v2406_v20 = vadd.f32 %v9765_v51, %v8306_v32  ;;  %v2382_v37 = vadd.f32 %v9768_v4, %v8306_v32  ;;  %v9776_v51 = vld [vmem:[#allocation193_spill] sm:$0xff]  ;;  %v9779_v4 = vld [vmem:[#allocation244_spill] sm:$0xff] }
 0x651   : > { %v3075_v55 = vmax.f32 %v2385_v56, 0.0  ;;  %v2532_v56 = vadd.f32 %v9777_v60, %v8306_v32 }
 0x652   : > { %3841 = vmatpush.msra.mxu3 %v3015_v46  ;;  %3813 = vmatpush.msra.mxu2 %v2999_v22  ;;  %v3099_v46 = vmax.f32 %v2421_v25, 0.0  ;;  %v8511_v1 = vpop.f32.mrf.mxu1  ;;  %v2247_v22 = vadd.f32 %v9762_v30, %v8306_v32  ;;  %v2403_v25 = vadd.f32 %v9767_v48, %v8306_v32  ;;  %v9773_v30 = vld [vmem:[#allocation201_spill] sm:$0xff]  ;;  %v9778_v48 = vld [vmem:[#allocation192_spill] sm:$0xff] }
 0x653   : > { %3842 = vmatmul.f32.vlgmr.msra.gmra.mxu3 %v5038_v59  ;;  %v3095_v59 = vmax.f32 %v2415_v43, 0.0  ;;  %v9771_v43 = vld [vmem:[#allocation202_spill] sm:$0xff] }
 0x654   : > { %3866 = vmatpush.msrb.mxu3 %v3109_v26  ;;  %3814 = vmatpush.msra.mxu2 %v2997_v53  ;;  %v3097_v26 = vmax.f32 %v2418_v34, 0.0  ;;  %v2985_v53 = vmax.f32 %v2250_v31, 0.0  ;;  %v2400_v34 = vadd.f32 %v9769_v12, %v8306_v32  ;;  %v3087_v23 = vmax.f32 %v2403_v25, 0.0  ;;  %v5039_v31 = vld [vmem:[%s9378_s1 + $0x10] sm:$0xff]  ;;  %v8556_v12 = vpop.f32.mrf.mxu3 }
 0x655   : > { %v2367_v25 = vadd.f32 %v9778_v48, %v8306_v32 }
 0x656   : > { %3867 = vmatpush.msrb.mxu3 %v3107_v40  ;;  %3815 = vmatpush.msra.mxu2 %v2995_v16  ;;  %v2409_v40 = vadd.f32 %v9763_v42, %v8306_v32  ;;  %v2983_v16 = vmax.f32 %v2247_v22, 0.0  ;;  %v2394_v22 = vadd.f32 %v9773_v30, %v8306_v32  ;;  %v9774_v42 = vld [vmem:[#allocation194_spill] sm:$0xff] }
 0x658   : > { %3868 = vmatpush.msrb.mxu3 %v3105_v11  ;;  %3816 = vmatpush.msra.mxu2 %v2993_v50  ;;  %v3093_v11 = vmax.f32 %v2412_v0, 0.0  ;;  %v3077_v50 = vmax.f32 %v2388_v47, 0.0  ;;  %v3073_v0 = vmax.f32 %v2382_v37, 0.0  ;;  %v2391_v47 = vadd.f32 %v9775_v7, %v8306_v32 }
 0x659   : > { %v2529_v37 = vadd.f32 %v9779_v4, %v8306_v32 }
 0x65a   : > { %3869 = vmatpush.msrb.mxu3 %v3103_v27  ;;  %3817 = vmatpush.msra.mxu2 %v2991_v3  ;;  %v3091_v27 = vmax.f32 %v2409_v40, 0.0  ;;  %v2379_v3 = vadd.f32 %v9770_v44, %v8306_v32  ;;  %v2373_v40 = vadd.f32 %v9774_v42, %v8306_v32 }
 0x65c   : > { %3870 = vmatpush.msrb.mxu3 %v3101_v21  ;;  %3818 = vmatpush.msra.mxu2 %v2989_v35  ;;  %v3089_v21 = vmax.f32 %v2406_v20, 0.0  ;;  %v9772_v35 = vld [vmem:[#allocation195_spill] sm:$0xff]  ;;  %v2370_v20 = vadd.f32 %v9776_v51, %v8306_v32 }
 0x65d   : > { %v2376_v13 = vadd.f32 %v9772_v35, %v8306_v32  ;;  %v9783_v35 = vld [vmem:[#allocation5_spill] sm:$0xff] }
 0x65e   : > { %3871 = vmatpush.msrb.mxu3 %v3099_v46  ;;  %3819 = vmatpush.msra.mxu2 %v2987_v36  ;;  %v2397_v46 = vadd.f32 %v9771_v43, %v8306_v32  ;;  %v3085_v36 = vmax.f32 %v2400_v34, 0.0  ;;  %v9780_v34 = vld [vmem:[#allocation191_spill] sm:$0xff]  ;;  %v3065_v44 = vmax.f32 %v2370_v20, 0.0  ;;  %v3173_v43 = vmax.f32 %v2532_v56, 0.0 }
 0x660   : > { %3872 = vmatpush.msrb.mxu3 %v3097_v26  ;;  %3820 = vmatpush.msra.mxu2 %v2985_v53  ;;  %v8540_v26 = vpop.f32.mrf.mxu1  ;;  %v3083_v53 = vmax.f32 %v2397_v46, 0.0  ;;  %v9782_v46 = vld [vmem:[#allocation190_spill] sm:$0xff] }
 0x662   : > { %3873 = vmatpush.msrb.mxu3 %v3095_v59  ;;  %3821 = vmatpush.msra.mxu2 %v2983_v16  ;;  %v3071_v59 = vmax.f32 %v2379_v3, 0.0  ;;  %v3081_v16 = vmax.f32 %v2394_v22, 0.0  ;;  %v9781_v3 = vld [vmem:[#allocation243_spill] sm:$0xff]  ;;  %v5040_v22 = vld [vmem:[%s9378_s1 + $0x28] sm:$0xff] }
 0x663   : > { %3822 = vmatmul.f32.vlgmr.msra.gmra.mxu2 %v5039_v31  ;;  %v3063_v31 = vmax.f32 %v2367_v25, 0.0 }
 0x664   : > { %3874 = vmatpush.msrb.mxu3 %v3093_v11  ;;  %3846 = vmatpush.msrb.mxu2 %v3077_v50  ;;  %v3069_v11 = vmax.f32 %v2376_v13, 0.0  ;;  %v3079_v50 = vmax.f32 %v2391_v47, 0.0  ;;  %v2523_v13 = vadd.f32 %v9783_v35, %v8306_v32  ;;  %v9793_v35 = vld [vmem:[#allocation240_spill] sm:$0xff] }
 0x666   : > { %3875 = vmatpush.msrb.mxu3 %v3091_v27  ;;  %3847 = vmatpush.msrb.mxu2 %v3075_v55  ;;  %v3067_v27 = vmax.f32 %v2373_v40, 0.0  ;;  %v2526_v55 = vadd.f32 %v9781_v3, %v8306_v32  ;;  %v3167_v56 = vmax.f32 %v2523_v13, 0.0  ;;  %v9791_v3 = vld [vmem:[#allocation241_spill] sm:$0xff]  ;;  %v2508_v13 = vadd.f32 %v9793_v35, %v8306_v32 }
 0x668   : > { %3876 = vmatpush.msrb.mxu3 %v3089_v21  ;;  %3848 = vmatpush.msrb.mxu2 %v3073_v0  ;;  %v2364_v21 = vadd.f32 %v9780_v34, %v8306_v32  ;;  %v3171_v0 = vmax.f32 %v2529_v37, 0.0  ;;  %v8566_v30 = vpop.f32.mrf.mxu1  ;;  %v3169_v47 = vmax.f32 %v2526_v55, 0.0  ;;  %v9790_v34 = vld [vmem:[#allocation186_spill] sm:$0xff]  ;;  %v2511_v55 = vadd.f32 %v9791_v3, %v8306_v32 }
 0x66a   : > { %3877 = vmatpush.msrb.mxu3 %v3087_v23  ;;  %3849 = vmatpush.msrb.mxu2 %v3071_v59  ;;  %v2361_v23 = vadd.f32 %v9782_v46, %v8306_v32  ;;  %v3061_v40 = vmax.f32 %v2364_v21, 0.0  ;;  %v9785_v59 = vld [vmem:[#allocation7_spill] sm:$0xff]  ;;  %v2349_v21 = vadd.f32 %v9790_v34, %v8306_v32  ;;  %v9792_v46 = vld [vmem:[#allocation185_spill] sm:$0xff] }
 0x66b   : > { %v2520_v7 = vadd.f32 %v9785_v59, %v8306_v32  ;;  %v9795_v59 = vld [vmem:[#allocation239_spill] sm:$0xff] }
 0x66c   : > { %3878 = vmatpush.msrb.mxu3 %v3085_v36  ;;  %3850 = vmatpush.msrb.mxu2 %v3069_v11  ;;  %v9784_v36 = vld [vmem:[#allocation189_spill] sm:$0xff]  ;;  %v3059_v20 = vmax.f32 %v2361_v23, 0.0  ;;  %v9787_v11 = vld [vmem:[#allocation8_spill] sm:$0xff]  ;;  %v2346_v23 = vadd.f32 %v9792_v46, %v8306_v32 }
 0x66d   : > { %v2358_v42 = vadd.f32 %v9784_v36, %v8306_v32  ;;  %v2517_v60 = vadd.f32 %v9787_v11, %v8306_v32  ;;  %v3165_v37 = vmax.f32 %v2520_v7, 0.0  ;;  %v9794_v36 = vld [vmem:[#allocation183_spill] sm:$0xff]  ;;  %v2505_v7 = vadd.f32 %v9795_v59, %v8306_v32  ;;  %v9797_v11 = vld [vmem:[#allocation238_spill] sm:$0xff]  ;;  %v9804_v59 = vld [vmem:[#allocation228_spill] sm:$0xff] }
 0x66e   : > { %3879 = vmatpush.msrb.mxu3 %v3083_v53  ;;  %3851 = vmatpush.msrb.mxu2 %v3067_v27  ;;  %v9786_v53 = vld [vmem:[#allocation188_spill] sm:$0xff]  ;;  %v9789_v27 = vld [vmem:[#allocation9_spill] sm:$0xff] }
 0x66f   : > { %v2355_v51 = vadd.f32 %v9786_v53, %v8306_v32  ;;  %v3057_v25 = vmax.f32 %v2358_v42, 0.0  ;;  %v2514_v4 = vadd.f32 %v9789_v27, %v8306_v32  ;;  %v2343_v42 = vadd.f32 %v9794_v36, %v8306_v32  ;;  %v9799_v27 = vld [vmem:[#allocation237_spill] sm:$0xff] }
 0x670   : > { %3880 = vmatpush.msrb.mxu3 %v3081_v16  ;;  %3852 = vmatpush.msrb.mxu2 %v3065_v44  ;;  %v9788_v16 = vld [vmem:[#allocation187_spill] sm:$0xff]  ;;  %v3049_v53 = vmax.f32 %v2346_v23, 0.0  ;;  %v5041_v23 = vld [vmem:[%s9378_s1 + $0x20] sm:$0xff] }
 0x671   : > { %v2352_v48 = vadd.f32 %v9788_v16, %v8306_v32  ;;  %v3055_v44 = vmax.f32 %v2355_v51, 0.0  ;;  %v9796_v51 = vld [vmem:[#allocation232_spill] sm:$0xff]  ;;  %v3047_v16 = vmax.f32 %v2343_v42, 0.0 }
 0x672   : > { %3881 = vmatpush.msrb.mxu3 %v3079_v50  ;;  %3853 = vmatpush.msrb.mxu2 %v3063_v31  ;;  %v8583_v50 = vpop.f32.mrf.mxu3 }
 0x673   : > { %3882 = vmatmul.f32.vlgmr.msrb.gmra.mxu3 %v5040_v22  ;;  %v3053_v31 = vmax.f32 %v2352_v48, 0.0  ;;  %v2624_v22 = vpop.f32.mrf.mxu1  ;;  %v9798_v48 = vld [vmem:[#allocation231_spill] sm:$0xff] }
 0x674   : > { %3906 = vmatpush.msra.mxu3 %v3173_v43  ;;  %3854 = vmatpush.msrb.mxu2 %v3061_v40  ;;  %v3163_v43 = vmax.f32 %v2517_v60, 0.0  ;;  %v3051_v40 = vmax.f32 %v2349_v21, 0.0  ;;  %v2502_v60 = vadd.f32 %v9797_v11, %v8306_v32  ;;  %v9800_v21 = vld [vmem:[#allocation230_spill] sm:$0xff] }
 0x676   : > { %3907 = vmatpush.msra.mxu3 %v3171_v0  ;;  %3855 = vmatpush.msrb.mxu2 %v3059_v20  ;;  %v3161_v0 = vmax.f32 %v2514_v4, 0.0  ;;  %v2484_v20 = vadd.f32 %v9796_v51, %v8306_v32  ;;  %v2499_v4 = vadd.f32 %v9799_v27, %v8306_v32  ;;  %v3153_v46 = vmax.f32 %v2502_v60, 0.0  ;;  %v9806_v60 = vld [vmem:[#allocation227_spill] sm:$0xff] }
 0x678   : > { %3908 = vmatpush.msra.mxu3 %v3169_v47  ;;  %3856 = vmatpush.msrb.mxu2 %v3057_v25  ;;  %v3159_v47 = vmax.f32 %v2511_v55, 0.0  ;;  %v2481_v25 = vadd.f32 %v9798_v48, %v8306_v32  ;;  %v3141_v3 = vmax.f32 %v2484_v20, 0.0  ;;  %v9801_v55 = vld [vmem:[#allocation236_spill] sm:$0xff]  ;;  %v3151_v42 = vmax.f32 %v2499_v4, 0.0  ;;  %v9807_v48 = vld [vmem:[#allocation233_spill] sm:$0xff] }
 0x679   : > { %v2625_v4 = vadd.f32 %v2624_v22, %v8306_v32  ;;  %v2622_v22 = vadd.f32 %v8566_v30, %v8306_v32  ;;  %v5042_v30 = vld [vmem:[%s9378_s1 + $0x38] sm:$0xff] }
 0x67a   : > { %3909 = vmatpush.msra.mxu3 %v3167_v56  ;;  %3857 = vmatpush.msrb.mxu2 %v3055_v44  ;;  %v3157_v56 = vmax.f32 %v2508_v13, 0.0  ;;  %v8605_v34 = vpop.f32.mrf.mxu3  ;;  %v2478_v44 = vadd.f32 %v9800_v21, %v8306_v32  ;;  %v3139_v13 = vmax.f32 %v2481_v25, 0.0  ;;  %v2487_v25 = vadd.f32 %v9807_v48, %v8306_v32  ;;  %v9813_v48 = vld [vmem:[#allocation221_spill] sm:$0xff] }
 0x67c   : > { %3910 = vmatpush.msra.mxu3 %v3165_v37  ;;  %3858 = vmatpush.msrb.mxu2 %v3053_v31  ;;  %v3155_v37 = vmax.f32 %v2505_v7, 0.0  ;;  %v9802_v31 = vld [vmem:[#allocation229_spill] sm:$0xff]  ;;  %v2472_v7 = vadd.f32 %v9804_v59, %v8306_v32 }
 0x67d   : > { %v2475_v35 = vadd.f32 %v9802_v31, %v8306_v32 }
 0x67e   : > { %3911 = vmatpush.msra.mxu3 %v3163_v43  ;;  %3859 = vmatpush.msrb.mxu2 %v3051_v40  ;;  %v2496_v43 = vadd.f32 %v9801_v55, %v8306_v32  ;;  %v2627_v40 = vpop.f32.mrf.mxu1 }
 0x67f   : > { %v2628_v11 = vadd.f32 %v2627_v40, %v8306_v32  ;;  %v2619_v40 = vadd.f32 %v8540_v26, %v8306_v32  ;;  %v9812_v26 = vld [vmem:[#allocation222_spill] sm:$0xff] }
 0x680   : > { %3912 = vmatpush.msra.mxu3 %v3161_v0  ;;  %3860 = vmatpush.msrb.mxu2 %v3049_v53  ;;  %v9803_v0 = vld [vmem:[#allocation235_spill] sm:$0xff]  ;;  %v9805_v53 = vld [vmem:[#allocation234_spill] sm:$0xff]  ;;  %v3149_v20 = vmax.f32 %v2496_v43, 0.0 }
 0x681   : > { %v2493_v36 = vadd.f32 %v9803_v0, %v8306_v32  ;;  %v2490_v51 = vadd.f32 %v9805_v53, %v8306_v32  ;;  %v3237_v43 = vmax.f32 %v2628_v11, 0.0  ;;  %v9810_v0 = vld [vmem:[#allocation224_spill] sm:$0xff]  ;;  %v2454_v11 = vadd.f32 %v9812_v26, %v8306_v32 }
 0x682   : > { %3913 = vmatpush.msra.mxu3 %v3159_v47  ;;  %3861 = vmatpush.msrb.mxu2 %v3047_v16  ;;  %v3137_v47 = vmax.f32 %v2478_v44, 0.0  ;;  %v3135_v16 = vmax.f32 %v2475_v35, 0.0  ;;  %v3133_v44 = vmax.f32 %v2472_v7, 0.0  ;;  %v8630_v55 = vpop.f32.mrf.mxu3  ;;  %v3143_v35 = vmax.f32 %v2487_v25, 0.0  ;;  %v9811_v7 = vld [vmem:[#allocation223_spill] sm:$0xff] }
 0x683   : > { %3862 = vmatmul.f32.vlgmr.msrb.gmra.mxu2 %v5041_v23  ;;  %v3147_v27 = vmax.f32 %v2493_v36, 0.0  ;;  %v2460_v36 = vadd.f32 %v9810_v0, %v8306_v32  ;;  %v2451_v25 = vadd.f32 %v9813_v48, %v8306_v32 }
 0x684   : > { %3914 = vmatpush.msra.mxu3 %v3157_v56  ;;  %3886 = vmatpush.msra.mxu2 %v3141_v3  ;;  %v2469_v56 = vadd.f32 %v9806_v60, %v8306_v32  ;;  %v3145_v3 = vmax.f32 %v2490_v51, 0.0  ;;  %v2616_v51 = vadd.f32 %v8511_v1, %v8306_v32  ;;  %v2610_v1 = vadd.f32 %v8462_v28, %v8306_v32 }
 0x685   : > { %v3125_v60 = vmax.f32 %v2460_v36, 0.0  ;;  %v2604_v28 = vadd.f32 %v8415_v2, %v8306_v32  ;;  %v2598_v2 = vadd.f32 %v8361_v54, %v8306_v32  ;;  %v2592_v54 = vadd.f32 %v8312_v15, %v8306_v32 }
 0x686   : > { %3915 = vmatpush.msra.mxu3 %v3155_v37  ;;  %3887 = vmatpush.msra.mxu2 %v3139_v13  ;;  %v9808_v37 = vld [vmem:[#allocation226_spill] sm:$0xff]  ;;  %v3131_v31 = vmax.f32 %v2469_v56, 0.0  ;;  %v3235_v13 = vmax.f32 %v2625_v4, 0.0  ;;  %v8640_v59 = vpop.f32.mrf.mxu1  ;;  %v2613_v56 = vadd.f32 %v8486_v52, %v8306_v32  ;;  %v2607_v52 = vadd.f32 %v8437_v57, %v8306_v32 }
 0x687   : > { %v2466_v21 = vadd.f32 %v9808_v37, %v8306_v32  ;;  %v3229_v37 = vmax.f32 %v2616_v51, 0.0  ;;  %v2601_v57 = vadd.f32 %v8386_v10, %v8306_v32  ;;  %v2580_v51 = vadd.f32 %v8223_v39, %v8306_v32 }
 0x688   : > { %3916 = vmatpush.msra.mxu3 %v3153_v46  ;;  %3888 = vmatpush.msra.mxu2 %v3137_v47  ;;  %v9809_v46 = vld [vmem:[#allocation225_spill] sm:$0xff]  ;;  %v2457_v47 = vadd.f32 %v9811_v7, %v8306_v32  ;;  %v2595_v10 = vadd.f32 %v8339_v24, %v8306_v32  ;;  %v2574_v39 = vadd.f32 %v8180_v6, %v8306_v32 }
 0x689   : > { %v2463_v23 = vadd.f32 %v9809_v46, %v8306_v32  ;;  %v9815_v46 = vld [vmem:[#allocation219_spill] sm:$0xff]  ;;  %v3219_v26 = vmax.f32 %v2601_v57, 0.0  ;;  %v2589_v24 = vadd.f32 %v8285_v19, %v8306_v32  ;;  %v2571_v15 = vadd.f32 %v8154_v62, %v8306_v32 }
 0x68a   : > { %3917 = vmatpush.msra.mxu3 %v3151_v42  ;;  %3889 = vmatpush.msra.mxu2 %v3135_v16  ;;  %v3129_v42 = vmax.f32 %v2466_v21, 0.0  ;;  %v3231_v16 = vmax.f32 %v2619_v40, 0.0  ;;  %v8655_v4 = vpop.f32.mrf.mxu3  ;;  %v9814_v21 = vld [vmem:[#allocation220_spill] sm:$0xff]  ;;  %v3215_v48 = vmax.f32 %v2595_v10, 0.0  ;;  %v2586_v6 = vadd.f32 %v8264_v58, %v8306_v32 }
 0x68b   : > { %v3127_v53 = vmax.f32 %v2463_v23, 0.0  ;;  %v2445_v23 = vadd.f32 %v9815_v46, %v8306_v32  ;;  %v9817_v40 = vld [vmem:[#allocation216_spill] sm:$0xff]  ;;  %v2568_v19 = vadd.f32 %v8138_v61, %v8306_v32  ;;  %v9819_v61 = vld [vmem:[#allocation87_spill] sm:$0xff] }
 0x68c   : > { %3918 = vmatpush.msra.mxu3 %v3149_v20  ;;  %3890 = vmatpush.msra.mxu2 %v3133_v44  ;;  %v3233_v20 = vmax.f32 %v2622_v22, 0.0  ;;  %v2448_v44 = vadd.f32 %v9814_v21, %v8306_v32  ;;  %v2439_v7 = vadd.f32 %v9817_v40, %v8306_v32  ;;  %v2583_v21 = vadd.f32 %v8244_v33, %v8306_v32 }
 0x68d   : > { %v3209_v46 = vmax.f32 %v2586_v6, 0.0  ;;  %v2562_v33 = vadd.f32 %v8110_v8, %v8306_v32 }
 0x68e   : > { %3919 = vmatpush.msra.mxu3 %v3147_v27  ;;  %3891 = vmatpush.msra.mxu2 %v3131_v31  ;;  %v3123_v27 = vmax.f32 %v2457_v47, 0.0  ;;  %v3119_v31 = vmax.f32 %v2451_v25, 0.0  ;;  %v8667_v22 = vpop.f32.mrf.mxu1  ;;  %v3117_v36 = vmax.f32 %v2448_v44, 0.0  ;;  %v3115_v47 = vmax.f32 %v2445_v23, 0.0  ;;  %v5043_v25 = vld [vmem:[%s9378_s1 + $0x30] sm:$0xff] }
 0x68f   : > { %v3211_v44 = vmax.f32 %v2589_v24, 0.0  ;;  %v2721_v23 = vadd.f32 %v9819_v61, %v8306_v32 }
 0x690   : > { %3920 = vmatpush.msra.mxu3 %v3145_v3  ;;  %3892 = vmatpush.msra.mxu2 %v3129_v42  ;;  %v3121_v3 = vmax.f32 %v2454_v11, 0.0  ;;  %v3223_v42 = vmax.f32 %v2607_v52, 0.0  ;;  %v3111_v11 = vmax.f32 %v2439_v7, 0.0  ;;  %v2565_v52 = vadd.f32 %v8124_v49, %v8306_v32 }
 0x691   : > { %v3299_v8 = vmax.f32 %v2721_v23, 0.0  ;;  %v2556_v7 = vadd.f32 %v8075_v38, %v8306_v32  ;;  %v9823_v38 = vld [vmem:[#allocation75_spill] sm:$0xff] }
 0x692   : > { %3921 = vmatpush.msra.mxu3 %v3143_v35  ;;  %3893 = vmatpush.msra.mxu2 %v3127_v53  ;;  %v3225_v35 = vmax.f32 %v2610_v1, 0.0  ;;  %v3221_v53 = vmax.f32 %v2604_v28, 0.0  ;;  %v3213_v1 = vmax.f32 %v2592_v54, 0.0  ;;  %v3207_v28 = vmax.f32 %v2583_v21, 0.0  ;;  %v9831_v23 = vld [vmem:[#allocation63_spill] sm:$0xff] }
 0x693   : > { %3922 = vmatmul.f32.vlgmr.msra.gmra.mxu3 %v5042_v30 }
 0x694   : > { %3946 = vmatpush.msrb.mxu3 %v3237_v43  ;;  %3894 = vmatpush.msra.mxu2 %v3125_v60  ;;  %v3227_v43 = vmax.f32 %v2613_v56, 0.0  ;;  %v2577_v60 = vadd.f32 %v8203_v17, %v8306_v32  ;;  %v3217_v56 = vmax.f32 %v2598_v2, 0.0  ;;  %v5044_v2 = vld [vmem:[%s9378_s1 + $0x48] sm:$0xff] }
 0x696   : > { %3947 = vmatpush.msrb.mxu3 %v3235_v13  ;;  %3895 = vmatpush.msra.mxu2 %v3123_v27  ;;  %v9816_v13 = vld [vmem:[#allocation218_spill] sm:$0xff]  ;;  %v8694_v17 = vpop.f32.mrf.mxu1  ;;  %v3203_v27 = vmax.f32 %v2577_v60, 0.0  ;;  %v9824_v60 = vld [vmem:[#allocation251_spill] sm:$0xff] }
 0x697   : > { %v2442_v0 = vadd.f32 %v9816_v13, %v8306_v32  ;;  %v2550_v54 = vadd.f32 %v9824_v60, %v8306_v32 }
 0x698   : > { %3948 = vmatpush.msrb.mxu3 %v3233_v20  ;;  %3896 = vmatpush.msra.mxu2 %v3121_v3  ;;  %v8679_v20 = vpop.f32.mrf.mxu3  ;;  %v9818_v3 = vld [vmem:[#allocation90_spill] sm:$0xff] }
 0x699   : > { %v3113_v30 = vmax.f32 %v2442_v0, 0.0  ;;  %v2724_v62 = vadd.f32 %v9818_v3, %v8306_v32  ;;  %v2559_v0 = vadd.f32 %v8094_v5, %v8306_v32  ;;  %v9822_v5 = vld [vmem:[#allocation78_spill] sm:$0xff]  ;;  %v3185_v21 = vmax.f32 %v2550_v54, 0.0 }
 0x69a   : > { %3949 = vmatpush.msrb.mxu3 %v3231_v16  ;;  %3897 = vmatpush.msra.mxu2 %v3119_v31  ;;  %v3205_v16 = vmax.f32 %v2580_v51, 0.0  ;;  %v3197_v31 = vmax.f32 %v2568_v19, 0.0  ;;  %v2553_v51 = vadd.f32 %v8059_v18, %v8306_v32  ;;  %v9826_v18 = vld [vmem:[#allocation250_spill] sm:$0xff]  ;;  %v9828_v19 = vld [vmem:[#allocation249_spill] sm:$0xff] }
 0x69b   : > { %v3301_v49 = vmax.f32 %v2724_v62, 0.0  ;;  %v3191_v10 = vmax.f32 %v2559_v0, 0.0  ;;  %v9829_v3 = vld [vmem:[#allocation66_spill] sm:$0xff] }
 0x69c   : > { %3950 = vmatpush.msrb.mxu3 %v3229_v37  ;;  %3898 = vmatpush.msra.mxu2 %v3117_v36  ;;  %v3201_v37 = vmax.f32 %v2574_v39, 0.0  ;;  %v3195_v36 = vmax.f32 %v2565_v52, 0.0  ;;  %v2700_v62 = vadd.f32 %v9829_v3, %v8306_v32 }
 0x69e   : > { %3951 = vmatpush.msrb.mxu3 %v3227_v43  ;;  %3899 = vmatpush.msra.mxu2 %v3115_v47  ;;  %v3199_v43 = vmax.f32 %v2571_v15, 0.0  ;;  %v8718_v57 = vpop.f32.mrf.mxu1  ;;  %v3193_v47 = vmax.f32 %v2562_v33, 0.0  ;;  %v3187_v15 = vmax.f32 %v2553_v51, 0.0  ;;  %v2697_v33 = vadd.f32 %v9831_v23, %v8306_v32 }
 0x6a0   : > { %3952 = vmatpush.msrb.mxu3 %v3225_v35  ;;  %3900 = vmatpush.msra.mxu2 %v3113_v30  ;;  %v8708_v58 = vpop.f32.mrf.mxu3  ;;  %v9820_v35 = vld [vmem:[#allocation84_spill] sm:$0xff] }
 0x6a1   : > { %v2718_v13 = vadd.f32 %v9820_v35, %v8306_v32 }
 0x6a2   : > { %3953 = vmatpush.msrb.mxu3 %v3223_v42  ;;  %3901 = vmatpush.msra.mxu2 %v3111_v11  ;;  %v9821_v42 = vld [vmem:[#allocation81_spill] sm:$0xff] }
 0x6a3   : > { %3902 = vmatmul.f32.vlgmr.msra.gmra.mxu2 %v5043_v25  ;;  %v2715_v40 = vadd.f32 %v9821_v42, %v8306_v32  ;;  %v3297_v30 = vmax.f32 %v2718_v13, 0.0  ;;  %v2547_v25 = vadd.f32 %v9826_v18, %v8306_v32  ;;  %v9834_v42 = vld [vmem:[#allocation246_spill] sm:$0xff]  ;;  %v9840_v18 = vld [vmem:[#allocation51_spill] sm:$0xff] }
 0x6a4   : > { %3954 = vmatpush.msrb.mxu3 %v3221_v53  ;;  %3926 = vmatpush.msrb.mxu2 %v3205_v16  ;;  %v2712_v53 = vadd.f32 %v9822_v5, %v8306_v32  ;;  %v9825_v16 = vld [vmem:[#allocation72_spill] sm:$0xff]  ;;  %v9836_v5 = vld [vmem:[#allocation57_spill] sm:$0xff] }
 0x6a5   : > { %v3295_v11 = vmax.f32 %v2715_v40, 0.0  ;;  %v2706_v24 = vadd.f32 %v9825_v16, %v8306_v32  ;;  %v3183_v61 = vmax.f32 %v2547_v25, 0.0  ;;  %v2535_v40 = vadd.f32 %v9834_v42, %v8306_v32  ;;  %v9839_v16 = vld [vmem:[#allocation36_spill] sm:$0xff] }
 0x6a6   : > { %3955 = vmatpush.msrb.mxu3 %v3219_v26  ;;  %3927 = vmatpush.msrb.mxu2 %v3203_v27  ;;  %v2709_v26 = vadd.f32 %v9823_v38, %v8306_v32  ;;  %v9827_v27 = vld [vmem:[#allocation69_spill] sm:$0xff]  ;;  %v2685_v25 = vadd.f32 %v9840_v18, %v8306_v32 }
 0x6a7   : > { %v2703_v6 = vadd.f32 %v9827_v27, %v8306_v32  ;;  %v3289_v52 = vmax.f32 %v2706_v24, 0.0  ;;  %v3175_v54 = vmax.f32 %v2535_v40, 0.0  ;;  %v2670_v24 = vadd.f32 %v9839_v16, %v8306_v32  ;;  %v5045_v27 = vld [vmem:[%s9378_s1 + $0x40] sm:$0xff]  ;;  %v9848_v40 = vld [vmem:[#allocation24_spill] sm:$0xff]  ;;  %v9852_v16 = vld [vmem:[#allocation18_spill] sm:$0xff] }
 0x6a8   : > { %3956 = vmatpush.msrb.mxu3 %v3217_v56  ;;  %3928 = vmatpush.msrb.mxu2 %v3201_v37  ;;  %v3189_v56 = vmax.f32 %v2556_v7, 0.0  ;;  %v8735_v39 = vpop.f32.mrf.mxu3  ;;  %v2544_v37 = vadd.f32 %v9828_v19, %v8306_v32  ;;  %v3275_v23 = vmax.f32 %v2685_v25, 0.0  ;;  %v5046_v25 = vld [vmem:[%s9378_s1 + $0x58] sm:$0xff] }
 0x6aa   : > { %3957 = vmatpush.msrb.mxu3 %v3215_v48  ;;  %3929 = vmatpush.msrb.mxu2 %v3199_v43  ;;  %v3293_v48 = vmax.f32 %v2712_v53, 0.0  ;;  %v9830_v43 = vld [vmem:[#allocation248_spill] sm:$0xff]  ;;  %v3181_v13 = vmax.f32 %v2544_v37, 0.0  ;;  %v2691_v53 = vadd.f32 %v9836_v5, %v8306_v32  ;;  %v9849_v5 = vld [vmem:[#allocation171_spill] sm:$0xff] }
 0x6ab   : > { %v9842_v37 = vld [vmem:[#allocation48_spill] sm:$0xff] }
 0x6ac   : > { %3958 = vmatpush.msrb.mxu3 %v3213_v1  ;;  %3930 = vmatpush.msrb.mxu2 %v3197_v31  ;;  %v3291_v1 = vmax.f32 %v2709_v26, 0.0  ;;  %v3287_v31 = vmax.f32 %v2703_v6, 0.0  ;;  %v9838_v26 = vld [vmem:[#allocation54_spill] sm:$0xff]  ;;  %v9841_v6 = vld [vmem:[#allocation33_spill] sm:$0xff] }
 0x6ae   : > { %3959 = vmatpush.msrb.mxu3 %v3211_v44  ;;  %3931 = vmatpush.msrb.mxu2 %v3195_v36  ;;  %v8745_v44 = vpop.f32.mrf.mxu1  ;;  %v3285_v36 = vmax.f32 %v2700_v62, 0.0  ;;  %v9843_v62 = vld [vmem:[#allocation30_spill] sm:$0xff] }
 0x6b0   : > { %3960 = vmatpush.msrb.mxu3 %v3209_v46  ;;  %3932 = vmatpush.msrb.mxu2 %v3193_v47  ;;  %v2541_v46 = vadd.f32 %v9830_v43, %v8306_v32  ;;  %v8759_v7 = vpop.f32.mrf.mxu3  ;;  %v9835_v47 = vld [vmem:[#allocation42_spill] sm:$0xff]  ;;  %v3265_v43 = vmax.f32 %v2670_v24, 0.0  ;;  %v2652_v24 = vadd.f32 %v9852_v16, %v8306_v32 }
 0x6b2   : > { %3961 = vmatpush.msrb.mxu3 %v3207_v28  ;;  %3933 = vmatpush.msrb.mxu2 %v3191_v10  ;;  %v9832_v28 = vld [vmem:[#allocation247_spill] sm:$0xff] }
 0x6b3   : > { %3962 = vmatmul.f32.vlgmr.msrb.gmra.mxu3 %v5044_v2  ;;  %v2538_v35 = vadd.f32 %v9832_v28, %v8306_v32  ;;  %v2676_v2 = vadd.f32 %v9835_v47, %v8306_v32  ;;  %v9837_v10 = vld [vmem:[#allocation39_spill] sm:$0xff] }
 0x6b4   : > { %3986 = vmatpush.msra.mxu3 %v3301_v49  ;;  %3934 = vmatpush.msrb.mxu2 %v3189_v56  ;;  %v9833_v49 = vld [vmem:[#allocation60_spill] sm:$0xff]  ;;  %v2673_v38 = vadd.f32 %v9837_v10, %v8306_v32  ;;  %v9850_v10 = vld [vmem:[#allocation21_spill] sm:$0xff] }
 0x6b5   : > { %v2694_v0 = vadd.f32 %v9833_v49, %v8306_v32  ;;  %v3177_v51 = vmax.f32 %v2538_v35, 0.0  ;;  %v9846_v35 = vld [vmem:[#allocation27_spill] sm:$0xff] }
 0x6b6   : > { %3987 = vmatpush.msra.mxu3 %v3299_v8  ;;  %3935 = vmatpush.msrb.mxu2 %v3187_v15  ;;  %v3179_v8 = vmax.f32 %v2541_v46, 0.0  ;;  %v2645_v56 = vpop.f32.mrf.mxu1  ;;  %v3279_v15 = vmax.f32 %v2691_v53, 0.0  ;;  %v3267_v19 = vmax.f32 %v2673_v38, 0.0  ;;  %v9844_v46 = vld [vmem:[#allocation45_spill] sm:$0xff]  ;;  %v2814_v53 = vadd.f32 %v9849_v5, %v8306_v32 }
 0x6b7   : > { %v3281_v60 = vmax.f32 %v2694_v0, 0.0  ;;  %v2655_v38 = vadd.f32 %v9850_v10, %v8306_v32 }
 0x6b8   : > { %3988 = vmatpush.msra.mxu3 %v3297_v30  ;;  %3936 = vmatpush.msrb.mxu2 %v3185_v21  ;;  %v3283_v30 = vmax.f32 %v2697_v33, 0.0  ;;  %v2682_v21 = vadd.f32 %v9842_v37, %v8306_v32  ;;  %v9845_v33 = vld [vmem:[#allocation174_spill] sm:$0xff]  ;;  %v8786_v28 = vpop.f32.mrf.mxu3 }
 0x6ba   : > { %3989 = vmatpush.msra.mxu3 %v3295_v11  ;;  %3937 = vmatpush.msrb.mxu2 %v3183_v61  ;;  %v2688_v11 = vadd.f32 %v9838_v26, %v8306_v32  ;;  %v2679_v61 = vadd.f32 %v9844_v46, %v8306_v32  ;;  %v3273_v0 = vmax.f32 %v2682_v21, 0.0  ;;  %v9855_v46 = vld [vmem:[#allocation163_spill] sm:$0xff] }
 0x6bc   : > { %3990 = vmatpush.msra.mxu3 %v3293_v48  ;;  %3938 = vmatpush.msrb.mxu2 %v3181_v13  ;;  %v3269_v48 = vmax.f32 %v2676_v2, 0.0  ;;  %v3277_v3 = vmax.f32 %v2688_v11, 0.0  ;;  %v2661_v13 = vadd.f32 %v9846_v35, %v8306_v32  ;;  %v3271_v2 = vmax.f32 %v2679_v61, 0.0  ;;  %v9851_v11 = vld [vmem:[#allocation169_spill] sm:$0xff] }
 0x6bd   : > { %v2802_v61 = vadd.f32 %v9855_v46, %v8306_v32  ;;  %v5047_v46 = vld [vmem:[%s9378_s1 + $0x50] sm:$0xff] }
 0x6be   : > { %3991 = vmatpush.msra.mxu3 %v3291_v1  ;;  %3939 = vmatpush.msrb.mxu2 %v3179_v8  ;;  %v2667_v1 = vadd.f32 %v9841_v6, %v8306_v32  ;;  %v2658_v8 = vadd.f32 %v9848_v40, %v8306_v32  ;;  %v3259_v26 = vmax.f32 %v2661_v13, 0.0  ;;  %v3361_v6 = vmax.f32 %v2814_v53, 0.0  ;;  %v9859_v53 = vld [vmem:[#allocation152_spill] sm:$0xff] }
 0x6bf   : > { %v2637_v40 = vadd.f32 %v8694_v17, %v8306_v32  ;;  %v2631_v17 = vadd.f32 %v8640_v59, %v8306_v32 }
 0x6c0   : > { %3992 = vmatpush.msra.mxu3 %v3289_v52  ;;  %3940 = vmatpush.msrb.mxu2 %v3177_v51  ;;  %v2664_v52 = vadd.f32 %v9843_v62, %v8306_v32  ;;  %v3263_v49 = vmax.f32 %v2667_v1, 0.0  ;;  %v2648_v51 = vpop.f32.mrf.mxu1  ;;  %v3255_v1 = vmax.f32 %v2655_v38, 0.0  ;;  %v3253_v62 = vmax.f32 %v2652_v24, 0.0  ;;  %v9862_v24 = vld [vmem:[#allocation146_spill] sm:$0xff] }
 0x6c1   : > { %v2649_v18 = vadd.f32 %v2648_v51, %v8306_v32  ;;  %v3243_v38 = vmax.f32 %v2637_v40, 0.0 }
 0x6c2   : > { %3993 = vmatpush.msra.mxu3 %v3287_v31  ;;  %3941 = vmatpush.msrb.mxu2 %v3175_v54  ;;  %v2820_v31 = vadd.f32 %v9845_v33, %v8306_v32  ;;  %v3261_v47 = vmax.f32 %v2664_v52, 0.0  ;;  %v2646_v52 = vadd.f32 %v2645_v56, %v8306_v32  ;;  %v2643_v33 = vadd.f32 %v8745_v44, %v8306_v32 }
 0x6c3   : > { %3942 = vmatmul.f32.vlgmr.msrb.gmra.mxu2 %v5045_v27 }
 0x6c4   : > { %3994 = vmatpush.msra.mxu3 %v3285_v36  ;;  %3966 = vmatpush.msra.mxu2 %v3269_v48  ;;  %v9847_v36 = vld [vmem:[#allocation173_spill] sm:$0xff]  ;;  %v3257_v48 = vmax.f32 %v2658_v8, 0.0  ;;  %v3249_v56 = vmax.f32 %v2646_v52, 0.0  ;;  %v3247_v44 = vmax.f32 %v2643_v33, 0.0  ;;  %v9858_v8 = vld [vmem:[#allocation155_spill] sm:$0xff] }
 0x6c5   : > { %v2817_v42 = vadd.f32 %v9847_v36, %v8306_v32 }
 0x6c6   : > { %3995 = vmatpush.msra.mxu3 %v3283_v30  ;;  %3967 = vmatpush.msra.mxu2 %v3267_v19  ;;  %v3365_v30 = vmax.f32 %v2820_v31, 0.0  ;;  %v9854_v19 = vld [vmem:[#allocation165_spill] sm:$0xff] }
 0x6c7   : > { %v3363_v54 = vmax.f32 %v2817_v42, 0.0  ;;  %v2805_v37 = vadd.f32 %v9854_v19, %v8306_v32  ;;  %v9856_v31 = vld [vmem:[#allocation161_spill] sm:$0xff]  ;;  %v3353_v42 = vmax.f32 %v2802_v61, 0.0  ;;  %v9865_v19 = vld [vmem:[#allocation130_spill] sm:$0xff]  ;;  %v9867_v61 = vld [vmem:[#allocation128_spill] sm:$0xff] }
 0x6c8   : > { %3996 = vmatpush.msra.mxu3 %v3281_v60  ;;  %3968 = vmatpush.msra.mxu2 %v3265_v43  ;;  %v2811_v60 = vadd.f32 %v9851_v11, %v8306_v32  ;;  %v3251_v43 = vmax.f32 %v2649_v18, 0.0  ;;  %v2799_v35 = vadd.f32 %v9856_v31, %v8306_v32  ;;  %v9868_v31 = vld [vmem:[#allocation137_spill] sm:$0xff] }
 0x6c9   : > { %v3355_v13 = vmax.f32 %v2805_v37, 0.0  ;;  %v2766_v37 = vadd.f32 %v9865_v19, %v8306_v32 }
 0x6ca   : > { %3997 = vmatpush.msra.mxu3 %v3279_v15  ;;  %3969 = vmatpush.msra.mxu2 %v3263_v49  ;;  %v9853_v15 = vld [vmem:[#allocation167_spill] sm:$0xff]  ;;  %v3359_v21 = vmax.f32 %v2811_v60, 0.0  ;;  %v2640_v49 = vadd.f32 %v8718_v57, %v8306_v32  ;;  %v2634_v57 = vadd.f32 %v8667_v22, %v8306_v32  ;;  %v9861_v22 = vld [vmem:[#allocation134_spill] sm:$0xff] }
 0x6cb   : > { %v2808_v27 = vadd.f32 %v9853_v15, %v8306_v32  ;;  %v3239_v15 = vmax.f32 %v2631_v17, 0.0 }
 0x6cc   : > { %3998 = vmatpush.msra.mxu3 %v3277_v3  ;;  %3970 = vmatpush.msra.mxu2 %v3261_v47  ;;  %v8810_v3 = vpop.f32.mrf.mxu3  ;;  %v2793_v47 = vadd.f32 %v9858_v8, %v8306_v32  ;;  %v3245_v5 = vmax.f32 %v2640_v49, 0.0  ;;  %v3241_v16 = vmax.f32 %v2634_v57, 0.0 }
 0x6ce   : > { %3999 = vmatpush.msra.mxu3 %v3275_v23  ;;  %3971 = vmatpush.msra.mxu2 %v3259_v26  ;;  %v3357_v23 = vmax.f32 %v2808_v27, 0.0  ;;  %v9860_v26 = vld [vmem:[#allocation149_spill] sm:$0xff]  ;;  %v3347_v60 = vmax.f32 %v2793_v47, 0.0  ;;  %v9864_v27 = vld [vmem:[#allocation143_spill] sm:$0xff] }
 0x6cf   : > { %v2787_v11 = vadd.f32 %v9860_v26, %v8306_v32 }
 0x6d0   : > { %4000 = vmatpush.msra.mxu3 %v3273_v0  ;;  %3972 = vmatpush.msra.mxu2 %v3257_v48  ;;  %v9857_v0 = vld [vmem:[#allocation158_spill] sm:$0xff]  ;;  %v2784_v48 = vadd.f32 %v9862_v24, %v8306_v32  ;;  %v2904_v24 = vadd.f32 %v8759_v7, %v8306_v32  ;;  %v2898_v7 = vadd.f32 %v8708_v58, %v8306_v32 }
 0x6d1   : > { %v2796_v36 = vadd.f32 %v9857_v0, %v8306_v32  ;;  %v2892_v58 = vadd.f32 %v8655_v4, %v8306_v32  ;;  %v2886_v4 = vadd.f32 %v8605_v34, %v8306_v32  ;;  %v2880_v34 = vadd.f32 %v8556_v12, %v8306_v32 }
 0x6d2   : > { %4001 = vmatpush.msra.mxu3 %v3271_v2  ;;  %3973 = vmatpush.msra.mxu2 %v3255_v1  ;;  %v3351_v2 = vmax.f32 %v2799_v35, 0.0  ;;  %v3343_v1 = vmax.f32 %v2787_v11, 0.0  ;;  %v2775_v35 = vadd.f32 %v9868_v31, %v8306_v32  ;;  %v3421_v19 = vmax.f32 %v2904_v24, 0.0  ;;  %v9883_v24 = vld [vmem:[#allocation6_spill] sm:$0xff] }
 0x6d3   : > { %4002 = vmatmul.f32.vlgmr.msra.gmra.mxu3 %v5046_v25  ;;  %v3349_v51 = vmax.f32 %v2796_v36, 0.0  ;;  %v9863_v25 = vld [vmem:[#allocation132_spill] sm:$0xff]  ;;  %v3329_v36 = vmax.f32 %v2766_v37, 0.0  ;;  %v9876_v37 = vld [vmem:[#allocation105_spill] sm:$0xff]  ;;  %v2874_v12 = vadd.f32 %v8484_v63, %v8306_v32  ;;  %v9882_v63 = vld [vmem:[#allocation242_spill] sm:$0xff] }
 0x6d4   : > { %4026 = vmatpush.msrb.mxu3 %v3365_v30  ;;  %3974 = vmatpush.msra.mxu2 %v3253_v62  ;;  %v2790_v30 = vadd.f32 %v9859_v53, %v8306_v32  ;;  %v2912_v10 = vpop.f32.mrf.mxu3  ;;  %v2769_v59 = vadd.f32 %v9863_v25, %v8306_v32  ;;  %v9866_v62 = vld [vmem:[#allocation140_spill] sm:$0xff]  ;;  %v3335_v57 = vmax.f32 %v2775_v35, 0.0 }
 0x6d5   : > { %v2778_v52 = vadd.f32 %v9866_v62, %v8306_v32 }
 0x6d6   : > { %4027 = vmatpush.msrb.mxu3 %v3363_v54  ;;  %3975 = vmatpush.msra.mxu2 %v3251_v43  ;;  %v2772_v54 = vadd.f32 %v9861_v22, %v8306_v32  ;;  %v3345_v18 = vmax.f32 %v2790_v30, 0.0  ;;  %v3341_v43 = vmax.f32 %v2784_v48, 0.0  ;;  %v3331_v33 = vmax.f32 %v2769_v59, 0.0  ;;  %v5048_v22 = vld [vmem:[%s9378_s1 + $0x68] sm:$0xff] }
 0x6d7   : > { %v3337_v40 = vmax.f32 %v2778_v52, 0.0  ;;  %v2901_v59 = vadd.f32 %v8735_v39, %v8306_v32  ;;  %v2895_v39 = vadd.f32 %v8679_v20, %v8306_v32  ;;  %v2889_v20 = vadd.f32 %v8630_v55, %v8306_v32 }
 0x6d8   : > { %4028 = vmatpush.msrb.mxu3 %v3361_v6  ;;  %3976 = vmatpush.msra.mxu2 %v3249_v56  ;;  %v2781_v6 = vadd.f32 %v9864_v27, %v8306_v32  ;;  %v9869_v56 = vld [vmem:[#allocation126_spill] sm:$0xff]  ;;  %v9875_v27 = vld [vmem:[#allocation108_spill] sm:$0xff]  ;;  %v2883_v55 = vadd.f32 %v8583_v50, %v8306_v32  ;;  %v2877_v50 = vadd.f32 %v8529_v41, %v8306_v32  ;;  %v9881_v41 = vld [vmem:[#allocation41_spill] sm:$0xff] }
 0x6d9   : > { %v2760_v0 = vadd.f32 %v9869_v56, %v8306_v32  ;;  %v3419_v52 = vmax.f32 %v2901_v59, 0.0 }
 0x6da   : > { %4029 = vmatpush.msrb.mxu3 %v3359_v21  ;;  %3977 = vmatpush.msra.mxu2 %v3247_v44  ;;  %v3333_v21 = vmax.f32 %v2772_v54, 0.0  ;;  %v9870_v44 = vld [vmem:[#allocation123_spill] sm:$0xff] }
 0x6db   : > { %v2757_v8 = vadd.f32 %v9870_v44, %v8306_v32  ;;  %v3325_v30 = vmax.f32 %v2760_v0, 0.0 }
 0x6dc   : > { %4030 = vmatpush.msrb.mxu3 %v3357_v23  ;;  %3978 = vmatpush.msra.mxu2 %v3245_v5  ;;  %v2763_v23 = vadd.f32 %v9867_v61, %v8306_v32  ;;  %v2915_v49 = vpop.f32.mrf.mxu3  ;;  %v9871_v5 = vld [vmem:[#allocation120_spill] sm:$0xff] }
 0x6dd   : > { %v2754_v53 = vadd.f32 %v9871_v5, %v8306_v32  ;;  %v3323_v11 = vmax.f32 %v2757_v8, 0.0  ;;  %v3409_v5 = vmax.f32 %v2886_v4, 0.0  ;;  %v9891_v4 = vld [vmem:[#allocation177_spill] sm:$0xff] }
 0x6de   : > { %4031 = vmatpush.msrb.mxu3 %v3355_v13  ;;  %3979 = vmatpush.msra.mxu2 %v3243_v38  ;;  %v3339_v13 = vmax.f32 %v2781_v6, 0.0  ;;  %v3327_v47 = vmax.f32 %v2763_v23, 0.0  ;;  %v9872_v38 = vld [vmem:[#allocation117_spill] sm:$0xff]  ;;  %v2742_v6 = vadd.f32 %v9875_v27, %v8306_v32  ;;  %v3417_v23 = vmax.f32 %v2898_v7, 0.0  ;;  %v5050_v27 = vld [vmem:[%s9378_s1 + $0x78] sm:$0xff] }
 0x6df   : > { %v2751_v26 = vadd.f32 %v9872_v38, %v8306_v32 }
 0x6e0   : > { %4032 = vmatpush.msrb.mxu3 %v3353_v42  ;;  %3980 = vmatpush.msra.mxu2 %v3241_v16  ;;  %v2916_v42 = vadd.f32 %v2915_v49, %v8306_v32  ;;  %v3321_v16 = vmax.f32 %v2754_v53, 0.0  ;;  %v3313_v61 = vmax.f32 %v2742_v6, 0.0  ;;  %v9879_v49 = vld [vmem:[#allocation96_spill] sm:$0xff] }
 0x6e1   : > { %v3319_v25 = vmax.f32 %v2751_v26, 0.0  ;;  %v2730_v56 = vadd.f32 %v9879_v49, %v8306_v32  ;;  %v3405_v26 = vmax.f32 %v2880_v34, 0.0  ;;  %v9885_v6 = vld [vmem:[#allocation184_spill] sm:$0xff]  ;;  %v9890_v49 = vld [vmem:[#allocation178_spill] sm:$0xff] }
 0x6e2   : > { %4033 = vmatpush.msrb.mxu3 %v3351_v2  ;;  %3981 = vmatpush.msra.mxu2 %v3239_v15  ;;  %v2913_v2 = vadd.f32 %v2912_v10, %v8306_v32  ;;  %v3429_v17 = vmax.f32 %v2916_v42, 0.0  ;;  %v2907_v10 = vadd.f32 %v8786_v28, %v8306_v32  ;;  %v9874_v28 = vld [vmem:[#allocation111_spill] sm:$0xff]  ;;  %v8899_v42 = vpop.f32.mrf.mxu2 }
 0x6e3   : > { %3982 = vmatmul.f32.vlgmr.msra.gmra.mxu2 %v5047_v46 }
 0x6e4   : > { %4034 = vmatpush.msrb.mxu3 %v3349_v51  ;;  %4006 = vmatpush.msrb.mxu2 %v3333_v21  ;;  %v2910_v51 = vadd.f32 %v8810_v3, %v8306_v32  ;;  %v9873_v3 = vld [vmem:[#allocation114_spill] sm:$0xff]  ;;  %v3423_v15 = vmax.f32 %v2907_v10, 0.0  ;;  %v2739_v21 = vadd.f32 %v9876_v37, %v8306_v32 }
 0x6e5   : > { %v2748_v54 = vadd.f32 %v9873_v3, %v8306_v32  ;;  %v2856_v3 = vadd.f32 %v9882_v63, %v8306_v32  ;;  %v4104_v63 = vld [vmem:[%s9381_s4 + $0x90] sm:$0xff] }
 0x6e6   : > { %4035 = vmatpush.msrb.mxu3 %v3347_v60  ;;  %4007 = vmatpush.msrb.mxu2 %v3331_v33  ;;  %v3427_v60 = vmax.f32 %v2913_v2, 0.0  ;;  %v3425_v48 = vmax.f32 %v2910_v51, 0.0  ;;  %v9878_v33 = vld [vmem:[#allocation99_spill] sm:$0xff]  ;;  %v3311_v35 = vmax.f32 %v2739_v21, 0.0  ;;  %v3305_v2 = vmax.f32 %v2730_v56, 0.0 }
 0x6e7   : > { %v2733_v31 = vadd.f32 %v9878_v33, %v8306_v32  ;;  %v3407_v51 = vmax.f32 %v2883_v55, 0.0  ;;  %v3389_v59 = vmax.f32 %v2856_v3, 0.0  ;;  %v9889_v33 = vld [vmem:[#allocation179_spill] sm:$0xff]  ;;  %v2832_v56 = vadd.f32 %v9890_v49, %v8306_v32  ;;  %v4142_v49 = vld [vmem:[%s9381_s4 + $0x1c0] sm:$0xff] }
 0x6e8   : > { %4036 = vmatpush.msrb.mxu3 %v3345_v18  ;;  %4008 = vmatpush.msrb.mxu2 %v3329_v36  ;;  %v2745_v18 = vadd.f32 %v9874_v28, %v8306_v32  ;;  %v3413_v36 = vmax.f32 %v2892_v58, 0.0 }
 0x6e9   : > { %v3307_v8 = vmax.f32 %v2733_v31, 0.0  ;;  %v2835_v31 = vadd.f32 %v9889_v33, %v8306_v32  ;;  %v4148_v33 = vld [vmem:[%s9381_s4 + $0x1f0] sm:$0xff] }
 0x6ea   : > { %4037 = vmatpush.msrb.mxu3 %v3343_v1  ;;  %4009 = vmatpush.msrb.mxu2 %v3327_v47  ;;  %v3317_v1 = vmax.f32 %v2748_v54, 0.0  ;;  %v3315_v62 = vmax.f32 %v2745_v18, 0.0  ;;  %v3411_v47 = vmax.f32 %v2889_v20, 0.0 }
 0x6ec   : > { %4038 = vmatpush.msrb.mxu3 %v3341_v43  ;;  %4010 = vmatpush.msrb.mxu2 %v3325_v30  ;;  %v9877_v43 = vld [vmem:[#allocation102_spill] sm:$0xff]  ;;  %v2865_v30 = vadd.f32 %v8250_v9, %v8306_v32  ;;  %v5049_v9 = vld [vmem:[%s9378_s1 + $0x60] sm:$0xff] }
 0x6ed   : > { %v2736_v46 = vadd.f32 %v9877_v43, %v8306_v32 }
 0x6ee   : > { %4039 = vmatpush.msrb.mxu3 %v3339_v13  ;;  %4011 = vmatpush.msrb.mxu2 %v3323_v11  ;;  %v3415_v13 = vmax.f32 %v2895_v39, 0.0  ;;  %v2859_v11 = vadd.f32 %v9881_v41, %v8306_v32  ;;  %v3395_v10 = vmax.f32 %v2865_v30, 0.0  ;;  %v9887_v39 = vld [vmem:[#allocation181_spill] sm:$0xff] }
 0x6ef   : > { %v3309_v0 = vmax.f32 %v2736_v46, 0.0  ;;  %v4110_v41 = vld [vmem:[%s9381_s4 + $0xc0] sm:$0xff] }
 0x6f0   : > { %4040 = vmatpush.msrb.mxu3 %v3337_v40  ;;  %4012 = vmatpush.msrb.mxu2 %v3321_v16  ;;  %v9880_v40 = vld [vmem:[#allocation93_spill] sm:$0xff]  ;;  %v3401_v16 = vmax.f32 %v2874_v12, 0.0  ;;  %v3391_v28 = vmax.f32 %v2859_v11, 0.0 }
 0x6f1   : > { %v2727_v44 = vadd.f32 %v9880_v40, %v8306_v32 }
 0x6f2   : > { %4041 = vmatpush.msrb.mxu3 %v3335_v57  ;;  %4013 = vmatpush.msrb.mxu2 %v3319_v25  ;;  %v2868_v57 = vadd.f32 %v8333_v45, %v8306_v32  ;;  %v2862_v45 = vadd.f32 %v8166_v14, %v8306_v32  ;;  %v3403_v14 = vmax.f32 %v2877_v50, 0.0 }
 0x6f3   : > { %4042 = vmatmul.f32.vlgmr.msrb.gmra.mxu3 %v5048_v22  ;;  %v3303_v53 = vmax.f32 %v2727_v44, 0.0  ;;  %v3503_v22 = vpop.f32.mrf.mxu2 }
 0x6f4   : > { %4066 = vmatpush.msra.mxu3 %v3429_v17  ;;  %4014 = vmatpush.msrb.mxu2 %v3317_v1  ;;  %v3483_v17 = vpop.f32.mrf.mxu3  ;;  %v3397_v38 = vmax.f32 %v2868_v57, 0.0  ;;  %v3393_v54 = vmax.f32 %v2862_v45, 0.0  ;;  %v2847_v1 = vadd.f32 %v9885_v6, %v8306_v32  ;;  %v4092_v6 = vld [vmem:[%s9381_s4 + $0x30] sm:$0xff] }
 0x6f5   : > { %v3484_v46 = vadd.f32 %v3483_v17, %v8899_v42  ;;  %v3375_v42 = vmax.f32 %v2835_v31, 0.0  ;;  %v4116_v17 = vld [vmem:[%s9381_s4 + $0xf0] sm:$0xff]  ;;  %v4146_v31 = vld [vmem:[%s9381_s4 + $0x1e0] sm:$0xff] }
 0x6f6   : > { %4067 = vmatpush.msra.mxu3 %v3427_v60  ;;  %4015 = vmatpush.msrb.mxu2 %v3315_v62  ;;  %v2871_v60 = vadd.f32 %v8406_v29, %v8306_v32  ;;  %v9884_v29 = vld [vmem:[#allocation217_spill] sm:$0xff]  ;;  %v3383_v43 = vmax.f32 %v2847_v1, 0.0 }
 0x6f7   : > { %v2850_v25 = vadd.f32 %v9884_v29, %v8306_v32 }
 0x6f8   : > { %4068 = vmatpush.msra.mxu3 %v3425_v48  ;;  %4016 = vmatpush.msrb.mxu2 %v3313_v61  ;;  %v2853_v48 = vadd.f32 %v9883_v24, %v8306_v32  ;;  %v3399_v18 = vmax.f32 %v2871_v60, 0.0  ;;  %v9888_v61 = vld [vmem:[#allocation180_spill] sm:$0xff] }
 0x6f9   : > { %v3385_v21 = vmax.f32 %v2850_v25, 0.0  ;;  %v2838_v58 = vadd.f32 %v9888_v61, %v8306_v32  ;;  %v4096_v25 = vld [vmem:[%s9381_s4 + $0x50] sm:$0xff]  ;;  %v4113_v61 = vld [vmem:[%s9381_s4 + $0xd8] sm:$0xff] }
 0x6fa   : > { %4069 = vmatpush.msra.mxu3 %v3423_v15  ;;  %4017 = vmatpush.msrb.mxu2 %v3311_v35  ;;  %v3387_v7 = vmax.f32 %v2853_v48, 0.0  ;;  %v4100_v48 = vld [vmem:[%s9381_s4 + $0x70] sm:$0xff] }
 0x6fb   : > { %v3543_v62 = vpop.f32.mrf.mxu2 }
 0x6fc   : > { %4070 = vmatpush.msra.mxu3 %v3421_v19  ;;  %4018 = vmatpush.msrb.mxu2 %v3309_v0  ;;  %v3523_v15 = vpop.f32.mrf.mxu3  ;;  %v9886_v19 = vld [vmem:[#allocation182_spill] sm:$0xff]  ;;  %v3377_v0 = vmax.f32 %v2838_v58, 0.0 }
 0x6fd   : > { %v2844_v37 = vadd.f32 %v9886_v19, %v8306_v32  ;;  %v4090_v19 = vld [vmem:[%s9381_s4 + $0x20] sm:$0xff]  ;;  %v4111_v58 = vld [vmem:[%s9381_s4 + $0xc8] sm:$0xff] }
 0x6fe   : > { %4071 = vmatpush.msra.mxu3 %v3419_v52  ;;  %4019 = vmatpush.msrb.mxu2 %v3307_v8  ;;  %v2841_v52 = vadd.f32 %v9887_v39, %v8306_v32  ;;  %v9892_v8 = vld [vmem:[#allocation176_spill] sm:$0xff]  ;;  %v4086_v39 = vld [vmem:[%s9381_s4] sm:$0xff] }
 0x6ff   : > { %v2826_v55 = vadd.f32 %v9892_v8, %v8306_v32  ;;  %v4134_v8 = vld [vmem:[%s9381_s4 + $0x180] sm:$0xff] }
 0x700   : > { %4072 = vmatpush.msra.mxu3 %v3417_v23  ;;  %4020 = vmatpush.msrb.mxu2 %v3305_v2  ;;  %v3381_v23 = vmax.f32 %v2844_v37, 0.0  ;;  %v3379_v35 = vmax.f32 %v2841_v52, 0.0  ;;  %v9893_v2 = vld [vmem:[#allocation175_spill] sm:$0xff] }
 0x701   : > { %v2823_v57 = vadd.f32 %v9893_v2, %v8306_v32  ;;  %v4093_v2 = vld [vmem:[%s9381_s4 + $0x38] sm:$0xff] }
 0x702   : > { %4073 = vmatpush.msra.mxu3 %v3415_v13  ;;  %4021 = vmatpush.msrb.mxu2 %v3303_v53  ;;  %v3504_v13 = vadd.f32 %v3503_v22, %v3484_v46  ;;  %v3369_v53 = vmax.f32 %v2826_v55, 0.0  ;;  %v4115_v46 = vld [vmem:[%s9381_s4 + $0xe8] sm:$0xff] }
 0x703   : > { %4022 = vmatmul.f32.vlgmr.msrb.gmra.mxu2 %v5049_v9  ;;  %v3583_v40 = vpop.f32.mrf.mxu2  ;;  %v3367_v50 = vmax.f32 %v2823_v57, 0.0  ;;  %v4095_v55 = vld [vmem:[%s9381_s4 + $0x48] sm:$0xff] }
 0x704   : > { %4074 = vmatpush.msra.mxu3 %v3413_v36  ;;  %4046 = vmatpush.msra.mxu2 %v3397_v38  ;;  %v3563_v20 = vpop.f32.mrf.mxu3  ;;  %v2829_v36 = vadd.f32 %v9891_v4, %v8306_v32  ;;  %v3524_v44 = vadd.f32 %v3523_v15, %v3504_v13  ;;  %v5051_v38 = vld [vmem:[%s9378_s1 + $0x70] sm:$0xff]  ;;  %v4114_v32 = vld [vmem:[%s9381_s4 + $0xe0] sm:$0xff]  ;;  %v4105_v13 = vld [vmem:[%s9381_s4 + $0x98] sm:$0xff] }
 0x705   : > { %v4101_v4 = vld [vmem:[%s9381_s4 + $0x78] sm:$0xff]  ;;  %v4091_v57 = vld [vmem:[%s9381_s4 + $0x28] sm:$0xff] }
 0x706   : > { %4075 = vmatpush.msra.mxu3 %v3411_v47  ;;  %4047 = vmatpush.msra.mxu2 %v3395_v10  ;;  %v3373_v47 = vmax.f32 %v2832_v56, 0.0  ;;  %v3371_v34 = vmax.f32 %v2829_v36, 0.0  ;;  %v4108_v10 = vld [vmem:[%s9381_s4 + $0xb0] sm:$0xff]  ;;  %v4103_v56 = vld [vmem:[%s9381_s4 + $0x88] sm:$0xff]  ;;  %v4138_v36 = vld [vmem:[%s9381_s4 + $0x1a0] sm:$0xff] }
 0x708   : > { %4076 = vmatpush.msra.mxu3 %v3409_v5  ;;  %4048 = vmatpush.msra.mxu2 %v3393_v54  ;;  %v3544_v5 = vadd.f32 %v3543_v62, %v3524_v44  ;;  %v4097_v44 = vld [vmem:[%s9381_s4 + $0x58] sm:$0xff] }
 0x70a   : > { %4077 = vmatpush.msra.mxu3 %v3407_v51  ;;  %4049 = vmatpush.msra.mxu2 %v3391_v28  ;;  %v3564_v51 = vadd.f32 %v3563_v20, %v3544_v5  ;;  %v4144_v20 = vld [vmem:[%s9381_s4 + $0x1d0] sm:$0xff]  ;;  %v4087_v5 = vld [vmem:[%s9381_s4 + $0x8] sm:$0xff] }
 0x70b   : > { %v3623_v45 = vpop.f32.mrf.mxu2 }
 0x70c   : > { %4078 = vmatpush.msra.mxu3 %v3405_v26  ;;  %4050 = vmatpush.msra.mxu2 %v3389_v59  ;;  %v3603_v30 = vpop.f32.mrf.mxu3  ;;  %v3584_v12 = vadd.f32 %v3583_v40, %v3564_v51  ;;  %v4112_v26 = vld [vmem:[%s9381_s4 + $0xd0] sm:$0xff] }
 0x70d   : > { %v4136_v40 = vld [vmem:[%s9381_s4 + $0x190] sm:$0xff] }
 0x70e   : > { %4079 = vmatpush.msra.mxu3 %v3403_v14  ;;  %4051 = vmatpush.msra.mxu2 %v3387_v7  ;;  %v3604_v11 = vadd.f32 %v3603_v30, %v3584_v12  ;;  %v4106_v14 = vld [vmem:[%s9381_s4 + $0xa0] sm:$0xff]  ;;  %v4128_v30 = vld [vmem:[%s9381_s4 + $0x150] sm:$0xff] }
 0x70f   : > { %v4124_v51 = vld [vmem:[%s9381_s4 + $0x130] sm:$0xff]  ;;  %v4118_v12 = vld [vmem:[%s9381_s4 + $0x100] sm:$0xff] }
 0x710   : > { %4080 = vmatpush.msra.mxu3 %v3401_v16  ;;  %4052 = vmatpush.msra.mxu2 %v3385_v21  ;;  %v3624_v22 = vadd.f32 %v3623_v45, %v3604_v11  ;;  %v4102_v16 = vld [vmem:[%s9381_s4 + $0x80] sm:$0xff]  ;;  %v4088_v21 = vld [vmem:[%s9381_s4 + $0x10] sm:$0xff] }
 0x712   : > { %4081 = vmatpush.msra.mxu3 %v3399_v18  ;;  %4053 = vmatpush.msra.mxu2 %v3383_v43  ;;  %v4098_v18 = vld [vmem:[%s9381_s4 + $0x60] sm:$0xff]  ;;  %v4117_v43 = vld [vmem:[%s9381_s4 + $0xf8] sm:$0xff] }
 0x713   : > { %4082 = vmatmul.f32.vlgmr.msra.gmra.mxu3 %v5050_v27  ;;  %v3663_v60 = vpop.f32.mrf.mxu2  ;;  %v4094_v27 = vld [vmem:[%s9381_s4 + $0x40] sm:$0xff] }
 0x714   : > { %4054 = vmatpush.msra.mxu2 %v3381_v23  ;;  %v3643_v9 = vpop.f32.mrf.mxu3  ;;  %v4109_v23 = vld [vmem:[%s9381_s4 + $0xb8] sm:$0xff]  ;;  %4176 = vmatpush.msrb.mxu3 %v4148_v33 }
 0x715   : > { %v3644_v54 = vadd.f32 %v3643_v9, %v3624_v22  ;;  %v4147_v9 = vld [vmem:[%s9381_s4 + $0x1e8] sm:$0xff] }
 0x716   : > { %4055 = vmatpush.msra.mxu2 %v3379_v35  ;;  %v4107_v35 = vld [vmem:[%s9381_s4 + $0xa8] sm:$0xff]  ;;  %4177 = vmatpush.msrb.mxu3 %v4146_v31 }
 0x717   : > { %v3664_v24 = vadd.f32 %v3663_v60, %v3644_v54  ;;  %v4143_v60 = vld [vmem:[%s9381_s4 + $0x1c8] sm:$0xff]  ;;  %v4137_v54 = vld [vmem:[%s9381_s4 + $0x198] sm:$0xff] }
 0x718   : > { %4056 = vmatpush.msra.mxu2 %v3377_v0  ;;  %4178 = vmatpush.msrb.mxu3 %v4144_v20  ;;  %v4140_v0 = vld [vmem:[%s9381_s4 + $0x1b0] sm:$0xff]  ;;  %v4139_v22 = vld [vmem:[%s9381_s4 + $0x1a8] sm:$0xff] }
 0x71a   : > { %4057 = vmatpush.msra.mxu2 %v3375_v42  ;;  %4179 = vmatpush.msrb.mxu3 %v4142_v49  ;;  %v4099_v42 = vld [vmem:[%s9381_s4 + $0x68] sm:$0xff] }
 0x71b   : > { %v3703_v28 = vpop.f32.mrf.mxu2 }
 0x71c   : > { %4058 = vmatpush.msra.mxu2 %v3373_v47  ;;  %v3683_v3 = vpop.f32.mrf.mxu3  ;;  %4180 = vmatpush.msrb.mxu3 %v4140_v0  ;;  %v4132_v47 = vld [vmem:[%s9381_s4 + $0x170] sm:$0xff] }
 0x71d   : > { %v3684_v29 = vadd.f32 %v3683_v3, %v3664_v24  ;;  %v4135_v24 = vld [vmem:[%s9381_s4 + $0x188] sm:$0xff] }
 0x71e   : > { %4059 = vmatpush.msra.mxu2 %v3371_v34  ;;  %4181 = vmatpush.msrb.mxu3 %v4138_v36  ;;  %v4089_v34 = vld [vmem:[%s9381_s4 + $0x18] sm:$0xff] }
 0x71f   : > { %v3704_v15 = vadd.f32 %v3703_v28, %v3684_v29 }
 0x720   : > { %4060 = vmatpush.msra.mxu2 %v3369_v53  ;;  %4182 = vmatpush.msrb.mxu3 %v4136_v40  ;;  %v4130_v53 = vld [vmem:[%s9381_s4 + $0x160] sm:$0xff] }
 0x721   : > { %v4264_v40 = vld [vmem:[%s9383_s6 + $0xe0] sm:$0xff] }
 0x722   : > { %4061 = vmatpush.msra.mxu2 %v3367_v50  ;;  %4183 = vmatpush.msrb.mxu3 %v4134_v8  ;;  %v4126_v50 = vld [vmem:[%s9381_s4 + $0x140] sm:$0xff]  ;;  %v4262_v8 = vld [vmem:[%s9383_s6 + $0xd0] sm:$0xff] }
 0x723   : > { %4062 = vmatmul.f32.vlgmr.msra.gmra.mxu2 %v5051_v38  ;;  %v3743_v1 = vpop.f32.mrf.mxu2  ;;  %v4122_v38 = vld [vmem:[%s9381_s4 + $0x120] sm:$0xff] }
 0x724   : > { %4156 = vmatpush.msrb.mxu2 %v4116_v17  ;;  %v3723_v59 = vpop.f32.mrf.mxu3  ;;  %4184 = vmatpush.msrb.mxu3 %v4132_v47  ;;  %v4294_v47 = vld [vmem:[%s9383_s6 + $0x1d0] sm:$0xff] }
 0x725   : > { %v3724_v7 = vadd.f32 %v3723_v59, %v3704_v15  ;;  %v4131_v59 = vld [vmem:[%s9381_s4 + $0x168] sm:$0xff] }
 0x726   : > { %4157 = vmatpush.msrb.mxu2 %v4114_v32  ;;  %4185 = vmatpush.msrb.mxu3 %v4130_v53  ;;  %v4120_v32 = vld [vmem:[%s9381_s4 + $0x110] sm:$0xff]  ;;  %v4256_v53 = vld [vmem:[%s9383_s6 + $0xa0] sm:$0xff] }
 0x727   : > { %v3744_v37 = vadd.f32 %v3743_v1, %v3724_v7  ;;  %v4125_v1 = vld [vmem:[%s9381_s4 + $0x138] sm:$0xff] }
 0x728   : > { %4158 = vmatpush.msrb.mxu2 %v4112_v26  ;;  %4186 = vmatpush.msrb.mxu3 %v4128_v30  ;;  %v4149_v26 = vld [vmem:[%s9381_s4 + $0x1f8] sm:$0xff]  ;;  %v4288_v30 = vld [vmem:[%s9383_s6 + $0x1a0] sm:$0xff] }
 0x72a   : > { %4159 = vmatpush.msrb.mxu2 %v4110_v41  ;;  %4187 = vmatpush.msrb.mxu3 %v4126_v50  ;;  %v4254_v50 = vld [vmem:[%s9383_s6 + $0x90] sm:$0xff] }
 0x72b   : > { %v3783_v17 = vpop.f32.mrf.mxu2 }
 0x72c   : > { %4160 = vmatpush.msrb.mxu2 %v4108_v10  ;;  %v3763_v62 = vpop.f32.mrf.mxu3  ;;  %4188 = vmatpush.msrb.mxu3 %v4124_v51  ;;  %v4145_v10 = vld [vmem:[%s9381_s4 + $0x1d8] sm:$0xff]  ;;  %v4286_v51 = vld [vmem:[%s9383_s6 + $0x190] sm:$0xff] }
 0x72d   : > { %v3764_v52 = vadd.f32 %v3763_v62, %v3744_v37 }
 0x72e   : > { %4161 = vmatpush.msrb.mxu2 %v4106_v14  ;;  %4189 = vmatpush.msrb.mxu3 %v4122_v38  ;;  %v4141_v14 = vld [vmem:[%s9381_s4 + $0x1b8] sm:$0xff]  ;;  %v4250_v38 = vld [vmem:[%s9383_s6 + $0x70] sm:$0xff] }
 0x730   : > { %4162 = vmatpush.msrb.mxu2 %v4104_v63  ;;  %4190 = vmatpush.msrb.mxu3 %v4120_v32  ;;  %v4282_v32 = vld [vmem:[%s9383_s6 + $0x170] sm:$0xff] }
 0x732   : > { %4163 = vmatpush.msrb.mxu2 %v4102_v16  ;;  %4191 = vmatpush.msrb.mxu3 %v4118_v12  ;;  %v4248_v12 = vld [vmem:[%s9383_s6 + $0x60] sm:$0xff] }
 0x733   : > { %v3823_v41 = vpop.f32.mrf.mxu2 }
 0x734   : > { %4164 = vmatpush.msrb.mxu2 %v4100_v48  ;;  %v3803_v45 = vpop.f32.mrf.mxu3  ;;  %4216 = vmatpush.msra.mxu3 %v4149_v26  ;;  %v4133_v48 = vld [vmem:[%s9381_s4 + $0x178] sm:$0xff]  ;;  %v4280_v26 = vld [vmem:[%s9383_s6 + $0x160] sm:$0xff] }
 0x735   : > { %v3804_v16 = vadd.f32 %v3803_v45, %v3783_v17  ;;  %v4252_v17 = vld [vmem:[%s9383_s6 + $0x80] sm:$0xff] }
 0x736   : > { %4165 = vmatpush.msrb.mxu2 %v4098_v18  ;;  %4217 = vmatpush.msra.mxu3 %v4147_v9  ;;  %v4284_v45 = vld [vmem:[%s9383_s6 + $0x180] sm:$0xff]  ;;  %v4246_v9 = vld [vmem:[%s9383_s6 + $0x50] sm:$0xff] }
 0x737   : > { %v3824_v28 = vadd.f32 %v3823_v41, %v3804_v16  ;;  %v4278_v41 = vld [vmem:[%s9383_s6 + $0x150] sm:$0xff]  ;;  %v4236_v16 = vld [vmem:[%s9383_s6] sm:$0xff] }
 0x738   : > { %4166 = vmatpush.msrb.mxu2 %v4096_v25  ;;  %4218 = vmatpush.msra.mxu3 %v4145_v10  ;;  %v4276_v10 = vld [vmem:[%s9383_s6 + $0x140] sm:$0xff] }
 0x73a   : > { %4167 = vmatpush.msrb.mxu2 %v4094_v27  ;;  %4219 = vmatpush.msra.mxu3 %v4143_v60  ;;  %v4129_v27 = vld [vmem:[%s9381_s4 + $0x158] sm:$0xff]  ;;  %v4242_v60 = vld [vmem:[%s9383_s6 + $0x30] sm:$0xff] }
 0x73b   : > { %v3863_v63 = vpop.f32.mrf.mxu2 }
 0x73c   : > { %4168 = vmatpush.msrb.mxu2 %v4092_v6  ;;  %v3843_v11 = vpop.f32.mrf.mxu3  ;;  %4220 = vmatpush.msra.mxu3 %v4141_v14  ;;  %v4127_v6 = vld [vmem:[%s9381_s4 + $0x148] sm:$0xff]  ;;  %v4274_v14 = vld [vmem:[%s9383_s6 + $0x130] sm:$0xff] }
 0x73d   : > { %v3844_v25 = vadd.f32 %v3843_v11, %v3824_v28  ;;  %v4244_v11 = vld [vmem:[%s9383_s6 + $0x40] sm:$0xff]  ;;  %v4299_v28 = vld [vmem:[%s9383_s6 + $0x1f8] sm:$0xff] }
 0x73e   : > { %4169 = vmatpush.msrb.mxu2 %v4090_v19  ;;  %4221 = vmatpush.msra.mxu3 %v4139_v22  ;;  %v4123_v19 = vld [vmem:[%s9381_s4 + $0x128] sm:$0xff]  ;;  %v4240_v22 = vld [vmem:[%s9383_s6 + $0x20] sm:$0xff] }
 0x73f   : > { %v3864_v15 = vadd.f32 %v3863_v63, %v3844_v25  ;;  %v4272_v63 = vld [vmem:[%s9383_s6 + $0x120] sm:$0xff]  ;;  %v4263_v25 = vld [vmem:[%s9383_s6 + $0xd8] sm:$0xff] }
 0x740   : > { %4170 = vmatpush.msrb.mxu2 %v4088_v21  ;;  %4222 = vmatpush.msra.mxu3 %v4137_v54  ;;  %v4270_v54 = vld [vmem:[%s9383_s6 + $0x110] sm:$0xff] }
 0x742   : > { %4171 = vmatpush.msrb.mxu2 %v4086_v39  ;;  %4223 = vmatpush.msra.mxu3 %v4135_v24  ;;  %v4121_v39 = vld [vmem:[%s9381_s4 + $0x118] sm:$0xff] }
 0x743   : > { %4172 = vmatmul.f32.vlgmr.msrb.gmra.mxu2 %v3764_v52  ;;  %v3903_v18 = vpop.f32.mrf.mxu2  ;;  %v4267_v24 = vld [vmem:[%s9383_s6 + $0xf8] sm:$0xff] }
 0x744   : > { %4196 = vmatpush.msra.mxu2 %v4117_v43  ;;  %v3883_v3 = vpop.f32.mrf.mxu3  ;;  %4224 = vmatpush.msra.mxu3 %v4133_v48  ;;  %v4268_v48 = vld [vmem:[%s9383_s6 + $0x100] sm:$0xff] }
 0x745   : > { %v3884_v7 = vadd.f32 %v3883_v3, %v3864_v15  ;;  %v4238_v3 = vld [vmem:[%s9383_s6 + $0x10] sm:$0xff]  ;;  %v4261_v15 = vld [vmem:[%s9383_s6 + $0xc8] sm:$0xff] }
 0x746   : > { %4197 = vmatpush.msra.mxu2 %v4115_v46  ;;  %4225 = vmatpush.msra.mxu3 %v4131_v59  ;;  %v4295_v59 = vld [vmem:[%s9383_s6 + $0x1d8] sm:$0xff] }
 0x747   : > { %v3904_v62 = vadd.f32 %v3903_v18, %v3884_v7  ;;  %v4265_v18 = vld [vmem:[%s9383_s6 + $0xe8] sm:$0xff] }
 0x748   : > { %4198 = vmatpush.msra.mxu2 %v4113_v61  ;;  %4226 = vmatpush.msra.mxu3 %v4129_v27  ;;  %v4293_v27 = vld [vmem:[%s9383_s6 + $0x1c8] sm:$0xff] }
 0x749   : > { %v4257_v7 = vld [vmem:[%s9383_s6 + $0xa8] sm:$0xff] }
 0x74a   : > { %4199 = vmatpush.msra.mxu2 %v4111_v58  ;;  %4227 = vmatpush.msra.mxu3 %v4127_v6  ;;  %v4259_v6 = vld [vmem:[%s9383_s6 + $0xb8] sm:$0xff] }
 0x74b   : > { %v3943_v37 = vpop.f32.mrf.mxu2 }
 0x74c   : > { %4200 = vmatpush.msra.mxu2 %v4109_v23  ;;  %v3923_v29 = vpop.f32.mrf.mxu3  ;;  %4228 = vmatpush.msra.mxu3 %v4125_v1  ;;  %v4291_v1 = vld [vmem:[%s9383_s6 + $0x1b8] sm:$0xff] }
 0x74d   : > { %v3924_v43 = vadd.f32 %v3923_v29, %v3904_v62  ;;  %v4297_v29 = vld [vmem:[%s9383_s6 + $0x1e8] sm:$0xff]  ;;  %v4251_v62 = vld [vmem:[%s9383_s6 + $0x78] sm:$0xff] }
 0x74e   : > { %4201 = vmatpush.msra.mxu2 %v4107_v35  ;;  %4229 = vmatpush.msra.mxu3 %v4123_v19  ;;  %v4289_v19 = vld [vmem:[%s9383_s6 + $0x1a8] sm:$0xff] }
 0x74f   : > { %v3944_v46 = vadd.f32 %v3943_v37, %v3924_v43  ;;  %v4255_v37 = vld [vmem:[%s9383_s6 + $0x98] sm:$0xff] }
 0x750   : > { %4202 = vmatpush.msra.mxu2 %v4105_v13  ;;  %4230 = vmatpush.msra.mxu3 %v4121_v39  ;;  %v4249_v39 = vld [vmem:[%s9383_s6 + $0x68] sm:$0xff]  ;;  %v4287_v43 = vld [vmem:[%s9383_s6 + $0x198] sm:$0xff] }
 0x752   : > { %4203 = vmatpush.msra.mxu2 %v4103_v56 }
 0x754   : > { %4204 = vmatpush.msra.mxu2 %v4101_v4  ;;  %v3963_v21 = vpop.f32.mrf.mxu3 }
 0x755   : > { %v3964_v23 = vadd.f32 %v3963_v21, %v3944_v46  ;;  %v4253_v21 = vld [vmem:[%s9383_s6 + $0x88] sm:$0xff] }
 0x756   : > { %4205 = vmatpush.msra.mxu2 %v4099_v42  ;;  %v4266_v42 = vld [vmem:[%s9383_s6 + $0xf0] sm:$0xff]  ;;  %v4245_v46 = vld [vmem:[%s9383_s6 + $0x48] sm:$0xff] }
 0x758   : > { %4206 = vmatpush.msra.mxu2 %v4097_v44  ;;  %v4298_v44 = vld [vmem:[%s9383_s6 + $0x1f0] sm:$0xff] }
 0x75a   : > { %4207 = vmatpush.msra.mxu2 %v4095_v55  ;;  %v4296_v55 = vld [vmem:[%s9383_s6 + $0x1e0] sm:$0xff] }
 0x75c   : > { %4208 = vmatpush.msra.mxu2 %v4093_v2  ;;  %v4003_v58 = vpop.f32.mrf.mxu3  ;;  %v4260_v2 = vld [vmem:[%s9383_s6 + $0xc0] sm:$0xff] }
 0x75e   : > { %4209 = vmatpush.msra.mxu2 %v4091_v57  ;;  %v4292_v57 = vld [vmem:[%s9383_s6 + $0x1c0] sm:$0xff] }
 0x760   : > { %4210 = vmatpush.msra.mxu2 %v4089_v34  ;;  %v4258_v34 = vld [vmem:[%s9383_s6 + $0xb0] sm:$0xff] }
 0x762   : > { %4211 = vmatpush.msra.mxu2 %v4087_v5  ;;  %v4290_v5 = vld [vmem:[%s9383_s6 + $0x1b0] sm:$0xff] }
 0x763   : > { %4212 = vmatmul.f32.vlgmr.msra.gmra.mxu2 %v3764_v52  ;;  %v4119_v52 = vld [vmem:[%s9381_s4 + $0x108] sm:$0xff] }
 0x764   : > { %4231 = vmatpush.msra.mxu3 %v4119_v52  ;;  %4306 = vmatpush.msrb.mxu2 %v4266_v42  ;;  %v4247_v52 = vld [vmem:[%s9383_s6 + $0x58] sm:$0xff]  ;;  %v4150_v42 = vld [vmem:[%s9382_s5] sm:$0x3] }
 0x766   : > { %v3983_v61 = vpop.f32.mrf.mxu2  ;;  %4307 = vmatpush.msrb.mxu2 %v4264_v40  ;;  %v4152_v40 = vperm.slane %v4150_v42, 0 }
 0x767   : > { %v3984_v33 = vadd.f32 %v3983_v61, %v3964_v23  ;;  %v4285_v61 = vld [vmem:[%s9383_s6 + $0x188] sm:$0xff]  ;;  %v4283_v23 = vld [vmem:[%s9383_s6 + $0x178] sm:$0xff] }
 0x768   : > { %4308 = vmatpush.msrb.mxu2 %v4262_v8 }
 0x769   : > { %v4004_v20 = vadd.f32 %v4003_v58, %v3984_v33  ;;  %v4243_v58 = vld [vmem:[%s9383_s6 + $0x38] sm:$0xff]  ;;  %v4241_v33 = vld [vmem:[%s9383_s6 + $0x28] sm:$0xff] }
 0x76a   : > { %4309 = vmatpush.msrb.mxu2 %v4260_v2  ;;  %v4153_v2 = vperm.slane %v4150_v42, 1 }
 0x76c   : > { %4310 = vmatpush.msrb.mxu2 %v4258_v34 }
 0x76e   : > { %4311 = vmatpush.msrb.mxu2 %v4256_v53 }
 0x770   : > { %4312 = vmatpush.msrb.mxu2 %v4254_v50 }
 0x772   : > { %4313 = vmatpush.msrb.mxu2 %v4252_v17 }
 0x774   : > { %4314 = vmatpush.msrb.mxu2 %v4250_v38 }
 0x776   : > { %v4043_v35 = vpop.f32.mrf.mxu3  ;;  %4315 = vmatpush.msrb.mxu2 %v4248_v12 }
 0x778   : > { %4316 = vmatpush.msrb.mxu2 %v4246_v9 }
 0x77a   : > { %4317 = vmatpush.msrb.mxu2 %v4244_v11 }
 0x77c   : > { %4318 = vmatpush.msrb.mxu2 %v4242_v60 }
 0x77e   : > { %4319 = vmatpush.msrb.mxu2 %v4240_v22 }
 0x780   : > { %4320 = vmatpush.msrb.mxu2 %v4238_v3 }
 0x782   : > { %4321 = vmatpush.msrb.mxu2 %v4236_v16 }
 0x784   : > { %4346 = vmatpush.msra.mxu2 %v4267_v24 }
 0x786   : > { %v4023_v31 = vpop.f32.mrf.mxu2  ;;  %4347 = vmatpush.msra.mxu2 %v4265_v18 }
 0x787   : > { %v4024_v13 = vadd.f32 %v4023_v31, %v4004_v20  ;;  %v4281_v31 = vld [vmem:[%s9383_s6 + $0x168] sm:$0xff]  ;;  %v4279_v20 = vld [vmem:[%s9383_s6 + $0x158] sm:$0xff] }
 0x788   : > { %4348 = vmatpush.msra.mxu2 %v4263_v25 }
 0x789   : > { %v4044_v49 = vadd.f32 %v4043_v35, %v4024_v13  ;;  %v4239_v35 = vld [vmem:[%s9383_s6 + $0x18] sm:$0xff]  ;;  %v4237_v13 = vld [vmem:[%s9383_s6 + $0x8] sm:$0xff] }
 0x78a   : > { %4349 = vmatpush.msra.mxu2 %v4261_v15 }
 0x78c   : > { %4350 = vmatpush.msra.mxu2 %v4259_v6 }
 0x78e   : > { %4351 = vmatpush.msra.mxu2 %v4257_v7 }
 0x790   : > { %4352 = vmatpush.msra.mxu2 %v4255_v37 }
 0x792   : > { %4353 = vmatpush.msra.mxu2 %v4253_v21 }
 0x794   : > { %4354 = vmatpush.msra.mxu2 %v4251_v62 }
 0x796   : > { %v4083_v0 = vpop.f32.mrf.mxu3  ;;  %4355 = vmatpush.msra.mxu2 %v4249_v39 }
 0x798   : > { %4356 = vmatpush.msra.mxu2 %v4247_v52 }
 0x79a   : > { %4357 = vmatpush.msra.mxu2 %v4245_v46 }
 0x79c   : > { %4358 = vmatpush.msra.mxu2 %v4243_v58 }
 0x79e   : > { %4359 = vmatpush.msra.mxu2 %v4241_v33 }
 0x7a0   : > { %4360 = vmatpush.msra.mxu2 %v4239_v35 }
 0x7a2   : > { %4361 = vmatpush.msra.mxu2 %v4237_v13 }
 0x7a6   : > { %v4063_v56 = vpop.f32.mrf.mxu2 }
 0x7a7   : > { %v4064_v4 = vadd.f32 %v4063_v56, %v4044_v49  ;;  %v4277_v49 = vld [vmem:[%s9383_s6 + $0x148] sm:$0xff]  ;;  %v4275_v56 = vld [vmem:[%s9383_s6 + $0x138] sm:$0xff] }
 0x7a9   : > { %v4084_v36 = vadd.f32 %v4083_v0, %v4064_v4  ;;  %v4273_v0 = vld [vmem:[%s9383_s6 + $0x128] sm:$0xff]  ;;  %v4271_v4 = vld [vmem:[%s9383_s6 + $0x118] sm:$0xff] }
 0x7ab   : > { %4192 = vmatmul.f32.vlgmr.msrb.gmra.mxu3 %v4084_v36 }
 0x7ac   : > { %4326 = vmatpush.msrb.mxu3 %v4298_v44 }
 0x7ae   : > { %4327 = vmatpush.msrb.mxu3 %v4296_v55 }
 0x7b0   : > { %4328 = vmatpush.msrb.mxu3 %v4294_v47 }
 0x7b2   : > { %4329 = vmatpush.msrb.mxu3 %v4292_v57 }
 0x7b3   : > { %4232 = vmatmul.f32.vlgmr.msra.gmra.mxu3 %v4084_v36  ;;  %v4269_v36 = vld [vmem:[%s9383_s6 + $0x108] sm:$0xff] }
 0x7b4   : > { %4330 = vmatpush.msrb.mxu3 %v4290_v5 }
 0x7b6   : > { %4331 = vmatpush.msrb.mxu3 %v4288_v30  ;;  %v4300_v30 = vld [vmem:[%s9384_s7] sm:$0x3] }
 0x7b8   : > { %4332 = vmatpush.msrb.mxu3 %v4286_v51  ;;  %v4302_v51 = vperm.slane %v4300_v30, 0 }
 0x7ba   : > { %4333 = vmatpush.msrb.mxu3 %v4284_v45 }
 0x7bc   : > { %4334 = vmatpush.msrb.mxu3 %v4282_v32  ;;  %v4303_v32 = vperm.slane %v4300_v30, 1 }
 0x7be   : > { %4335 = vmatpush.msrb.mxu3 %v4280_v26 }
 0x7c0   : > { %4336 = vmatpush.msrb.mxu3 %v4278_v41 }
 0x7c2   : > { %4337 = vmatpush.msrb.mxu3 %v4276_v10 }
 0x7c4   : > { %4338 = vmatpush.msrb.mxu3 %v4274_v14 }
 0x7c6   : > { %4339 = vmatpush.msrb.mxu3 %v4272_v63  ;;  %v4173_v44 = vpop.f32.mrf.mxu2 }
 0x7c7   : > { %v4174_v8 = vadd.f32 %v4173_v44, %v4152_v40 }
 0x7c8   : > { %4340 = vmatpush.msrb.mxu3 %v4270_v54 }
 0x7ca   : > { %4341 = vmatpush.msrb.mxu3 %v4268_v48 }
 0x7cc   : > { %4366 = vmatpush.msra.mxu3 %v4299_v28 }
 0x7ce   : > { %4367 = vmatpush.msra.mxu3 %v4297_v29 }
 0x7d0   : > { %4368 = vmatpush.msra.mxu3 %v4295_v59 }
 0x7d2   : > { %4369 = vmatpush.msra.mxu3 %v4293_v27 }
 0x7d4   : > { %4370 = vmatpush.msra.mxu3 %v4291_v1 }
 0x7d6   : > { %4371 = vmatpush.msra.mxu3 %v4289_v19 }
 0x7d8   : > { %4372 = vmatpush.msra.mxu3 %v4287_v43 }
 0x7da   : > { %4373 = vmatpush.msra.mxu3 %v4285_v61 }
 0x7dc   : > { %4374 = vmatpush.msra.mxu3 %v4283_v23 }
 0x7de   : > { %4375 = vmatpush.msra.mxu3 %v4281_v31 }
 0x7e0   : > { %4376 = vmatpush.msra.mxu3 %v4279_v20 }
 0x7e2   : > { %4377 = vmatpush.msra.mxu3 %v4277_v49 }
 0x7e4   : > { %4378 = vmatpush.msra.mxu3 %v4275_v56 }
 0x7e6   : > { %4379 = vmatpush.msra.mxu3 %v4273_v0  ;;  %v4213_v57 = vpop.f32.mrf.mxu2 }
 0x7e7   : > { %v4214_v34 = vadd.f32 %v4213_v57, %v4153_v2 }
 0x7e8   : > { %4380 = vmatpush.msra.mxu3 %v4271_v4 }
 0x7ea   : > { %4381 = vmatpush.msra.mxu3 %v4269_v36 }
 0x82e   : > { %v4193_v55 = vpop.f32.mrf.mxu3 }
 0x82f   : > { %v4194_v47 = vadd.f32 %v4193_v55, %v4174_v8 }
 0x831   : > { %4322 = vmatmul.f32.vlgmr.msrb.gmra.mxu2 %v4194_v47 }
 0x836   : > { %v4233_v5 = vpop.f32.mrf.mxu3 }
 0x837   : > { %v4234_v53 = vadd.f32 %v4233_v5, %v4214_v34 }
 0x839   : > { %4342 = vmatmul.f32.vlgmr.msrb.gmra.mxu3 %v4234_v53  ;;  %4362 = vmatmul.f32.vlgmr.msra.gmra.mxu2 %v4194_v47 }
 0x841   : > { %4382 = vmatmul.f32.vlgmr.msra.gmra.mxu3 %v4234_v53 }
 0x8b4   : > { %v4323_v50 = vpop.f32.mrf.mxu2 }
 0x8b5   : > { %v4324_v17 = vadd.f32 %v4323_v50, %v4302_v51 }
 0x8bc   : > { %v4343_v45 = vpop.f32.mrf.mxu3  ;;  %v4363_v12 = vpop.f32.mrf.mxu2 }
 0x8bd   : > { %v4344_v38 = vadd.f32 %v4343_v45, %v4324_v17  ;;  %v4364_v26 = vadd.f32 %v4363_v12, %v4303_v32 }
 0x8bf   : > { %4386 = vst [vmem:[%s299_s24] sm:$0xff] %v4344_v38 }
 0x8c4   : > { %v4383_v9 = vpop.f32.mrf.mxu3 }
 0x8c5   : > { %v4384_v41 = vadd.f32 %v4383_v9, %v4364_v26 }
 0x8c7   : > { %4387 = vst [vmem:[%s299_s24 + $0x8] sm:$0xff] %v4384_v41 }
 0x8c8   : > { %5079 = shalt.err (!%p5076_p3)
}
 0x8c9   : > { %4995 = dma.vmem_to_hbm [thread:$0]  (%p5199_p5), %s4403_s12, 256, %s4405_s13, %s4389_s17  }
 0x8ca PF: > { %p5001_p4 = scmp.ge.s32.totalorder %s5114_s30, 2  ;;  %s4416_s21 = sand.u32 1, %s5102_s27  }
 0x8cb   : > { %s4417_s24 = scalar_lea.sflag [#allocation3], %s4416_s21 }
 0x8cc   : > { %p4998_p7 = pnand %p5001_p4, %p5203_p6 }
 0x8ce   : > { %p4999_p8 = pneg %p4998_p7 }
 0x8d0   : > { %5097 = dma.done.wait (%p4999_p8), %s4417_s24, 256  }
 0x8d1   : > { %5099 = vsyncadd (%p4999_p8), %s4417_s24, 4294967040  ;;  %p18_p9 = scmp.ge.s32.totalorder %s5186_s11, 4   ;;  %s9894_s27 = smov %s5106_s28 }
 0x8d2   : > { %s9895_s28 = smov %s5110_s29  ;;  %s9896_s29 = smov %s5197_s14 }
 0x8d3   : > { %s9897_s30 = smov %s5186_s11  ;;  %20 = sbr.rel (!%p18_p9) target bundleno = 3 (0x3), region = 87 }
 0x8d8   :  { %4423 = vsyncpa [#allocation3], 1 }
 0x8d9   :  { %4425 = vsyncpa [#allocation3 + $0x1], 1 }

</bundles_post_ra>
